<compile_context>
chip_gen: v5e
topology: v5e:2x2
jax: 0.10.0
libtpu: 0.0.40
codegen_flags: <defaults>
</compile_context>

<pallas_src>
import functools

import jax
import jax.numpy as jnp
from jax.experimental import pallas as pl
from jax.experimental.pallas import tpu as pltpu


# ----------------------------- model dims (small, consistent with the module) ----------
QUERY_DIM = 256      # query_dim
H1 = 128             # q_lstm1_dim
H2 = 128             # q_lstm2_dim   (2*H2 must equal NODE_FC1 for the cat to line up)
NODE_DIM = 256       # node_dim
NODE_FC1 = 256       # node_fc1_dim  (== 2*H2)
QNODE_FC1 = 256      # qnode_fc1_dim
QNODE_FC2 = 128      # qnode_fc2_dim

N_NODES = 64         # nodes per (q, nodes) pair (multiple of 8 -> full sublane tiles)
BATCH = 4            # number of (q, nodes) pairs per pallas_call

# ---- packed-weight column offsets ------------------------------------------------------
# All six weight matrices share K == 256 at these dims, so they are concatenated along the
# lane axis into one (256, 2432) buffer; every offset is a multiple of 128 so in-kernel
# slices stay lane-tile aligned (no relayout).
_K = QUERY_DIM
assert _K == 2 * H1 == NODE_DIM == NODE_FC1 == 2 * H2 == QNODE_FC1, \
    "single packed weight buffer assumes a shared contraction dim"
O_W1 = 0
O_W2 = O_W1 + 6 * H1
O_WN = O_W2 + 6 * H2
O_WQ1Q = O_WN + NODE_FC1
O_WQ1N = O_WQ1Q + QNODE_FC1
O_WQ2 = O_WQ1N + QNODE_FC1
W_COLS = O_WQ2 + QNODE_FC2          # 2432

O_B1 = 0
O_B2 = O_B1 + 6 * H1
O_BN = O_B2 + 6 * H2
O_BQ1 = O_BN + NODE_FC1
O_BQ2 = O_BQ1 + QNODE_FC1
B_COLS = O_BQ2 + QNODE_FC2          # 2176


def _lstm_step_from_gates(gates, h):
    """One LSTM cell step, zero initial (h, c), gates packed [i, g, o]: h' = o*tanh(i*g)."""
    i = jax.nn.sigmoid(gates[:, 0 * h:1 * h])
    g = jnp.tanh(gates[:, 1 * h:2 * h])
    o = jax.nn.sigmoid(gates[:, 2 * h:3 * h])
    return o * jnp.tanh(i * g)


def query_node_encoder_kernel(q_ref, nodes_ref, w_ref, b_ref,
                              q_out_ref, nodes_out_ref, *, h1, h2):
    f32, bf16 = jnp.float32, jnp.bfloat16
    b = pl.program_id(0)                         # which (q, nodes) pair

    def dot(a, w):                                # bf16 MXU, f32 accumulation
        return jnp.dot(a.astype(bf16), w, preferred_element_type=f32)

    # --- BiLSTM layer 1 (single time step, zero initial state) -------------------------
    # q batch is VMEM-resident (constant index_map); read this pair's row dynamically.
    x = q_ref[pl.ds(b, 1), :]                                             # (1, Dq) f32
    gates1 = dot(x, w_ref[:, O_W1:O_W1 + 6 * h1]) + b_ref[:, O_B1:O_B1 + 6 * h1]
    q1 = jnp.concatenate([_lstm_step_from_gates(gates1[:, :3 * h1], h1),
                          _lstm_step_from_gates(gates1[:, 3 * h1:], h1)], axis=-1)

    # --- BiLSTM layer 2 -----------------------------------------------------------------
    gates2 = dot(q1, w_ref[:, O_W2:O_W2 + 6 * h2]) + b_ref[:, O_B2:O_B2 + 6 * h2]
    qv = jnp.concatenate([_lstm_step_from_gates(gates2[:, :3 * h2], h2),
                          _lstm_step_from_gates(gates2[:, 3 * h2:], h2)], axis=-1)

    # full 8-sublane, lane-dense store; wrapper keeps sublane row 0
    q_out_ref[0] = jnp.broadcast_to(qv, q_out_ref.shape[1:]).astype(q_out_ref.dtype)

    # --- node encoder: Linear + ReLU (+ Dropout == identity) ---------------------------
    nd = dot(nodes_ref[0], w_ref[:, O_WN:O_WN + NODE_FC1]) + b_ref[:, O_BN:O_BN + NODE_FC1]
    nd = jnp.maximum(nd, 0.0)                                             # (N, F1) f32

    # --- query-node MLP layer 1: cat(q.repeat(N,1), nodes) @ W, without the concat -----
    qc = dot(qv, w_ref[:, O_WQ1Q:O_WQ1Q + QNODE_FC1])                     # (1, F1)
    hq = dot(nd, w_ref[:, O_WQ1N:O_WQ1N + QNODE_FC1]) + qc + b_ref[:, O_BQ1:O_BQ1 + QNODE_FC1]
    hq = jnp.maximum(hq, 0.0)

    # --- query-node MLP layer 2 (+ Dropout == identity) --------------------------------
    out = dot(hq, w_ref[:, O_WQ2:O_WQ2 + QNODE_FC2]) + b_ref[:, O_BQ2:O_BQ2 + QNODE_FC2]
    nodes_out_ref[0] = jnp.maximum(out, 0.0).astype(nodes_out_ref.dtype)


def query_node_encoder_batched(q_all, nodes_all, params):
    """Run the encoder over a batch of (q, nodes) pairs in one pallas_call.

    q_all:     (B, QUERY_DIM)         one single-time-step query per pair
    nodes_all: (B, N_NODES, NODE_DIM) per-pair node embeddings (N multiple of 8)
    returns    (B, 2*H2), (B, N_NODES, QNODE_FC2)
    """
    assert q_all.ndim == 2 and q_all.shape[1] == QUERY_DIM
    assert nodes_all.ndim == 3 and nodes_all.shape[2] == NODE_DIM
    bsz, n = nodes_all.shape[0], nodes_all.shape[1]
    assert q_all.shape[0] == bsz and n % 8 == 0

    w_pack, b_pack = params["w_pack"], params["b_pack"]

    q_in = q_all.astype(jnp.float32)             # tiny; f32 keeps the dynamic row read simple
    nodes_in = nodes_all.astype(jnp.bfloat16)    # halve activation DMA bytes

    kernel = functools.partial(query_node_encoder_kernel, h1=H1, h2=H2)

    grid_spec = pltpu.PrefetchScalarGridSpec(
        num_scalar_prefetch=0,
        grid=(bsz,),
        in_specs=[
            pl.BlockSpec((bsz, QUERY_DIM), lambda b: (0, 0)),       # q batch: resident
            pl.BlockSpec((1, n, NODE_DIM), lambda b: (b, 0, 0)),    # per-pair node tile
            pl.BlockSpec((_K, W_COLS), lambda b: (0, 0)),           # packed weights: resident
            pl.BlockSpec((1, B_COLS), lambda b: (0, 0)),            # packed biases: resident
        ],
        out_specs=(
            pl.BlockSpec((1, 8, 2 * H2), lambda b: (b, 0, 0)),      # padded q output
            pl.BlockSpec((1, n, QNODE_FC2), lambda b: (b, 0, 0)),
        ),
    )
    out_shape = (jax.ShapeDtypeStruct((bsz, 8, 2 * H2), jnp.float32),
                 jax.ShapeDtypeStruct((bsz, n, QNODE_FC2), jnp.float32))

    # advisory cost estimate so XLA can overlap this short, DMA-bound call with neighbours
    flops = bsz * (2 * (QUERY_DIM * 6 * H1 + 2 * H1 * 6 * H2 + 2 * H2 * QNODE_FC1)
                   + 2 * n * (NODE_DIM * NODE_FC1 + NODE_FC1 * QNODE_FC1
                              + QNODE_FC1 * QNODE_FC2))
    transcendentals = bsz * (8 * H1 + 8 * H2)
    bytes_accessed = (q_in.size * 4 + nodes_in.size * 2
                      + w_pack.size * 2 + b_pack.size * 4
                      + bsz * 8 * 2 * H2 * 4 + bsz * n * QNODE_FC2 * 4)

    q_pad, nodes_out = pl.pallas_call(
        kernel,
        grid_spec=grid_spec,
        out_shape=out_shape,
        compiler_params=pltpu.CompilerParams(
            dimension_semantics=("parallel",),        # shard pairs across both v7x TCs
            vmem_limit_bytes=32 * 1024 * 1024),       # explicit budget, safe on v5e/v6e/v7x
        cost_estimate=pl.CostEstimate(flops=flops, transcendentals=transcendentals,
                                      bytes_accessed=bytes_accessed),
    )(q_in, nodes_in, w_pack, b_pack)
    return q_pad[:, 0, :], nodes_out


def query_node_encoder(q, nodes, params):
    """Module-equivalent single-pair forward: q (1, Dq) (seq_len==1), nodes (N, Dn)."""
    q_out, nodes_out = query_node_encoder_batched(q, nodes[None], params)
    return q_out, nodes_out[0]


# ----------------------------- deterministic synthetic parameters -----------------------
def init_params(key):
    """Returns (kernel_params, full_params).

    kernel_params: ONE packed (K, 2432) bf16 weight buffer + ONE (1, 2176) f32 bias buffer.
                   Forget gate dropped ([i, g, o] per direction, forward then backward),
                   weights pre-transposed to [in, out].  Valid only for seq_len==1 with a
                   zero (h, c) initial state (W_hh never influences the output).
    full_params:   original PyTorch-shaped f32 tensors (gate order [i, f, g, o]) for the
                   full-precision reference of the module's forward pass.
    """
    ks = jax.random.split(key, 18)
    s = 0.05

    def rnd(k, shape):
        return jax.random.normal(k, shape, jnp.float32) * s

    # BiLSTM 1 (PyTorch shapes: weight_ih (4H, in), bias (4H,))
    w_ih_1f = rnd(ks[0], (4 * H1, QUERY_DIM))
    w_ih_1b = rnd(ks[1], (4 * H1, QUERY_DIM))
    b1f = rnd(ks[2], (4 * H1,)) + rnd(ks[3], (4 * H1,))    # bias_ih + bias_hh (forward)
    b1b = rnd(ks[4], (4 * H1,)) + rnd(ks[5], (4 * H1,))    # bias_ih + bias_hh (reverse)

    # BiLSTM 2 (input = 2*H1)
    w_ih_2f = rnd(ks[6], (4 * H2, 2 * H1))
    w_ih_2b = rnd(ks[7], (4 * H2, 2 * H1))
    b2f = rnd(ks[8], (4 * H2,)) + rnd(ks[9], (4 * H2,))
    b2b = rnd(ks[10], (4 * H2,)) + rnd(ks[11], (4 * H2,))

    # node encoder Linear
    wn_t = rnd(ks[12], (NODE_FC1, NODE_DIM))
    bn = rnd(ks[13], (NODE_FC1,))

    # query-node MLP
    wq1_t = rnd(ks[14], (QNODE_FC1, 2 * NODE_FC1))
    bq1 = rnd(ks[15], (QNODE_FC1,))
    wq2_t = rnd(ks[16], (QNODE_FC2, QNODE_FC1))
    bq2 = rnd(ks[17], (QNODE_FC2,))

    full_params = dict(w_ih_1f=w_ih_1f, w_ih_1b=w_ih_1b, b1f=b1f, b1b=b1b,
                       w_ih_2f=w_ih_2f, w_ih_2b=w_ih_2b, b2f=b2f, b2b=b2b,
                       wn_t=wn_t, bn=bn, wq1_t=wq1_t, bq1=bq1, wq2_t=wq2_t, bq2=bq2)

    # ---- pack for the kernel: drop dead forget gate, [i, g, o] order, one bf16 buffer ---
    def drop_f_w(w_ih, h):     # (4h, in) -> (3h, in), keep [i, g, o]
        return jnp.concatenate([w_ih[:h], w_ih[2 * h:]], axis=0)

    def drop_f_b(bb, h):       # (4h,) -> (3h,)
        return jnp.concatenate([bb[:h], bb[2 * h:]])

    w1 = jnp.concatenate([drop_f_w(w_ih_1f, H1).T, drop_f_w(w_ih_1b, H1).T], axis=1)
    b1 = jnp.concatenate([drop_f_b(b1f, H1), drop_f_b(b1b, H1)])
    w2 = jnp.concatenate([drop_f_w(w_ih_2f, H2).T, drop_f_w(w_ih_2b, H2).T], axis=1)
    b2 = jnp.concatenate([drop_f_b(b2f, H2), drop_f_b(b2b, H2)])

    wn = wn_t.T                                    # (Dn, F1)
    wq1_q = wq1_t[:, :2 * H2].T                    # query-feature columns of wq1
    wq1_n = wq1_t[:, 2 * H2:].T                    # node-feature columns of wq1
    wq2 = wq2_t.T

    w_pack = jnp.concatenate([w1, w2, wn, wq1_q, wq1_n, wq2], axis=1).astype(jnp.bfloat16)
    b_pack = jnp.concatenate([b1, b2, bn, bq1, bq2]).reshape(1, -1).astype(jnp.float32)
    assert w_pack.shape == (_K, W_COLS) and b_pack.shape == (1, B_COLS)

    kernel_params = dict(w_pack=w_pack, b_pack=b_pack)
    return kernel_params, full_params


# ----------------------------- references (for correctness checks) ----------------------
def reference_matched(q_all, nodes_all, p):
    """Pure-JAX mirror of the kernel math (same bf16 weights/activation casts, f32 accum)."""
    bf16, f32 = jnp.bfloat16, jnp.float32
    w, bias = p["w_pack"], p["b_pack"][0]

    def dot(a, wm):
        return jnp.dot(a.astype(bf16), wm, preferred_element_type=f32)

    def bi_step(x, wm, bb, h):
        gates = dot(x, wm) + bb
        def step(g):
            i = jax.nn.sigmoid(g[..., :h])
            gg = jnp.tanh(g[..., h:2 * h])
            o = jax.nn.sigmoid(g[..., 2 * h:3 * h])
            return o * jnp.tanh(i * gg)
        return jnp.concatenate([step(gates[..., :3 * h]), step(gates[..., 3 * h:])], axis=-1)

    qv = bi_step(q_all, w[:, O_W1:O_W1 + 6 * H1], bias[O_B1:O_B1 + 6 * H1], H1)
    qv = bi_step(qv, w[:, O_W2:O_W2 + 6 * H2], bias[O_B2:O_B2 + 6 * H2], H2)
    nd = jnp.maximum(dot(nodes_all, w[:, O_WN:O_WN + NODE_FC1])
                     + bias[O_BN:O_BN + NODE_FC1], 0.0)
    qc = dot(qv, w[:, O_WQ1Q:O_WQ1Q + QNODE_FC1])
    h = jnp.maximum(dot(nd, w[:, O_WQ1N:O_WQ1N + QNODE_FC1]) + qc[:, None, :]
                    + bias[O_BQ1:O_BQ1 + QNODE_FC1], 0.0)
    h = jnp.maximum(dot(h, w[:, O_WQ2:O_WQ2 + QNODE_FC2])
                    + bias[O_BQ2:O_BQ2 + QNODE_FC2], 0.0)
    return qv, h


def reference_full(q_all, nodes_all, p):
    """Full-precision f32 reference of the module forward (full [i,f,g,o] gates, zero state)."""
    def lstm_dir(x, w_ih, bb, h):
        g = x @ w_ih.T + bb
        i = jax.nn.sigmoid(g[..., :h])
        gg = jnp.tanh(g[..., 2 * h:3 * h])
        o = jax.nn.sigmoid(g[..., 3 * h:4 * h])
        return o * jnp.tanh(i * gg)             # forget gate multiplies c0 == 0

    def bi(x, wf, bfw, wb, bbw, h):
        return jnp.concatenate([lstm_dir(x, wf, bfw, h), lstm_dir(x, wb, bbw, h)], axis=-1)

    qv = bi(q_all, p["w_ih_1f"], p["b1f"], p["w_ih_1b"], p["b1b"], H1)
    qv = bi(qv, p["w_ih_2f"], p["b2f"], p["w_ih_2b"], p["b2b"], H2)
    nd = jnp.maximum(nodes_all @ p["wn_t"].T + p["bn"], 0.0)
    bsz, n = nodes_all.shape[0], nodes_all.shape[1]
    cat = jnp.concatenate(
        [jnp.broadcast_to(qv[:, None, :], (bsz, n, qv.shape[-1])), nd], axis=-1)
    h = jnp.maximum(cat @ p["wq1_t"].T + p["bq1"], 0.0)
    h = jnp.maximum(h @ p["wq2_t"].T + p["bq2"], 0.0)
    return qv, h


if __name__ == "__main__":
    key = jax.random.PRNGKey(0)
    kq, kn, kp = jax.random.split(key, 3)

    q_all = jax.random.normal(kq, (BATCH, QUERY_DIM), jnp.float32)        # seq_len == 1 each
    nodes_all = jax.random.normal(kn, (BATCH, N_NODES, NODE_DIM), jnp.float32)
    kernel_params, full_params = init_params(kp)

    q_out, nodes_out = query_node_encoder_batched(q_all, nodes_all, kernel_params)
    jax.block_until_ready((q_out, nodes_out))
    assert q_out.shape == (BATCH, 2 * H2)
    assert nodes_out.shape == (BATCH, N_NODES, QNODE_FC2)

    # tight check vs. a reference using the identical bf16 weights / casts
    q_m, n_m = reference_matched(q_all, nodes_all, kernel_params)
    assert jnp.allclose(q_out, q_m, atol=2e-3, rtol=2e-3)
    assert jnp.allclose(nodes_out, n_m, atol=2e-3, rtol=2e-3)

    # loose semantic check vs. full-precision f32 module math (bf16 weights are the
    # intentional perf trade-off)
    q_f, n_f = reference_full(q_all, nodes_all, full_params)
    assert jnp.allclose(q_out, q_f, atol=1e-1, rtol=1e-1)
    assert jnp.allclose(nodes_out, n_f, atol=1e-1, rtol=1e-1)

    # module-equivalent single-pair API (B == 1 grid) stays consistent with the batch
    q1, n1 = query_node_encoder(q_all[0:1], nodes_all[0], kernel_params)
    jax.block_until_ready((q1, n1))
    assert jnp.allclose(q1, q_out[0:1], atol=2e-3, rtol=2e-3)
    assert jnp.allclose(n1, nodes_out[0], atol=2e-3, rtol=2e-3)

    print("KERNEL_OK")
</pallas_src>

<mosaic_0001>
module attributes {stable_mosaic.version = 11 : i64} {
  func.func @query_node_encoder_kernel(%arg0: i32, %arg1: memref<4x256xf32, #tpu.memory_space<vmem>>, %arg2: memref<1x64x256xbf16, #tpu.memory_space<vmem>>, %arg3: memref<256x2432xbf16, #tpu.memory_space<vmem>>, %arg4: memref<1x2176xf32, #tpu.memory_space<vmem>>, %arg5: memref<1x8x256xf32, #tpu.memory_space<vmem>>, %arg6: memref<1x64x128xf32, #tpu.memory_space<vmem>>) attributes {dimension_semantics = [#tpu.dimension_semantics<parallel>], iteration_bounds = array<i64: 4>, scalar_prefetch = 0 : i64, scratch_operands = 0 : i64, tpu.core_type = #tpu.core_type<tc>, window_params = [{pipeline_mode = #tpu.pipeline_mode<synchronous>, transform_indices = @transform_0, window_bounds = array<i64: 4, 256>}, {transform_indices = @transform_1, window_bounds = array<i64: 1, 64, 256>}, {pipeline_mode = #tpu.pipeline_mode<synchronous>, transform_indices = @transform_2, window_bounds = array<i64: 256, 2432>}, {pipeline_mode = #tpu.pipeline_mode<synchronous>, transform_indices = @transform_3, window_bounds = array<i64: 1, 2176>}, {transform_indices = @transform_4, window_bounds = array<i64: 1, 8, 256>}, {transform_indices = @transform_5, window_bounds = array<i64: 1, 64, 128>}]} {
    %0 = arith.index_cast %arg0 : i32 to index
    %c0 = arith.constant 0 : index
    %1 = vector.load %arg1[%0, %c0] : memref<4x256xf32, #tpu.memory_space<vmem>>, vector<1x256xf32>
    %c0_0 = arith.constant 0 : index
    %c0_1 = arith.constant 0 : index
    %2 = vector.load %arg3[%c0_0, %c0_1] : memref<256x2432xbf16, #tpu.memory_space<vmem>>, vector<256x768xbf16>
    %3 = arith.truncf %1 : vector<1x256xf32> to vector<1x256xbf16>
    %cst = arith.constant dense<0.000000e+00> : vector<1x768xf32>
    %4 = tpu.matmul %3, %2, %cst {dimension_numbers = #tpu.dot_dimension_numbers<[1], [0], [0], [1], [0, 0, 1, 1], [], []>} : vector<1x256xbf16>, vector<256x768xbf16>, vector<1x768xf32> -> vector<1x768xf32>
    %c0_2 = arith.constant 0 : index
    %c0_3 = arith.constant 0 : index
    %5 = vector.load %arg4[%c0_2, %c0_3] : memref<1x2176xf32, #tpu.memory_space<vmem>>, vector<1x768xf32>
    %6 = arith.addf %4, %5 : vector<1x768xf32>
    %7 = vector.extract_strided_slice %6 {offsets = [0, 0], sizes = [1, 384], strides = [1, 1]} : vector<1x768xf32> to vector<1x384xf32>
    %8 = vector.extract_strided_slice %7 {offsets = [0, 0], sizes = [1, 128], strides = [1, 1]} : vector<1x384xf32> to vector<1x128xf32>
    %9 = arith.negf %8 : vector<1x128xf32>
    %10 = math.exp %9 : vector<1x128xf32>
    %cst_4 = arith.constant 1.000000e+00 : f32
    %11 = vector.broadcast %cst_4 : f32 to vector<1x128xf32>
    %12 = arith.addf %11, %10 : vector<1x128xf32>
    %13 = arith.divf %11, %12 : vector<1x128xf32>
    %14 = vector.extract_strided_slice %7 {offsets = [0, 128], sizes = [1, 128], strides = [1, 1]} : vector<1x384xf32> to vector<1x128xf32>
    %15 = math.tanh %14 : vector<1x128xf32>
    %16 = vector.extract_strided_slice %7 {offsets = [0, 256], sizes = [1, 128], strides = [1, 1]} : vector<1x384xf32> to vector<1x128xf32>
    %17 = arith.negf %16 : vector<1x128xf32>
    %18 = math.exp %17 : vector<1x128xf32>
    %cst_5 = arith.constant 1.000000e+00 : f32
    %19 = vector.broadcast %cst_5 : f32 to vector<1x128xf32>
    %20 = arith.addf %19, %18 : vector<1x128xf32>
    %21 = arith.divf %19, %20 : vector<1x128xf32>
    %22 = arith.mulf %13, %15 : vector<1x128xf32>
    %23 = math.tanh %22 : vector<1x128xf32>
    %24 = arith.mulf %21, %23 : vector<1x128xf32>
    %25 = vector.extract_strided_slice %6 {offsets = [0, 384], sizes = [1, 384], strides = [1, 1]} : vector<1x768xf32> to vector<1x384xf32>
    %26 = vector.extract_strided_slice %25 {offsets = [0, 0], sizes = [1, 128], strides = [1, 1]} : vector<1x384xf32> to vector<1x128xf32>
    %27 = arith.negf %26 : vector<1x128xf32>
    %28 = math.exp %27 : vector<1x128xf32>
    %cst_6 = arith.constant 1.000000e+00 : f32
    %29 = vector.broadcast %cst_6 : f32 to vector<1x128xf32>
    %30 = arith.addf %29, %28 : vector<1x128xf32>
    %31 = arith.divf %29, %30 : vector<1x128xf32>
    %32 = vector.extract_strided_slice %25 {offsets = [0, 128], sizes = [1, 128], strides = [1, 1]} : vector<1x384xf32> to vector<1x128xf32>
    %33 = math.tanh %32 : vector<1x128xf32>
    %34 = vector.extract_strided_slice %25 {offsets = [0, 256], sizes = [1, 128], strides = [1, 1]} : vector<1x384xf32> to vector<1x128xf32>
    %35 = arith.negf %34 : vector<1x128xf32>
    %36 = math.exp %35 : vector<1x128xf32>
    %cst_7 = arith.constant 1.000000e+00 : f32
    %37 = vector.broadcast %cst_7 : f32 to vector<1x128xf32>
    %38 = arith.addf %37, %36 : vector<1x128xf32>
    %39 = arith.divf %37, %38 : vector<1x128xf32>
    %40 = arith.mulf %31, %33 : vector<1x128xf32>
    %41 = math.tanh %40 : vector<1x128xf32>
    %42 = arith.mulf %39, %41 : vector<1x128xf32>
    %43 = tpu.concatenate %24, %42 in 1 : vector<1x128xf32>, vector<1x128xf32> -> vector<1x256xf32>
    %c0_8 = arith.constant 0 : index
    %c768 = arith.constant 768 : index
    %44 = vector.load %arg3[%c0_8, %c768] : memref<256x2432xbf16, #tpu.memory_space<vmem>>, vector<256x768xbf16>
    %45 = arith.truncf %43 : vector<1x256xf32> to vector<1x256xbf16>
    %cst_9 = arith.constant dense<0.000000e+00> : vector<1x768xf32>
    %46 = tpu.matmul %45, %44, %cst_9 {dimension_numbers = #tpu.dot_dimension_numbers<[1], [0], [0], [1], [0, 0, 1, 1], [], []>} : vector<1x256xbf16>, vector<256x768xbf16>, vector<1x768xf32> -> vector<1x768xf32>
    %c0_10 = arith.constant 0 : index
    %c768_11 = arith.constant 768 : index
    %47 = vector.load %arg4[%c0_10, %c768_11] : memref<1x2176xf32, #tpu.memory_space<vmem>>, vector<1x768xf32>
    %48 = arith.addf %46, %47 : vector<1x768xf32>
    %49 = vector.extract_strided_slice %48 {offsets = [0, 0], sizes = [1, 384], strides = [1, 1]} : vector<1x768xf32> to vector<1x384xf32>
    %50 = vector.extract_strided_slice %49 {offsets = [0, 0], sizes = [1, 128], strides = [1, 1]} : vector<1x384xf32> to vector<1x128xf32>
    %51 = arith.negf %50 : vector<1x128xf32>
    %52 = math.exp %51 : vector<1x128xf32>
    %cst_12 = arith.constant 1.000000e+00 : f32
    %53 = vector.broadcast %cst_12 : f32 to vector<1x128xf32>
    %54 = arith.addf %53, %52 : vector<1x128xf32>
    %55 = arith.divf %53, %54 : vector<1x128xf32>
    %56 = vector.extract_strided_slice %49 {offsets = [0, 128], sizes = [1, 128], strides = [1, 1]} : vector<1x384xf32> to vector<1x128xf32>
    %57 = math.tanh %56 : vector<1x128xf32>
    %58 = vector.extract_strided_slice %49 {offsets = [0, 256], sizes = [1, 128], strides = [1, 1]} : vector<1x384xf32> to vector<1x128xf32>
    %59 = arith.negf %58 : vector<1x128xf32>
    %60 = math.exp %59 : vector<1x128xf32>
    %cst_13 = arith.constant 1.000000e+00 : f32
    %61 = vector.broadcast %cst_13 : f32 to vector<1x128xf32>
    %62 = arith.addf %61, %60 : vector<1x128xf32>
    %63 = arith.divf %61, %62 : vector<1x128xf32>
    %64 = arith.mulf %55, %57 : vector<1x128xf32>
    %65 = math.tanh %64 : vector<1x128xf32>
    %66 = arith.mulf %63, %65 : vector<1x128xf32>
    %67 = vector.extract_strided_slice %48 {offsets = [0, 384], sizes = [1, 384], strides = [1, 1]} : vector<1x768xf32> to vector<1x384xf32>
    %68 = vector.extract_strided_slice %67 {offsets = [0, 0], sizes = [1, 128], strides = [1, 1]} : vector<1x384xf32> to vector<1x128xf32>
    %69 = arith.negf %68 : vector<1x128xf32>
    %70 = math.exp %69 : vector<1x128xf32>
    %cst_14 = arith.constant 1.000000e+00 : f32
    %71 = vector.broadcast %cst_14 : f32 to vector<1x128xf32>
    %72 = arith.addf %71, %70 : vector<1x128xf32>
    %73 = arith.divf %71, %72 : vector<1x128xf32>
    %74 = vector.extract_strided_slice %67 {offsets = [0, 128], sizes = [1, 128], strides = [1, 1]} : vector<1x384xf32> to vector<1x128xf32>
    %75 = math.tanh %74 : vector<1x128xf32>
    %76 = vector.extract_strided_slice %67 {offsets = [0, 256], sizes = [1, 128], strides = [1, 1]} : vector<1x384xf32> to vector<1x128xf32>
    %77 = arith.negf %76 : vector<1x128xf32>
    %78 = math.exp %77 : vector<1x128xf32>
    %cst_15 = arith.constant 1.000000e+00 : f32
    %79 = vector.broadcast %cst_15 : f32 to vector<1x128xf32>
    %80 = arith.addf %79, %78 : vector<1x128xf32>
    %81 = arith.divf %79, %80 : vector<1x128xf32>
    %82 = arith.mulf %73, %75 : vector<1x128xf32>
    %83 = math.tanh %82 : vector<1x128xf32>
    %84 = arith.mulf %81, %83 : vector<1x128xf32>
    %85 = tpu.concatenate %66, %84 in 1 : vector<1x128xf32>, vector<1x128xf32> -> vector<1x256xf32>
    %86 = vector.shape_cast %85 : vector<1x256xf32> to vector<1x256xf32>
    %87 = vector.broadcast %86 : vector<1x256xf32> to vector<8x256xf32>
    %c0_16 = arith.constant 0 : index
    %c0_17 = arith.constant 0 : index
    %c0_18 = arith.constant 0 : index
    %88 = vector.load %arg5[%c0_16, %c0_17, %c0_18] : memref<1x8x256xf32, #tpu.memory_space<vmem>>, vector<1x8x256xf32>
    %89 = vector.shape_cast %88 : vector<1x8x256xf32> to vector<8x256xf32>
    %90 = vector.shape_cast %87 : vector<8x256xf32> to vector<1x8x256xf32>
    tpu.vector_store %arg5[%c0_16, %c0_17, %c0_18], %90 {strides = array<i32>} : memref<1x8x256xf32, #tpu.memory_space<vmem>>, vector<1x8x256xf32>,
    %c0_19 = arith.constant 0 : index
    %c0_20 = arith.constant 0 : index
    %c0_21 = arith.constant 0 : index
    %91 = vector.load %arg2[%c0_19, %c0_20, %c0_21] : memref<1x64x256xbf16, #tpu.memory_space<vmem>>, vector<1x64x256xbf16>
    %92 = vector.shape_cast %91 : vector<1x64x256xbf16> to vector<64x256xbf16>
    %c0_22 = arith.constant 0 : index
    %c1536 = arith.constant 1536 : index
    %93 = vector.load %arg3[%c0_22, %c1536] : memref<256x2432xbf16, #tpu.memory_space<vmem>>, vector<256x256xbf16>
    %cst_23 = arith.constant dense<0.000000e+00> : vector<64x256xf32>
    %94 = tpu.matmul %92, %93, %cst_23 {dimension_numbers = #tpu.dot_dimension_numbers<[1], [0], [0], [1], [0, 0, 1, 1], [], []>} : vector<64x256xbf16>, vector<256x256xbf16>, vector<64x256xf32> -> vector<64x256xf32>
    %c0_24 = arith.constant 0 : index
    %c1536_25 = arith.constant 1536 : index
    %95 = vector.load %arg4[%c0_24, %c1536_25] : memref<1x2176xf32, #tpu.memory_space<vmem>>, vector<1x256xf32>
    %96 = vector.broadcast %95 : vector<1x256xf32> to vector<64x256xf32>
    %97 = arith.addf %94, %96 : vector<64x256xf32>
    %cst_26 = arith.constant 0.000000e+00 : f32
    %98 = vector.broadcast %cst_26 : f32 to vector<64x256xf32>
    %99 = arith.maximumf %97, %98 : vector<64x256xf32>
    %c0_27 = arith.constant 0 : index
    %c1792 = arith.constant 1792 : index
    %100 = vector.load %arg3[%c0_27, %c1792] : memref<256x2432xbf16, #tpu.memory_space<vmem>>, vector<256x256xbf16>
    %101 = arith.truncf %85 : vector<1x256xf32> to vector<1x256xbf16>
    %cst_28 = arith.constant dense<0.000000e+00> : vector<1x256xf32>
    %102 = tpu.matmul %101, %100, %cst_28 {dimension_numbers = #tpu.dot_dimension_numbers<[1], [0], [0], [1], [0, 0, 1, 1], [], []>} : vector<1x256xbf16>, vector<256x256xbf16>, vector<1x256xf32> -> vector<1x256xf32>
    %c0_29 = arith.constant 0 : index
    %c2048 = arith.constant 2048 : index
    %103 = vector.load %arg3[%c0_29, %c2048] : memref<256x2432xbf16, #tpu.memory_space<vmem>>, vector<256x256xbf16>
    %104 = arith.truncf %99 : vector<64x256xf32> to vector<64x256xbf16>
    %cst_30 = arith.constant dense<0.000000e+00> : vector<64x256xf32>
    %105 = tpu.matmul %104, %103, %cst_30 {dimension_numbers = #tpu.dot_dimension_numbers<[1], [0], [0], [1], [0, 0, 1, 1], [], []>} : vector<64x256xbf16>, vector<256x256xbf16>, vector<64x256xf32> -> vector<64x256xf32>
    %106 = vector.broadcast %102 : vector<1x256xf32> to vector<64x256xf32>
    %107 = arith.addf %105, %106 : vector<64x256xf32>
    %c0_31 = arith.constant 0 : index
    %c1792_32 = arith.constant 1792 : index
    %108 = vector.load %arg4[%c0_31, %c1792_32] : memref<1x2176xf32, #tpu.memory_space<vmem>>, vector<1x256xf32>
    %109 = vector.broadcast %108 : vector<1x256xf32> to vector<64x256xf32>
    %110 = arith.addf %107, %109 : vector<64x256xf32>
    %cst_33 = arith.constant 0.000000e+00 : f32
    %111 = vector.broadcast %cst_33 : f32 to vector<64x256xf32>
    %112 = arith.maximumf %110, %111 : vector<64x256xf32>
    %c0_34 = arith.constant 0 : index
    %c2304 = arith.constant 2304 : index
    %113 = vector.load %arg3[%c0_34, %c2304] : memref<256x2432xbf16, #tpu.memory_space<vmem>>, vector<256x128xbf16>
    %114 = arith.truncf %112 : vector<64x256xf32> to vector<64x256xbf16>
    %cst_35 = arith.constant dense<0.000000e+00> : vector<64x128xf32>
    %115 = tpu.matmul %114, %113, %cst_35 {dimension_numbers = #tpu.dot_dimension_numbers<[1], [0], [0], [1], [0, 0, 1, 1], [], []>} : vector<64x256xbf16>, vector<256x128xbf16>, vector<64x128xf32> -> vector<64x128xf32>
    %c0_36 = arith.constant 0 : index
    %c2048_37 = arith.constant 2048 : index
    %116 = vector.load %arg4[%c0_36, %c2048_37] : memref<1x2176xf32, #tpu.memory_space<vmem>>, vector<1x128xf32>
    %117 = vector.broadcast %116 : vector<1x128xf32> to vector<64x128xf32>
    %118 = arith.addf %115, %117 : vector<64x128xf32>
    %cst_38 = arith.constant 0.000000e+00 : f32
    %119 = vector.broadcast %cst_38 : f32 to vector<64x128xf32>
    %120 = arith.maximumf %118, %119 : vector<64x128xf32>
    %c0_39 = arith.constant 0 : index
    %c0_40 = arith.constant 0 : index
    %c0_41 = arith.constant 0 : index
    %121 = vector.load %arg6[%c0_39, %c0_40, %c0_41] : memref<1x64x128xf32, #tpu.memory_space<vmem>>, vector<1x64x128xf32>
    %122 = vector.shape_cast %121 : vector<1x64x128xf32> to vector<64x128xf32>
    %123 = vector.shape_cast %120 : vector<64x128xf32> to vector<1x64x128xf32>
    tpu.vector_store %arg6[%c0_39, %c0_40, %c0_41], %123 {strides = array<i32>} : memref<1x64x128xf32, #tpu.memory_space<vmem>>, vector<1x64x128xf32>,
    return
  }
  func.func @transform_0(%arg0: i32) -> (i32, i32) {
    %c0_i32 = arith.constant 0 : i32
    %c0_i32_0 = arith.constant 0 : i32
    %c0_i32_1 = arith.constant 0 : i32
    return %c0_i32, %c0_i32_0 : i32, i32
  }
  func.func @transform_1(%arg0: i32) -> (i32, i32, i32) {
    %c0_i32 = arith.constant 0 : i32
    %c0_i32_0 = arith.constant 0 : i32
    %c0_i32_1 = arith.constant 0 : i32
    return %arg0, %c0_i32, %c0_i32_0 : i32, i32, i32
  }
  func.func @transform_2(%arg0: i32) -> (i32, i32) {
    %c0_i32 = arith.constant 0 : i32
    %c0_i32_0 = arith.constant 0 : i32
    %c0_i32_1 = arith.constant 0 : i32
    return %c0_i32, %c0_i32_0 : i32, i32
  }
  func.func @transform_3(%arg0: i32) -> (i32, i32) {
    %c0_i32 = arith.constant 0 : i32
    %c0_i32_0 = arith.constant 0 : i32
    %c0_i32_1 = arith.constant 0 : i32
    return %c0_i32, %c0_i32_0 : i32, i32
  }
  func.func @transform_4(%arg0: i32) -> (i32, i32, i32) {
    %c0_i32 = arith.constant 0 : i32
    %c0_i32_0 = arith.constant 0 : i32
    %c0_i32_1 = arith.constant 0 : i32
    return %arg0, %c0_i32, %c0_i32_0 : i32, i32, i32
  }
  func.func @transform_5(%arg0: i32) -> (i32, i32, i32) {
    %c0_i32 = arith.constant 0 : i32
    %c0_i32_0 = arith.constant 0 : i32
    %c0_i32_1 = arith.constant 0 : i32
    return %arg0, %c0_i32, %c0_i32_0 : i32, i32, i32
  }
}

</mosaic_0001>

<bundles_post_ra>
// kernel: tpu_custom_call.1
= control target key start
LH: loop header
LB: loop body
LE: loop exit
PB: predicated region body
PF: predicated region fallthrough
CT: control target
= control target key end

     0   :  { %11 = vsyncpa [#allocation3], 0  ;;  %s5820_s0 = inlined_call_operand.hbm [shape: f32[4,256], index: 0, kind: input, shape index: {}]   ;;  %s5821_s1 = inlined_call_operand.hbm [shape: bf16[4,64,256], index: 1, kind: input, shape index: {}]   ;;  %s5822_s2 = inlined_call_operand.hbm [shape: bf16[256,2432], index: 2, kind: input, shape index: {}]   ;;  %s5823_s3 = inlined_call_operand.hbm [shape: f32[1,2176], index: 3, kind: input, shape index: {}]   ;;  %s5824_s4 = inlined_call_operand.hbm [shape: f32[4,8,256], index: 4, kind: output, shape index: {0}]   ;;  %s5825_s5 = inlined_call_operand.hbm [shape: f32[4,64,128], index: 5, kind: output, shape index: {1}]  }
   0x1   :  { %12 = vsyncpa [#allocation6], 0 }
   0x2   :  { %14 = vsyncpa [#allocation6 + $0x1], 0 }
   0x3   :  { %15 = vsyncpa [#allocation9], 0 }
   0x4   :  { %16 = vsyncpa [#allocation4], 0 }
   0x5   :  { %18 = vsyncpa [#allocation4 + $0x1], 0 }
   0x6   :  { %19 = vsyncpa [#allocation12], 0 }
   0x7   :  { %21 = vsyncpa [#allocation12 + $0x1], 0  ;;  %s5360_s18 = smov 0   ;;  %s5362_s19 = smov 0  }
   0x8   :  { %s5364_s20 = smov 0   ;;  %s5366_s21 = smov 0  }
   0x9 LB: > { %s5381_s22 = sadd.s32 4294967295, %s5319_s21   ;;  %s3354_s23 = sadd.s32 4294967294, %s5319_s21   ;;  %s5319_s21 = sphi %s5366_s21, %s5849_s21   ;;  %s5315_s20 = sphi %s5364_s20, %s5848_s20   ;;  %s5311_s19 = sphi %s5362_s19, %s5847_s19   ;;  %s5307_s18 = sphi %s5360_s18, %s5846_s18  }
   0xa   : > { %p68_p0 = scmp.ne.s32.totalorder %s5311_s19, %s5307_s18  ;;  %p69_p1 = scmp.eq.s32.totalorder %s5381_s22, 0 }
   0xb   : > { %p134_p2 = scmp.eq.s32.totalorder %s5381_s22, 3  ;;  %p140_p3 = scmp.eq.s32.totalorder %s3354_s23, 3 }
   0xc   : > { %p5390_p4 = por %p69_p1, %p68_p0  ;;  %p3355_p5 = scmp.ge.s32.totalorder %s5319_s21, 1 }
   0xd   : > { %p5395_p6 = por %p140_p3, %p68_p0  ;;  %p173_p7 = scmp.lt.s32.totalorder %s5319_s21, 5 }
   0xe   : > { %s196_s28 = sshll.u32 %s5822_s2, 4  ;;  %s5321_s30 = smov [#allocation7]   ;;  %s197_s28 = int_to_ptr.hbm [resolvable:$true] %s196_s28 }
   0xf   : > { %p5403_p8 = pnand %p3355_p5, %p173_p7  ;;  %s198_s6 = sshll.u32 %s5321_s30, 4  ;;  %s199_s6 = int_to_ptr.vmem [resolvable:$true] %s198_s6 }
  0x10   : > { %s185_s10 = sshll.u32 %s5820_s0, 4  ;;  %s5322_s11 = smov 1216   ;;  %s186_s10 = int_to_ptr.hbm [resolvable:$true] %s185_s10 }
  0x11   : > { %p4970_p9 = pneg %p5403_p8  ;;  %s5323_s12 = smov 76  }
  0x12   : > { %s5324_s13 = smov [#allocation2]   ;;  %s211_s17 = sshll.u32 %s5823_s3, 4  ;;  %s212_s17 = int_to_ptr.hbm [resolvable:$true] %s211_s17 }
  0x13   : > { %p5411_p10 = pnand %p4970_p9, %p69_p1  ;;  %s187_s14 = sshll.u32 %s5324_s13, 4  ;;  %s188_s14 = int_to_ptr.vmem [resolvable:$true] %s187_s14 }
  0x14   : > { %s5325_s23 = smov [#allocation8]   ;;  %s5426_s27 = sadd.s32 1, %s5319_s21  }
  0x15   : > { %4976 = dma.hbm_to_vmem [thread:$0]  (!%p5411_p10), %s197_s28, 38912, %s199_s6, [#allocation6], %s5322_s11, %s5322_s11, %s5323_s12  }
  0x16   : > { %4973 = dma.hbm_to_vmem [thread:$0]  (!%p5411_p10), %s186_s10, 128, %s188_s14, [#allocation3]  }
  0x17   : > { %s213_s26 = sshll.u32 %s5325_s23, 4  ;;  %s52_s28 = ssub.s32 %s5319_s21, %s5426_s27  ;;  %s214_s26 = int_to_ptr.vmem [resolvable:$true] %s213_s26 }
  0x18   : > { %4979 = dma.hbm_to_vmem [thread:$0]  (!%p5411_p10), %s212_s17, 272, %s214_s26, [#allocation9]  }
  0x19   : > { %s55_s30 = sadd.s32 1, %s5315_s20  ;;  %p53_p11 = scmp.eq.s32.totalorder %s52_s28, 0 }
  0x1a   : > { %p62_p12 = scmp.ne.s32.totalorder %s5315_s20, %s5311_s19  ;;  %p63_p13 = scmp.eq.s32.totalorder %s5319_s21, 0 }
  0x1b   : > { %p4994_p0 = scmp.lt.s32.totalorder %s5319_s21, 4  ;;  %s224_s9 = sand.u32 1, %s5319_s21  }
  0x1c   : > { %s5438_s6 = scalar_select %p53_p11, %s5315_s20, %s55_s30  }
  0x1d   : > { %p64_p3 = por %p63_p13, %p62_p12  ;;  %p5442_p5 = por %p134_p2, %p62_p12 }
  0x1e   : > { %s226_s10 = sand.u32 1, %s5315_s20   ;;  %s4636_s11 = sshll.u32 %s5319_s21, 6 }
  0x1f   : > { %s3360_s7 = sshll.u32 %s226_s10, 6  ;;  %s233_s14 = scalar_lea.hbm %s5821_s1, %s4636_s11 }
  0x20   : > { %s228_s15 = scalar_lea.vmem [#allocation5], %s3360_s7  ;;  %s234_s17 = sshll.u32 %s233_s14, 4  ;;  %s235_s17 = int_to_ptr.hbm [resolvable:$true] %s234_s17 }
  0x21   : > { %s236_s16 = sshll.u32 %s228_s15, 4  ;;  %p5454_p7 = pnand %p4994_p0, %p64_p3  ;;  %s237_s16 = int_to_ptr.vmem [resolvable:$true] %s236_s16 }
  0x22   : > { %s225_s26 = scalar_lea.sflag [#allocation6], %s224_s9  ;;  %s5179_s28 = sshra.s32 %s235_s17, 4  ;;  %s5180_s28 = int_to_ptr.hbm [resolvable:$true] %s5179_s28 }
  0x23   : > { %s5181_s30 = scalar_lea.hbm %s5180_s28, 64  ;;  %p5183_p9 = pneg %p5454_p7 }
  0x24   : > { %p5182_p2 = scmp.ne.s32.totalorder %s5180_s28, %s5181_s30  ;;  %s5186_s11 = scalar_lea.hbm %s5821_s1, 256 }
  0x25   : > { %p5187_p12 = scmp.lt.s32.totalorder %s5180_s28, %s5821_s1  ;;  %p5188_p13 = scmp.lt.s32.totalorder %s5186_s11, %s5181_s30 }
  0x26   : > { %p5184_p10 = pnand %p5183_p9, %p5182_p2 }
  0x27   : > { %p5189_p0 = por %p5188_p13, %p5187_p12 }
  0x28   : > { %p5185_p11 = pneg %p5184_p10 }
  0x2a   : > { %p5190_p3 = pnand %p5189_p0, %p5185_p11 }
  0x2c   : > { %5193 = shalt.err (!%p5190_p3)
}
  0x2d   : > { %s5326_s9 = smov 128   ;;  %s5327_s14 = smov 8  }
  0x2e   : > { %4983 = dma.hbm_to_vmem [thread:$0]  (!%p5454_p7), %s235_s17, 1024, %s237_s16, %s225_s26, %s5326_s9, %s5326_s9, %s5327_s14  }
  0x2f   : > { %248 = sbr.rel (%p5403_p8) target bundleno = 911 (0x38f), region = 36 }
  0x34   : > { %5282 = dma.done.wait (%p69_p1), [#allocation3], 128  }
  0x35   : > { %5284 = vsyncadd (%p69_p1), [#allocation3], 4294967168  ;;  %s255_s15 = sand.u32 1, %s5381_s22   ;;  %s5476_s28 = sand.u32 1, %s5311_s19  }
  0x36   : > { %s5826_s30 = sshll.u32 %s5476_s28, 6  ;;  %s256_s23 = scalar_lea.sflag [#allocation6], %s255_s15 }
  0x37   : > { %s5481_s16 = scalar_lea.vmem [#allocation5], %s5826_s30 }
  0x38   : > { %5286 = dma.done.wait (%p5390_p4), %s256_s23, 1024  }
  0x39   : > { %5288 = vsyncadd (%p5390_p4), %s256_s23, 4294966272 }
  0x3a   : > { %5290 = dma.done.wait (%p69_p1), [#allocation6], 38912  }
  0x3b   : > { %5292 = vsyncadd (%p69_p1), [#allocation6], 4294928384 }
  0x3c   : > { %5294 = dma.done.wait (%p69_p1), [#allocation9], 272  }
  0x3d   : > { %5296 = vsyncadd (%p69_p1), [#allocation9], 4294967024  ;;  %v3542_v0 = vld [vmem:[#allocation7 + $0x428] sm:$0xf]  ;;  %v4683_v1 = vld [vmem:[#allocation7 + $0x470] sm:$0xf0] }
  0x3e   : > { %v3734_v2 = vld [vmem:[#allocation7 + $0x8e8] sm:$0xf]  ;;  %v3543_v3 = vor.u32 %v4683_v1, %v3542_v0  ;;  %v4731_v4 = vld [vmem:[#allocation7 + $0x930] sm:$0xf0]  ;;  %v3518_v5 = vld [vmem:[#allocation7 + $0x390] sm:$0xf] }
  0x3f   : > { %v4677_v6 = vld [vmem:[#allocation7 + $0x3d8] sm:$0xf0]  ;;  %v3735_v7 = vor.u32 %v4731_v4, %v3734_v2  ;;  %v3710_v8 = vld [vmem:[#allocation7 + $0x850] sm:$0xf]  ;;  %v3494_v12 = vld [vmem:[#allocation7 + $0x2f8] sm:$0xf] }
  0x40   : > { %v4725_v9 = vld [vmem:[#allocation7 + $0x898] sm:$0xf0]  ;;  %908 = vmatpush.bf16.msra.mxu2 %v3543_v3  ;;  %v3519_v10 = vor.u32 %v4677_v6, %v3518_v5  ;;  %v4671_v13 = vld [vmem:[#allocation7 + $0x340] sm:$0xf0]  ;;  %v3686_v14 = vld [vmem:[#allocation7 + $0x7b8] sm:$0xf] }
  0x41   : > { %921 = vmatpush.bf16.msra.mxu3 %v3735_v7  ;;  %v3711_v11 = vor.u32 %v4725_v9, %v3710_v8  ;;  %v4719_v15 = vld [vmem:[#allocation7 + $0x800] sm:$0xf0]  ;;  %v3495_v16 = vor.u32 %v4671_v13, %v3494_v12  ;;  %v3470_v17 = vld [vmem:[#allocation7 + $0x260] sm:$0xf]  ;;  %v4665_v19 = vld [vmem:[#allocation7 + $0x2a8] sm:$0xf0] }
  0x42   : > { %v3687_v18 = vor.u32 %v4719_v15, %v3686_v14  ;;  %v3550_v20 = vld [vmem:[#allocation7 + $0x430] sm:$0xf]  ;;  %v4684_v21 = vld [vmem:[#allocation7 + $0x478] sm:$0xf0]  ;;  %v3662_v22 = vld [vmem:[#allocation7 + $0x720] sm:$0xf]  ;;  %v3471_v28 = vor.u32 %v4665_v19, %v3470_v17 }
  0x43   : > { %v4713_v23 = vld [vmem:[#allocation7 + $0x768] sm:$0xf0]  ;;  %v3551_v24 = vor.u32 %v4684_v21, %v3550_v20  ;;  %s302_s24 = sshra.s32 %s5381_s22, 2  ;;  %v3742_v25 = vld [vmem:[#allocation7 + $0x8f0] sm:$0xf]  ;;  %s305_s29 = sand.u32 3, %s5381_s22 }
  0x44   : > { %909 = vmatpush.bf16.msra.mxu2 %v3519_v10  ;;  %v4732_v26 = vld [vmem:[#allocation7 + $0x938] sm:$0xf0]  ;;  %v3526_v27 = vld [vmem:[#allocation7 + $0x398] sm:$0xf]  ;;  %v4678_v30 = vld [vmem:[#allocation7 + $0x3e0] sm:$0xf0]  ;;  %v3663_v31 = vor.u32 %v4713_v23, %v3662_v22 }
  0x45   : > { %922 = vmatpush.bf16.msra.mxu3 %v3711_v11  ;;  %960 = vmatpush.bf16.msra.mxu0 %v3551_v24  ;;  %v3743_v29 = vor.u32 %v4732_v26, %v3742_v25  ;;  %v3446_v32 = vld [vmem:[#allocation7 + $0x1c8] sm:$0xf]  ;;  %v4659_v33 = vld [vmem:[#allocation7 + $0x210] sm:$0xf0]  ;;  %v3527_v34 = vor.u32 %v4678_v30, %v3526_v27  ;;  %s4637_s17 = sshll.u32 %s302_s24, 3  ;;  %s3368_s7 = sshll.u32 %s5476_s28, 4 }
  0x46   : > { %v3638_v35 = vld [vmem:[#allocation7 + $0x688] sm:$0xf]  ;;  %v4707_v36 = vld [vmem:[#allocation7 + $0x6d0] sm:$0xf0]  ;;  %v3718_v37 = vld [vmem:[#allocation7 + $0x858] sm:$0xf]  ;;  %v3447_v40 = vor.u32 %v4659_v33, %v3446_v32  ;;  %s308_s26 = sadd.s32 %s4637_s17, %s305_s29 }
  0x47   : > { %973 = vmatpush.bf16.msra.mxu1 %v3743_v29  ;;  %v4726_v38 = vld [vmem:[#allocation7 + $0x8a0] sm:$0xf0]  ;;  %v3502_v39 = vld [vmem:[#allocation7 + $0x300] sm:$0xf]  ;;  %v3422_v41 = vld [vmem:[#allocation7 + $0x130] sm:$0xf]  ;;  %v3639_v45 = vor.u32 %v4707_v36, %v3638_v35 }
  0x48   : > { %910 = vmatpush.bf16.msra.mxu2 %v3495_v16  ;;  %v4653_v42 = vld [vmem:[#allocation7 + $0x178] sm:$0xf0]  ;;  %v3719_v43 = vor.u32 %v4726_v38, %v3718_v37  ;;  %v4672_v44 = vld [vmem:[#allocation7 + $0x348] sm:$0xf0]  ;;  %v3614_v46 = vld [vmem:[#allocation7 + $0x5f0] sm:$0xf] }
  0x49   : > { %923 = vmatpush.bf16.msra.mxu3 %v3687_v18  ;;  %961 = vmatpush.bf16.msra.mxu0 %v3527_v34  ;;  %v4701_v47 = vld [vmem:[#allocation7 + $0x638] sm:$0xf0]  ;;  %v3503_v48 = vor.u32 %v4672_v44, %v3502_v39  ;;  %v3694_v49 = vld [vmem:[#allocation7 + $0x7c0] sm:$0xf]  ;;  %v4720_v50 = vld [vmem:[#allocation7 + $0x808] sm:$0xf0]  ;;  %v3423_v54 = vor.u32 %v4653_v42, %v3422_v41 }
  0x4a   : > { %v3478_v51 = vld [vmem:[#allocation7 + $0x268] sm:$0xf]  ;;  %v4666_v52 = vld [vmem:[#allocation7 + $0x2b0] sm:$0xf0]  ;;  %v3695_v53 = vor.u32 %v4720_v50, %v3694_v49  ;;  %v3615_v58 = vor.u32 %v4701_v47, %v3614_v46  ;;  %v3398_v59 = vld [vmem:[#allocation7 + $0x98] sm:$0xf] }
  0x4b   : > { %974 = vmatpush.bf16.msra.mxu1 %v3719_v43  ;;  %v3479_v55 = vor.u32 %v4666_v52, %v3478_v51  ;;  %v3670_v56 = vld [vmem:[#allocation7 + $0x728] sm:$0xf]  ;;  %v4714_v57 = vld [vmem:[#allocation7 + $0x770] sm:$0xf0]  ;;  %v4647_v60 = vld [vmem:[#allocation7 + $0xe0] sm:$0xf0] }
  0x4c   : > { %911 = vmatpush.bf16.msra.mxu2 %v3471_v28  ;;  %v3454_v61 = vld [vmem:[#allocation7 + $0x1d0] sm:$0xf]  ;;  %v3590_v62 = vld [vmem:[#allocation7 + $0x558] sm:$0xf]  ;;  %v4695_v63 = vld [vmem:[#allocation7 + $0x5a0] sm:$0xf0]  ;;  %v3671_v0 = vor.u32 %v4714_v57, %v3670_v56  ;;  %v3399_v5 = vor.u32 %v4647_v60, %v3398_v59 }
  0x4d   : > { %924 = vmatpush.bf16.msra.mxu3 %v3663_v31  ;;  %962 = vmatpush.bf16.msra.mxu0 %v3503_v48  ;;  %v4660_v1 = vld [vmem:[#allocation7 + $0x218] sm:$0xf0]  ;;  %v3374_v2 = vld [vmem:[#allocation7] sm:$0xf]  ;;  %v4641_v3 = vld [vmem:[#allocation7 + $0x48] sm:$0xf0]  ;;  %v3591_v11 = vor.u32 %v4695_v63, %v3590_v62 }
  0x4e   : > { %s309_s10 = scalar_lea.vmem [#allocation2], %s308_s26  ;;  %v3566_v6 = vld [vmem:[#allocation7 + $0x4c0] sm:$0xf]  ;;  %v4689_v7 = vld [vmem:[#allocation7 + $0x508] sm:$0xf0]  ;;  %v3455_v8 = vor.u32 %v4660_v1, %v3454_v61  ;;  %v3375_v22 = vor.u32 %v4641_v3, %v3374_v2  ;;  %s5693_s11 = scalar_lea.vmem [#allocation10], %s3368_s7 }
  0x4f   : > { %975 = vmatpush.bf16.msra.mxu1 %v3695_v53  ;;  %v310_v4 = vld [vmem:[%s309_s10] ss:$4 sm:$0x3]  ;;  %v3646_v9 = vld [vmem:[#allocation7 + $0x690] sm:$0xf]  ;;  %v3567_v25 = vor.u32 %v4689_v7, %v3566_v6  ;;  %s4950_s12 = sshll.u32 %s5381_s22, 4 }
  0x50   : > { %912 = vmatpush.bf16.msra.mxu2 %v3447_v40  ;;  %v4708_v10 = vld [vmem:[#allocation7 + $0x6d8] sm:$0xf0]  ;;  %v4680_v12 = vld [vmem:[#allocation7 + $0x42c] sm:$0xf]  ;;  %v3430_v13 = vld [vmem:[#allocation7 + $0x138] sm:$0xf]  ;;  %s3195_s14 = scalar_lea.hbm %s5824_s4, %s4950_s12 }
  0x51   : > { %925 = vmatpush.bf16.msra.mxu3 %v3639_v45  ;;  %963 = vmatpush.bf16.msra.mxu0 %v3479_v55  ;;  %v4654_v14 = vld [vmem:[#allocation7 + $0x180] sm:$0xf0]  ;;  %v3544_v15 = vld [vmem:[#allocation7 + $0x474] sm:$0xf0]  ;;  %v4728_v16 = vld [vmem:[#allocation7 + $0x8ec] sm:$0xf]  ;;  %v3647_v18 = vor.u32 %v4708_v10, %v3646_v9 }
  0x52   : > { %v3736_v17 = vld [vmem:[#allocation7 + $0x934] sm:$0xf0]  ;;  %v408_v19 = vperm.slane %v310_v4, 0  ;;  %v4702_v21 = vld [vmem:[#allocation7 + $0x640] sm:$0xf0]  ;;  %v409_v23 = vperm.slane %v310_v4, 1  ;;  %v3431_v24 = vor.u32 %v4654_v14, %v3430_v13  ;;  %v3547_v26 = vor.u32 %v4680_v12, %v3544_v15 }
  0x53   : > { %976 = vmatpush.bf16.msra.mxu1 %v3671_v0  ;;  %v3622_v20 = vld [vmem:[#allocation7 + $0x5f8] sm:$0xf]  ;;  %v3406_v27 = vld [vmem:[#allocation7 + $0xa0] sm:$0xf]  ;;  %v4648_v28 = vld [vmem:[#allocation7 + $0xe8] sm:$0xf0]  ;;  %v3739_v29 = vor.u32 %v4728_v16, %v3736_v17 }
  0x54   : > { %913 = vmatpush.bf16.msra.mxu2 %v3423_v54  ;;  %v4674_v30 = vld [vmem:[#allocation7 + $0x394] sm:$0xf]  ;;  %v3520_v31 = vld [vmem:[#allocation7 + $0x3dc] sm:$0xf0]  ;;  %v3623_v33 = vor.u32 %v4702_v21, %v3622_v20  ;;  %v5497_v35 = vpack.c.bf16 %v408_v19, %v408_v19  ;;  %v4696_v37 = vld [vmem:[#allocation7 + $0x5a8] sm:$0xf0]  ;;  %v5499_v38 = vpack.c.bf16 %v409_v23, %v409_v23  ;;  %v3407_v39 = vor.u32 %v4648_v28, %v3406_v27 }
  0x55   : > { %926 = vmatpush.bf16.msra.mxu3 %v3615_v58  ;;  %964 = vmatpush.bf16.msra.mxu0 %v3455_v8  ;;  %v4722_v32 = vld [vmem:[#allocation7 + $0x854] sm:$0xf]  ;;  %v3712_v34 = vld [vmem:[#allocation7 + $0x89c] sm:$0xf0]  ;;  %v3523_v40 = vor.u32 %v4674_v30, %v3520_v31  ;;  %v3382_v41 = vld [vmem:[#allocation7 + $0x8] sm:$0xf] }
  0x56   : > { %v3598_v36 = vld [vmem:[#allocation7 + $0x560] sm:$0xf]  ;;  %v4642_v42 = vld [vmem:[#allocation7 + $0x50] sm:$0xf0]  ;;  %v3715_v43 = vor.u32 %v4722_v32, %v3712_v34  ;;  %v4668_v44 = vld [vmem:[#allocation7 + $0x2fc] sm:$0xf] }
  0x57   : > { %977 = vmatpush.bf16.msra.mxu1 %v3647_v18  ;;  %v3496_v45 = vld [vmem:[#allocation7 + $0x344] sm:$0xf0]  ;;  %v4716_v46 = vld [vmem:[#allocation7 + $0x7bc] sm:$0xf]  ;;  %v3599_v47 = vor.u32 %v4696_v37, %v3598_v36  ;;  %v4690_v50 = vld [vmem:[#allocation7 + $0x510] sm:$0xf0]  ;;  %v3383_v51 = vor.u32 %v4642_v42, %v3382_v41 }
  0x58   : > { %914 = vmatpush.bf16.msra.mxu2 %v3399_v5  ;;  %v3688_v48 = vld [vmem:[#allocation7 + $0x804] sm:$0xf0]  ;;  %v3499_v52 = vor.u32 %v4668_v44, %v3496_v45  ;;  %v4662_v54 = vld [vmem:[#allocation7 + $0x264] sm:$0xf]  ;;  %v3472_v55 = vld [vmem:[#allocation7 + $0x2ac] sm:$0xf0] }
  0x59   : > { %927 = vmatpush.bf16.msra.mxu3 %v3591_v11  ;;  %965 = vmatpush.bf16.msra.mxu0 %v3431_v24  ;;  %v3574_v49 = vld [vmem:[#allocation7 + $0x4c8] sm:$0xf]  ;;  %v3691_v53 = vor.u32 %v4716_v46, %v3688_v48  ;;  %v4710_v57 = vld [vmem:[#allocation7 + $0x724] sm:$0xf]  ;;  %v3664_v58 = vld [vmem:[#allocation7 + $0x76c] sm:$0xf0]  ;;  %v3475_v59 = vor.u32 %v4662_v54, %v3472_v55 }
  0x5a   : > { %v3575_v56 = vor.u32 %v4690_v50, %v3574_v49  ;;  %v3667_v60 = vor.u32 %v4710_v57, %v3664_v58  ;;  %v4656_v61 = vld [vmem:[#allocation7 + $0x1cc] sm:$0xf]  ;;  %v3448_v62 = vld [vmem:[#allocation7 + $0x214] sm:$0xf0]  ;;  %v4650_v3 = vld [vmem:[#allocation7 + $0x134] sm:$0xf] }
  0x5b   : > { %978 = vmatpush.bf16.msra.mxu1 %v3623_v33  ;;  %v4704_v63 = vld [vmem:[#allocation7 + $0x68c] sm:$0xf]  ;;  %v3640_v0 = vld [vmem:[#allocation7 + $0x6d4] sm:$0xf0]  ;;  %v3451_v1 = vor.u32 %v4656_v61, %v3448_v62  ;;  %v3424_v4 = vld [vmem:[#allocation7 + $0x17c] sm:$0xf0] }
  0x5c   : > { %915 = vmatpush.bf16.msra.mxu2 %v3375_v22  ;;  %v3643_v2 = vor.u32 %v4704_v63, %v3640_v0  ;;  %v4698_v5 = vld [vmem:[#allocation7 + $0x5f4] sm:$0xf]  ;;  %v3616_v6 = vld [vmem:[#allocation7 + $0x63c] sm:$0xf0]  ;;  %v3427_v7 = vor.u32 %v4650_v3, %v3424_v4  ;;  %v4644_v9 = vld [vmem:[#allocation7 + $0x9c] sm:$0xf] }
  0x5d   : > { %928 = vmatpush.bf16.msra.mxu3 %v3567_v25  ;;  %966 = vmatpush.bf16.msra.mxu0 %v3407_v39  ;;  %v3619_v8 = vor.u32 %v4698_v5, %v3616_v6  ;;  %v3400_v10 = vld [vmem:[#allocation7 + $0xe4] sm:$0xf0]  ;;  %v4692_v11 = vld [vmem:[#allocation7 + $0x55c] sm:$0xf]  ;;  %v4638_v14 = vld [vmem:[#allocation7 + $0x4] sm:$0xf] }
  0x5e   : > { %v3592_v12 = vld [vmem:[#allocation7 + $0x5a4] sm:$0xf0]  ;;  %v3403_v13 = vor.u32 %v4644_v9, %v3400_v10  ;;  %v3376_v15 = vld [vmem:[#allocation7 + $0x4c] sm:$0xf0]  ;;  %v4686_v17 = vld [vmem:[#allocation7 + $0x4c4] sm:$0xf] }
  0x5f   : > { %916 = vmatmul.bf16.vlgmr.msra.gmra.mxu2 %v5497_v35  ;;  %979 = vmatpush.bf16.msra.mxu1 %v3599_v47  ;;  %v3595_v16 = vor.u32 %v4692_v11, %v3592_v12  ;;  %v3568_v18 = vld [vmem:[#allocation7 + $0x50c] sm:$0xf0]  ;;  %v4681_v19 = vld [vmem:[#allocation7 + $0x434] sm:$0xf]  ;;  %v3552_v20 = vld [vmem:[#allocation7 + $0x47c] sm:$0xf0] }
  0x60   : > { %934 = vmatpush.bf16.msrb.mxu2 %v3547_v26  ;;  %929 = vmatmul.bf16.vlgmr.msra.gmra.mxu3 %v5499_v38  ;;  %v3558_v21 = vld [vmem:[#allocation7 + $0x438] sm:$0xf]  ;;  %v4685_v22 = vld [vmem:[#allocation7 + $0x480] sm:$0xf0]  ;;  %v4729_v23 = vld [vmem:[#allocation7 + $0x8f4] sm:$0xf]  ;;  %v3379_v26 = vor.u32 %v4638_v14, %v3376_v15  ;;  %v3555_v30 = vor.u32 %v4681_v19, %v3552_v20 }
  0x61   : > { %947 = vmatpush.bf16.msrb.mxu3 %v3739_v29  ;;  %967 = vmatpush.bf16.msra.mxu0 %v3383_v51  ;;  %v3744_v24 = vld [vmem:[#allocation7 + $0x93c] sm:$0xf0]  ;;  %v3559_v25 = vor.u32 %v4685_v22, %v3558_v21  ;;  %v3750_v27 = vld [vmem:[#allocation7 + $0x8f8] sm:$0xf]  ;;  %v4733_v28 = vld [vmem:[#allocation7 + $0x940] sm:$0xf0]  ;;  %v3571_v29 = vor.u32 %v4686_v17, %v3568_v18 }
  0x62   : > { %v4675_v31 = vld [vmem:[#allocation7 + $0x39c] sm:$0xf]  ;;  %v3751_v32 = vor.u32 %v4733_v28, %v3750_v27  ;;  %v3747_v33 = vor.u32 %v4729_v23, %v3744_v24  ;;  %v3528_v34 = vld [vmem:[#allocation7 + $0x3e4] sm:$0xf0]  ;;  %v3534_v36 = vld [vmem:[#allocation7 + $0x3a0] sm:$0xf] }
  0x63   : > { %980 = vmatpush.bf16.msra.mxu1 %v3575_v56  ;;  %v4679_v37 = vld [vmem:[#allocation7 + $0x3e8] sm:$0xf0]  ;;  %v4723_v39 = vld [vmem:[#allocation7 + $0x85c] sm:$0xf]  ;;  %v3726_v42 = vld [vmem:[#allocation7 + $0x860] sm:$0xf]  ;;  %v3531_v44 = vor.u32 %v4675_v31, %v3528_v34 }
  0x64   : > { %935 = vmatpush.bf16.msrb.mxu2 %v3523_v40  ;;  %968 = vmatmul.bf16.vlgmr.msra.gmra.mxu0 %v5497_v35  ;;  %v3720_v40 = vld [vmem:[#allocation7 + $0x8a4] sm:$0xf0]  ;;  %v3535_v41 = vor.u32 %v4679_v37, %v3534_v36  ;;  %v4669_v45 = vld [vmem:[#allocation7 + $0x304] sm:$0xf]  ;;  %v3504_v46 = vld [vmem:[#allocation7 + $0x34c] sm:$0xf0] }
  0x65   : > { %948 = vmatpush.bf16.msrb.mxu3 %v3715_v43  ;;  %1012 = vmatpush.bf16.msrb.mxu0 %v3559_v25  ;;  %v4727_v43 = vld [vmem:[#allocation7 + $0x8a8] sm:$0xf0]  ;;  %v3723_v48 = vor.u32 %v4723_v39, %v3720_v40  ;;  %v4717_v49 = vld [vmem:[#allocation7 + $0x7c4] sm:$0xf]  ;;  %v3510_v50 = vld [vmem:[#allocation7 + $0x308] sm:$0xf]  ;;  %v3507_v57 = vor.u32 %v4669_v45, %v3504_v46 }
  0x66   : > { %981 = vmatmul.bf16.vlgmr.msra.gmra.mxu1 %v5499_v38  ;;  %v3727_v47 = vor.u32 %v4727_v43, %v3726_v42  ;;  %v4673_v51 = vld [vmem:[#allocation7 + $0x350] sm:$0xf0]  ;;  %v3702_v54 = vld [vmem:[#allocation7 + $0x7c8] sm:$0xf]  ;;  %v4663_v58 = vld [vmem:[#allocation7 + $0x26c] sm:$0xf] }
  0x67   : > { %1025 = vmatpush.bf16.msrb.mxu1 %v3751_v32  ;;  %v4721_v55 = vld [vmem:[#allocation7 + $0x810] sm:$0xf0]  ;;  %v4711_v61 = vld [vmem:[#allocation7 + $0x72c] sm:$0xf]  ;;  %v3486_v62 = vld [vmem:[#allocation7 + $0x270] sm:$0xf] }
  0x68   : > { %936 = vmatpush.bf16.msrb.mxu2 %v3499_v52  ;;  %v3696_v52 = vld [vmem:[#allocation7 + $0x80c] sm:$0xf0]  ;;  %v3703_v56 = vor.u32 %v4721_v55, %v3702_v54  ;;  %v4667_v63 = vld [vmem:[#allocation7 + $0x2b8] sm:$0xf0]  ;;  %v3672_v0 = vld [vmem:[#allocation7 + $0x774] sm:$0xf0] }
  0x69   : > { %949 = vmatpush.bf16.msrb.mxu3 %v3691_v53  ;;  %1013 = vmatpush.bf16.msrb.mxu0 %v3535_v41  ;;  %v3511_v53 = vor.u32 %v4673_v51, %v3510_v50  ;;  %v4715_v3 = vld [vmem:[#allocation7 + $0x778] sm:$0xf0]  ;;  %v4657_v6 = vld [vmem:[#allocation7 + $0x1d4] sm:$0xf]  ;;  %v3462_v10 = vld [vmem:[#allocation7 + $0x1d8] sm:$0xf] }
  0x6a   : > { %v4705_v9 = vld [vmem:[#allocation7 + $0x694] sm:$0xf]  ;;  %v4661_v11 = vld [vmem:[#allocation7 + $0x220] sm:$0xf0]  ;;  %v3648_v12 = vld [vmem:[#allocation7 + $0x6dc] sm:$0xf0] }
  0x6b   : > { %1026 = vmatpush.bf16.msrb.mxu1 %v3727_v47  ;;  %v3654_v14 = vld [vmem:[#allocation7 + $0x698] sm:$0xf]  ;;  %v4709_v15 = vld [vmem:[#allocation7 + $0x6e0] sm:$0xf0]  ;;  %v4651_v18 = vld [vmem:[#allocation7 + $0x13c] sm:$0xf]  ;;  %v3651_v20 = vor.u32 %v4705_v9, %v3648_v12 }
  0x6c   : > { %937 = vmatpush.bf16.msrb.mxu2 %v3475_v59  ;;  %v3480_v59 = vld [vmem:[#allocation7 + $0x2b4] sm:$0xf0]  ;;  %v3432_v19 = vld [vmem:[#allocation7 + $0x184] sm:$0xf0]  ;;  %v4699_v21 = vld [vmem:[#allocation7 + $0x5fc] sm:$0xf] }
  0x6d   : > { %950 = vmatpush.bf16.msrb.mxu3 %v3667_v60  ;;  %v3699_v60 = vor.u32 %v4717_v49, %v3696_v52  ;;  %1014 = vmatpush.bf16.msrb.mxu0 %v3511_v53  ;;  %v3483_v5 = vor.u32 %v4663_v58, %v3480_v59  ;;  %v3438_v22 = vld [vmem:[#allocation7 + $0x140] sm:$0xf]  ;;  %v4655_v23 = vld [vmem:[#allocation7 + $0x188] sm:$0xf0]  ;;  %v3624_v24 = vld [vmem:[#allocation7 + $0x644] sm:$0xf0] }
  0x6e   : > { %v3439_v25 = vor.u32 %v4655_v23, %v3438_v22  ;;  %v4703_v27 = vld [vmem:[#allocation7 + $0x648] sm:$0xf0]  ;;  %v3408_v31 = vld [vmem:[#allocation7 + $0xec] sm:$0xf0]  ;;  %v3627_v32 = vor.u32 %v4699_v21, %v3624_v24  ;;  %v3414_v34 = vld [vmem:[#allocation7 + $0xa8] sm:$0xf] }
  0x6f   : > { %1027 = vmatpush.bf16.msrb.mxu1 %v3703_v56  ;;  %v4649_v36 = vld [vmem:[#allocation7 + $0xf0] sm:$0xf0]  ;;  %v3600_v37 = vld [vmem:[#allocation7 + $0x5ac] sm:$0xf0]  ;;  %v3606_v40 = vld [vmem:[#allocation7 + $0x568] sm:$0xf] }
  0x70   : > { %938 = vmatpush.bf16.msrb.mxu2 %v3451_v1  ;;  %v3487_v1 = vor.u32 %v4667_v63, %v3486_v62  ;;  %v3415_v39 = vor.u32 %v4649_v36, %v3414_v34  ;;  %v4697_v41 = vld [vmem:[#allocation7 + $0x5b0] sm:$0xf0]  ;;  %v4639_v42 = vld [vmem:[#allocation7 + $0xc] sm:$0xf]  ;;  %v3384_v45 = vld [vmem:[#allocation7 + $0x54] sm:$0xf0] }
  0x71   : > { %951 = vmatpush.bf16.msrb.mxu3 %v3643_v2  ;;  %v3678_v2 = vld [vmem:[#allocation7 + $0x730] sm:$0xf]  ;;  %v3607_v43 = vor.u32 %v4697_v41, %v3606_v40  ;;  %v4687_v46 = vld [vmem:[#allocation7 + $0x4cc] sm:$0xf]  ;;  %v3576_v47 = vld [vmem:[#allocation7 + $0x514] sm:$0xf0]  ;;  %v3387_v59 = vor.u32 %v4639_v42, %v3384_v45 }
  0x72   : > { %v3679_v4 = vor.u32 %v4715_v3, %v3678_v2  ;;  %1015 = vmatpush.bf16.msrb.mxu0 %v3487_v1  ;;  %v4682_v49 = vld [vmem:[#allocation7 + $0x43c] sm:$0xf]  ;;  %v3390_v50 = vld [vmem:[#allocation7 + $0x10] sm:$0xf]  ;;  %v3560_v52 = vld [vmem:[#allocation7 + $0x484] sm:$0xf0] }
  0x73   : > { %v4643_v51 = vld [vmem:[#allocation7 + $0x58] sm:$0xf0]  ;;  %v3582_v54 = vld [vmem:[#allocation7 + $0x4d0] sm:$0xf]  ;;  %v4676_v63 = vld [vmem:[#allocation7 + $0x3a4] sm:$0xf] }
  0x74   : > { %939 = vmatpush.bf16.msrb.mxu2 %v3427_v7  ;;  %v3456_v7 = vld [vmem:[#allocation7 + $0x21c] sm:$0xf0]  ;;  %1028 = vmatpush.bf16.msrb.mxu1 %v3679_v4  ;;  %v3391_v53 = vor.u32 %v4643_v51, %v3390_v50  ;;  %v4691_v55 = vld [vmem:[#allocation7 + $0x518] sm:$0xf0]  ;;  %v4724_v1 = vld [vmem:[#allocation7 + $0x864] sm:$0xf] }
  0x75   : > { %952 = vmatpush.bf16.msrb.mxu3 %v3619_v8  ;;  %v3675_v8 = vor.u32 %v4711_v61, %v3672_v0  ;;  %v3459_v17 = vor.u32 %v4657_v6, %v3456_v7  ;;  %v4730_v56 = vld [vmem:[#allocation7 + $0x8fc] sm:$0xf]  ;;  %v3583_v58 = vor.u32 %v4691_v55, %v3582_v54  ;;  %v3563_v61 = vor.u32 %v4682_v49, %v3560_v52  ;;  %v3536_v0 = vld [vmem:[#allocation7 + $0x3ec] sm:$0xf0]  ;;  %v4670_v4 = vld [vmem:[#allocation7 + $0x30c] sm:$0xf] }
  0x76   : > { %v3728_v2 = vld [vmem:[#allocation7 + $0x8ac] sm:$0xf0]  ;;  %v3539_v3 = vor.u32 %v4676_v63, %v3536_v0  ;;  %v4779_v6 = vld [vmem:[#allocation7 + $0x488] sm:$0xf0]  ;;  %v4712_v21 = vld [vmem:[#allocation7 + $0x734] sm:$0xf] }
  0x77   : > { %v3731_v7 = vor.u32 %v4724_v1, %v3728_v2  ;;  %v4718_v12 = vld [vmem:[#allocation7 + $0x7cc] sm:$0xf]  ;;  %v3680_v22 = vld [vmem:[#allocation7 + $0x77c] sm:$0xf0]  ;;  %v4700_v34 = vld [vmem:[#allocation7 + $0x604] sm:$0xf] }
  0x78   : > { %940 = vmatpush.bf16.msrb.mxu2 %v3403_v13  ;;  %v3463_v13 = vor.u32 %v4661_v11, %v3462_v10  ;;  %v3906_v10 = vld [vmem:[#allocation7 + $0x3a8] sm:$0xf]  ;;  %v4773_v11 = vld [vmem:[#allocation7 + $0x3f0] sm:$0xf0]  ;;  %v3632_v36 = vld [vmem:[#allocation7 + $0x64c] sm:$0xf0] }
  0x79   : > { %953 = vmatpush.bf16.msrb.mxu3 %v3595_v16  ;;  %v3655_v16 = vor.u32 %v4709_v15, %v3654_v14  ;;  %v3907_v14 = vor.u32 %v4773_v11, %v3906_v10  ;;  %v4646_v40 = vld [vmem:[#allocation7 + $0xac] sm:$0xf]  ;;  %v3416_v41 = vld [vmem:[#allocation7 + $0xf4] sm:$0xf0]  ;;  %v3584_v49 = vld [vmem:[#allocation7 + $0x51c] sm:$0xf0] }
  0x7a   : > { %1016 = vmatpush.bf16.msrb.mxu0 %v3463_v13  ;;  %v3704_v13 = vld [vmem:[#allocation7 + $0x814] sm:$0xf0]  ;;  %v4694_v42 = vld [vmem:[#allocation7 + $0x56c] sm:$0xf]  ;;  %v4776_v50 = vld [vmem:[#allocation7 + $0x444] sm:$0xf] }
  0x7b   : > { %1029 = vmatpush.bf16.msrb.mxu1 %v3655_v16  ;;  %v3882_v16 = vld [vmem:[#allocation7 + $0x310] sm:$0xf]  ;;  %v4770_v55 = vld [vmem:[#allocation7 + $0x3ac] sm:$0xf]  ;;  %v4758_v63 = vld [vmem:[#allocation7 + $0x27c] sm:$0xf] }
  0x7c   : > { %941 = vmatpush.bf16.msrb.mxu2 %v3379_v26  ;;  %v3630_v26 = vld [vmem:[#allocation7 + $0x600] sm:$0xf]  ;;  %v3932_v51 = vld [vmem:[#allocation7 + $0x48c] sm:$0xf0]  ;;  %v3860_v1 = vld [vmem:[#allocation7 + $0x2c4] sm:$0xf0] }
  0x7d   : > { %954 = vmatpush.bf16.msrb.mxu3 %v3571_v29  ;;  %v3631_v28 = vor.u32 %v4703_v27, %v3630_v26  ;;  %v3435_v29 = vor.u32 %v4651_v18, %v3432_v19  ;;  %v3707_v18 = vor.u32 %v4718_v12, %v3704_v13  ;;  %v4664_v19 = vld [vmem:[#allocation7 + $0x274] sm:$0xf]  ;;  %v4658_v26 = vld [vmem:[#allocation7 + $0x1dc] sm:$0xf]  ;;  %v3464_v27 = vld [vmem:[#allocation7 + $0x224] sm:$0xf0]  ;;  %v3935_v54 = vor.u32 %v4776_v50, %v3932_v51 }
  0x7e   : > { %1017 = vmatpush.bf16.msrb.mxu0 %v3439_v25  ;;  %v3683_v25 = vor.u32 %v4712_v21, %v3680_v22  ;;  %v3863_v2 = vor.u32 %v4758_v63, %v3860_v1  ;;  %v3812_v11 = vld [vmem:[#allocation7 + $0x194] sm:$0xf0]  ;;  %v3786_v13 = vld [vmem:[#allocation7 + $0xb0] sm:$0xf]  ;;  %v4734_v21 = vld [vmem:[#allocation7 + $0x1c] sm:$0xf] }
  0x7f   : > { %942 = vmatmul.bf16.vlgmr.msrb.gmra.mxu2 %v5497_v35  ;;  %1030 = vmatpush.bf16.msrb.mxu1 %v3631_v28  ;;  %v4706_v28 = vld [vmem:[#allocation7 + $0x69c] sm:$0xf]  ;;  %v3842_v1 = vld [vmem:[#allocation7 + $0x1e8] sm:$0xf]  ;;  %s3197_s15 = sshll.u32 %s5693_s11, 4  ;;  %s3199_s23 = sshll.u32 %s3195_s14, 4  ;;  %s3198_s15 = int_to_ptr.vmem [resolvable:$true] %s3197_s15  ;;  %s3200_s23 = int_to_ptr.hbm [resolvable:$true] %s3199_s23 }
  0x80   : > { %986 = vmatpush.bf16.msra.mxu2 %v3555_v30  ;;  %955 = vmatmul.bf16.vlgmr.msrb.gmra.mxu3 %v5499_v38  ;;  %v4645_v30 = vld [vmem:[#allocation7 + $0xa4] sm:$0xf]  ;;  %s5223_s24 = sshra.s32 %s3200_s23, 4  ;;  %s5229_s10 = scalar_lea.hbm %s5824_s4, 64  ;;  %s5224_s24 = int_to_ptr.hbm [resolvable:$true] %s5223_s24 }
  0x81   : > { %999 = vmatpush.bf16.msra.mxu3 %v3747_v33  ;;  %v4693_v33 = vld [vmem:[#allocation7 + $0x564] sm:$0xf]  ;;  %s5225_s29 = scalar_lea.hbm %s5224_s24, 16  ;;  %p5230_p7 = scmp.lt.s32.totalorder %s5224_s24, %s5824_s4 }
  0x82   : > { %1018 = vmatpush.bf16.msrb.mxu0 %v3415_v39  ;;  %v3635_v39 = vor.u32 %v4700_v34, %v3632_v36  ;;  %v4771_v34 = vld [vmem:[#allocation7 + $0x3b4] sm:$0xf]  ;;  %p5226_p1 = scmp.ne.s32.totalorder %s5224_s24, %s5225_s29  ;;  %p5231_p2 = scmp.lt.s32.totalorder %s5229_s10, %s5225_s29 }
  0x83   : > { %1031 = vmatpush.bf16.msrb.mxu1 %v3607_v43  ;;  %v3608_v43 = vld [vmem:[#allocation7 + $0x5b4] sm:$0xf0] }
  0x84   : > { %987 = vmatpush.bf16.msra.mxu2 %v3531_v44  ;;  %v3411_v44 = vor.u32 %v4645_v30, %v3408_v31  ;;  %v3467_v30 = vor.u32 %v4658_v26, %v3464_v27  ;;  %v3611_v45 = vor.u32 %v4694_v42, %v3608_v43  ;;  %v3890_v43 = vld [vmem:[#allocation7 + $0x318] sm:$0xf]  ;;  %p5227_p4 = pnand %p5226_p1, %p5442_p5  ;;  %p5232_p9 = por %p5231_p2, %p5230_p7 }
  0x85   : > { %1000 = vmatpush.bf16.msra.mxu3 %v3723_v48  ;;  %v3603_v48 = vor.u32 %v4693_v33, %v3600_v37  ;;  %v3440_v33 = vld [vmem:[#allocation7 + $0x18c] sm:$0xf0] }
  0x86   : > { %1019 = vmatpush.bf16.msrb.mxu0 %v3391_v53  ;;  %p5228_p8 = pneg %p5227_p4 }
  0x87   : > { %1032 = vmatpush.bf16.msrb.mxu1 %v3583_v58  ;;  %v4764_v58 = vld [vmem:[#allocation7 + $0x314] sm:$0xf] }
  0x88   : > { %988 = vmatpush.bf16.msra.mxu2 %v3507_v57  ;;  %v3752_v57 = vld [vmem:[#allocation7 + $0x944] sm:$0xf0]  ;;  %p5233_p10 = pnand %p5232_p9, %p5228_p8 }
  0x89   : > { %1001 = vmatpush.bf16.msra.mxu3 %v3699_v60  ;;  %v3579_v60 = vor.u32 %v4687_v46, %v3576_v47  ;;  %v3755_v62 = vor.u32 %v4730_v56, %v3752_v57  ;;  %1020 = vmatmul.bf16.vlgmr.msrb.gmra.mxu0 %v5497_v35  ;;  %v4640_v46 = vld [vmem:[#allocation7 + $0x14] sm:$0xf]  ;;  %v3392_v47 = vld [vmem:[#allocation7 + $0x5c] sm:$0xf0]  ;;  %v3908_v56 = vld [vmem:[#allocation7 + $0x3f4] sm:$0xf0] }
  0x8a   : > { %1033 = vmatmul.bf16.vlgmr.msrb.gmra.mxu1 %v5499_v38  ;;  %v3395_v52 = vor.u32 %v4640_v46, %v3392_v47  ;;  %v3911_v57 = vor.u32 %v4770_v55, %v3908_v56  ;;  %v3866_v55 = vld [vmem:[#allocation7 + $0x280] sm:$0xf]  ;;  %v4762_v56 = vld [vmem:[#allocation7 + $0x2c8] sm:$0xf0] }
  0x8c   : > { %989 = vmatpush.bf16.msra.mxu2 %v3483_v5  ;;  %v3930_v5 = vld [vmem:[#allocation7 + $0x440] sm:$0xf] }
  0x8d   : > { %1002 = vmatpush.bf16.msra.mxu3 %v3675_v8  ;;  %v3512_v8 = vld [vmem:[#allocation7 + $0x354] sm:$0xf0]  ;;  %v3931_v9 = vor.u32 %v4779_v6, %v3930_v5  ;;  %v4752_v5 = vld [vmem:[#allocation7 + $0x1e4] sm:$0xf] }
  0x8e   : > { %v3515_v15 = vor.u32 %v4670_v4, %v3512_v8  ;;  %v4755_v4 = vld [vmem:[#allocation7 + $0x228] sm:$0xf0] }
  0x8f   : > { %1740 = vmatpush.bf16.msra.mxu0 %v3931_v9  ;;  %v4746_v9 = vld [vmem:[#allocation7 + $0x14c] sm:$0xf] }
  0x90   : > { %990 = vmatpush.bf16.msra.mxu2 %v3459_v17  ;;  %v4767_v17 = vld [vmem:[#allocation7 + $0x358] sm:$0xf0]  ;;  %v3815_v12 = vor.u32 %v4746_v9, %v3812_v11  ;;  %v4747_v9 = vld [vmem:[#allocation7 + $0x154] sm:$0xf] }
  0x91   : > { %1003 = vmatpush.bf16.msra.mxu3 %v3651_v20  ;;  %v3488_v20 = vld [vmem:[#allocation7 + $0x2bc] sm:$0xf0]  ;;  %v3883_v23 = vor.u32 %v4767_v17, %v3882_v16 }
  0x92   : > { %v3491_v24 = vor.u32 %v4664_v19, %v3488_v20  ;;  %v3788_v17 = vld [vmem:[#allocation7 + $0xfc] sm:$0xf0]  ;;  %v3762_v19 = vld [vmem:[#allocation7 + $0x18] sm:$0xf]  ;;  %v4737_v20 = vld [vmem:[#allocation7 + $0x60] sm:$0xf0] }
  0x93   : > { %1741 = vmatpush.bf16.msra.mxu0 %v3907_v14  ;;  %v4743_v14 = vld [vmem:[#allocation7 + $0xf8] sm:$0xf0]  ;;  %v3763_v22 = vor.u32 %v4737_v20, %v3762_v19  ;;  %v4744_v19 = vld [vmem:[#allocation7 + $0x100] sm:$0xf0] }
  0x94   : > { %991 = vmatpush.bf16.msra.mxu2 %v3435_v29  ;;  %v3656_v29 = vld [vmem:[#allocation7 + $0x6e4] sm:$0xf0]  ;;  %v3787_v16 = vor.u32 %v4743_v14, %v3786_v13  ;;  %v3820_v13 = vld [vmem:[#allocation7 + $0x19c] sm:$0xf0]  ;;  %v4741_v20 = vld [vmem:[#allocation7 + $0xbc] sm:$0xf] }
  0x95   : > { %1004 = vmatpush.bf16.msra.mxu3 %v3627_v32  ;;  %v3659_v31 = vor.u32 %v4706_v28, %v3656_v29  ;;  %v4652_v32 = vld [vmem:[#allocation7 + $0x144] sm:$0xf]  ;;  %v4777_v28 = vld [vmem:[#allocation7 + $0x44c] sm:$0xf]  ;;  %v3940_v29 = vld [vmem:[#allocation7 + $0x494] sm:$0xf0] }
  0x96   : > { %v3443_v37 = vor.u32 %v4652_v32, %v3440_v33  ;;  %v3914_v32 = vld [vmem:[#allocation7 + $0x3b0] sm:$0xf]  ;;  %v4774_v33 = vld [vmem:[#allocation7 + $0x3f8] sm:$0xf0] }
  0x97   : > { %1742 = vmatpush.bf16.msra.mxu0 %v3883_v23  ;;  %v3764_v23 = vld [vmem:[#allocation7 + $0x64] sm:$0xf0] }
  0x98   : > { %992 = vmatpush.bf16.msra.mxu2 %v3411_v44  ;;  %v3419_v44 = vor.u32 %v4646_v40, %v3416_v41  ;;  %v3767_v26 = vor.u32 %v4734_v21, %v3764_v23  ;;  %v3796_v21 = vld [vmem:[#allocation7 + $0x104] sm:$0xf0] }
  0x99   : > { %1005 = vmatpush.bf16.msra.mxu3 %v3603_v48  ;;  %v4688_v48 = vld [vmem:[#allocation7 + $0x4d4] sm:$0xf]  ;;  %v3799_v23 = vor.u32 %v4741_v20, %v3796_v21  ;;  %v3946_v20 = vld [vmem:[#allocation7 + $0x450] sm:$0xf] }
  0x9a   : > { %v3587_v53 = vor.u32 %v4688_v48, %v3584_v49  ;;  %v3892_v49 = vld [vmem:[#allocation7 + $0x364] sm:$0xf0] }
  0x9c   : > { %993 = vmatpush.bf16.msra.mxu2 %v3387_v59  ;;  %v3884_v59 = vld [vmem:[#allocation7 + $0x35c] sm:$0xf0] }
  0x9d   : > { %1006 = vmatpush.bf16.msra.mxu3 %v3579_v60  ;;  %v3887_v60 = vor.u32 %v4764_v58, %v3884_v59 }
  0x9f   : > { %994 = vmatmul.bf16.vlgmr.msra.gmra.mxu2 %v5497_v35 }
  0xa0   : > { %1038 = vmatpush.bf16.msrb.mxu2 %v3563_v61  ;;  %1007 = vmatmul.bf16.vlgmr.msra.gmra.mxu3 %v5499_v38  ;;  %v3858_v61 = vld [vmem:[#allocation7 + $0x278] sm:$0xf] }
  0xa1   : > { %1051 = vmatpush.bf16.msrb.mxu3 %v3755_v62  ;;  %v4761_v62 = vld [vmem:[#allocation7 + $0x2c0] sm:$0xf0] }
  0xa2   : > { %v3859_v0 = vor.u32 %v4761_v62, %v3858_v61  ;;  %v3868_v61 = vld [vmem:[#allocation7 + $0x2cc] sm:$0xf0] }
  0xa4   : > { %1039 = vmatpush.bf16.msrb.mxu2 %v3539_v3  ;;  %1743 = vmatpush.bf16.msra.mxu0 %v3859_v0  ;;  %v3834_v3 = vld [vmem:[#allocation7 + $0x1e0] sm:$0xf] }
  0xa5   : > { %1052 = vmatpush.bf16.msrb.mxu3 %v3731_v7  ;;  %v3835_v6 = vor.u32 %v4755_v4, %v3834_v3  ;;  %v3836_v7 = vld [vmem:[#allocation7 + $0x22c] sm:$0xf0]  ;;  %v4753_v3 = vld [vmem:[#allocation7 + $0x1ec] sm:$0xf] }
  0xa6   : > { %v3839_v8 = vor.u32 %v4752_v5, %v3836_v7 }
  0xa8   : > { %1040 = vmatpush.bf16.msrb.mxu2 %v3515_v15  ;;  %1744 = vmatpush.bf16.msra.mxu0 %v3835_v6  ;;  %v4740_v15 = vld [vmem:[#allocation7 + $0xb4] sm:$0xf]  ;;  %v3844_v6 = vld [vmem:[#allocation7 + $0x234] sm:$0xf0] }
  0xa9   : > { %1053 = vmatpush.bf16.msrb.mxu3 %v3707_v18  ;;  %v3791_v18 = vor.u32 %v4740_v15, %v3788_v17  ;;  %v3847_v7 = vor.u32 %v4753_v3, %v3844_v6  ;;  %v3823_v15 = vor.u32 %v4747_v9, %v3820_v13 }
  0xac   : > { %1041 = vmatpush.bf16.msrb.mxu2 %v3491_v24  ;;  %v3938_v24 = vld [vmem:[#allocation7 + $0x448] sm:$0xf] }
  0xad   : > { %1054 = vmatpush.bf16.msrb.mxu3 %v3683_v25  ;;  %v4780_v25 = vld [vmem:[#allocation7 + $0x490] sm:$0xf0] }
  0xae   : > { %v3939_v27 = vor.u32 %v4780_v25, %v3938_v24  ;;  %v3770_v24 = vld [vmem:[#allocation7 + $0x20] sm:$0xf]  ;;  %v4738_v25 = vld [vmem:[#allocation7 + $0x68] sm:$0xf0] }
  0xb0   : > { %1042 = vmatpush.bf16.msrb.mxu2 %v3467_v30  ;;  %v5513_v30 = vld [vmem:[#allocation8] sm:$0x3f] }
  0xb1   : > { %1055 = vmatpush.bf16.msrb.mxu3 %v3659_v31  ;;  %v3943_v31 = vor.u32 %v4777_v28, %v3940_v29  ;;  %v896_v36 = vperm.slane %v5513_v30, 0  ;;  %v898_v41 = vperm.slane %v5513_v30, 2  ;;  %v3772_v28 = vld [vmem:[#allocation7 + $0x6c] sm:$0xf0] }
  0xb4   : > { %1043 = vmatpush.bf16.msrb.mxu2 %v3443_v37  ;;  %v3915_v37 = vor.u32 %v4774_v33, %v3914_v32 }
  0xb5   : > { %1056 = vmatpush.bf16.msrb.mxu3 %v3635_v39  ;;  %v3916_v39 = vld [vmem:[#allocation7 + $0x3fc] sm:$0xf0] }
  0xb6   : > { %v3919_v40 = vor.u32 %v4771_v34, %v3916_v39 }
  0xb8   : > { %1044 = vmatpush.bf16.msrb.mxu2 %v3419_v44  ;;  %v4768_v44 = vld [vmem:[#allocation7 + $0x360] sm:$0xf0] }
  0xb9   : > { %1057 = vmatpush.bf16.msrb.mxu3 %v3611_v45  ;;  %v4765_v45 = vld [vmem:[#allocation7 + $0x31c] sm:$0xf]  ;;  %v3891_v48 = vor.u32 %v4768_v44, %v3890_v43 }
  0xba   : > { %v3895_v51 = vor.u32 %v4765_v45, %v3892_v49  ;;  %v4122_v49 = vld [vmem:[#allocation7 + $0x900] sm:$0xf] }
  0xbc   : > { %1045 = vmatpush.bf16.msrb.mxu2 %v3395_v52 }
  0xbd   : > { %1058 = vmatpush.bf16.msrb.mxu3 %v3587_v53 }
  0xbf   : > { %1046 = vmatmul.bf16.vlgmr.msrb.gmra.mxu2 %v5497_v35  ;;  %v3810_v35 = vld [vmem:[#allocation7 + $0x148] sm:$0xf] }
  0xc0   : > { %1766 = vmatpush.bf16.msra.mxu2 %v3935_v54  ;;  %1059 = vmatmul.bf16.vlgmr.msrb.gmra.mxu3 %v5499_v38  ;;  %v4749_v38 = vld [vmem:[#allocation7 + $0x190] sm:$0xf0] }
  0xc1   : > { %v3811_v10 = vor.u32 %v4749_v38, %v3810_v35  ;;  %v3818_v35 = vld [vmem:[#allocation7 + $0x150] sm:$0xf]  ;;  %v4750_v38 = vld [vmem:[#allocation7 + $0x198] sm:$0xf0] }
  0xc3   : > { %1745 = vmatpush.bf16.msra.mxu0 %v3811_v10 }
  0xc4   : > { %1767 = vmatpush.bf16.msra.mxu2 %v3911_v57  ;;  %v4759_v57 = vld [vmem:[#allocation7 + $0x284] sm:$0xf] }
  0xc5   : > { %v3871_v62 = vor.u32 %v4759_v57, %v3868_v61 }
  0xc7   : > { %1746 = vmatpush.bf16.msra.mxu0 %v3787_v16 }
  0xc8   : > { %1768 = vmatpush.bf16.msra.mxu2 %v3887_v60  ;;  %v3867_v60 = vor.u32 %v4762_v56, %v3866_v55 }
  0xcb   : > { %1747 = vmatpush.bf16.msra.mxu0 %v3763_v22 }
  0xcc   : > { %1769 = vmatpush.bf16.msra.mxu2 %v3863_v2  ;;  %v4756_v2 = vld [vmem:[#allocation7 + $0x230] sm:$0xf0] }
  0xcd   : > { %v3843_v5 = vor.u32 %v4756_v2, %v3842_v1 }
  0xcf   : > { %1792 = vmatpush.bf16.msrb.mxu0 %v3939_v27  ;;  %v4735_v27 = vld [vmem:[#allocation7 + $0x24] sm:$0xf] }
  0xd0   : > { %1770 = vmatpush.bf16.msra.mxu2 %v3839_v8 }
  0xd3   : > { %1793 = vmatpush.bf16.msrb.mxu0 %v3915_v37 }
  0xd4   : > { %1771 = vmatpush.bf16.msra.mxu2 %v3815_v12  ;;  %v3819_v12 = vor.u32 %v4750_v38, %v3818_v35  ;;  %v4812_v35 = vld [vmem:[#allocation7 + $0x7d4] sm:$0xf]  ;;  %v3876_v38 = vld [vmem:[#allocation7 + $0x2d4] sm:$0xf0] }
  0xd7   : > { %1794 = vmatpush.bf16.msrb.mxu0 %v3891_v48 }
  0xd8   : > { %1772 = vmatpush.bf16.msra.mxu2 %v3791_v18  ;;  %v3794_v18 = vld [vmem:[#allocation7 + $0xb8] sm:$0xf] }
  0xd9   : > { %v3795_v22 = vor.u32 %v4744_v19, %v3794_v18  ;;  %v4052_v19 = vld [vmem:[#allocation7 + $0x784] sm:$0xf0] }
  0xdb   : > { %1795 = vmatpush.bf16.msrb.mxu0 %v3867_v60  ;;  %v4818_v60 = vld [vmem:[#allocation7 + $0x86c] sm:$0xf] }
  0xdc   : > { %1773 = vmatpush.bf16.msra.mxu2 %v3767_v26  ;;  %v3771_v26 = vor.u32 %v4738_v25, %v3770_v24  ;;  %v4778_v24 = vld [vmem:[#allocation7 + $0x454] sm:$0xf]  ;;  %v3948_v25 = vld [vmem:[#allocation7 + $0x49c] sm:$0xf0] }
  0xdf   : > { %1796 = vmatpush.bf16.msrb.mxu0 %v3843_v5 }
  0xe0   : > { %1818 = vmatpush.bf16.msrb.mxu2 %v3943_v31  ;;  %v3775_v31 = vor.u32 %v4735_v27, %v3772_v28  ;;  %v4803_v27 = vld [vmem:[#allocation7 + $0x6e8] sm:$0xf0]  ;;  %v4800_v28 = vld [vmem:[#allocation7 + $0x6a4] sm:$0xf] }
  0xe1   : > { %v969_v50 = vpop.f32.mrf.mxu0 }
  0xe2   : > { %v917_v42 = vpop.f32.mrf.mxu2  ;;  %v970_v53 = vadd.f32 %v969_v50, %v898_v41  ;;  %v4827_v50 = vld [vmem:[#allocation7 + $0x948] sm:$0xf0] }
  0xe3   : > { %v918_v46 = vadd.f32 %v917_v42, %v896_v36  ;;  %v930_v47 = vpop.f32.mrf.mxu3  ;;  %v982_v54 = vpop.f32.mrf.mxu1  ;;  %1797 = vmatpush.bf16.msrb.mxu0 %v3819_v12  ;;  %v897_v36 = vperm.slane %v5513_v30, 1 }
  0xe4   : > { %1819 = vmatpush.bf16.msrb.mxu2 %v3919_v40  ;;  %v983_v59 = vadd.f32 %v982_v54, %v970_v53  ;;  %v4124_v53 = vld [vmem:[#allocation7 + $0x94c] sm:$0xf0] }
  0xe5   : > { %v931_v52 = vadd.f32 %v930_v47, %v918_v46  ;;  %v4002_v46 = vld [vmem:[#allocation7 + $0x608] sm:$0xf] }
  0xe6   : > { %v3757_v63 = vmul.f32 -1.442695, %v983_v59  ;;  %v4821_v59 = vld [vmem:[#allocation7 + $0x8b0] sm:$0xf0] }
  0xe7   : > { %v3756_v58 = vmul.f32 -1.442695, %v931_v52  ;;  %1798 = vmatpush.bf16.msrb.mxu0 %v3795_v22  ;;  %v4123_v52 = vor.u32 %v4827_v50, %v4122_v49  ;;  %v4004_v50 = vld [vmem:[#allocation7 + $0x654] sm:$0xf0] }
  0xe8   : > { %1820 = vmatpush.bf16.msrb.mxu2 %v3895_v51  ;;  %v4824_v51 = vld [vmem:[#allocation7 + $0x904] sm:$0xf] }
  0xe9   : > { %5041 = vpow2.f32 %v3756_v58  ;;  %v971_v8 = vpop.f32.mrf.mxu0  ;;  %v4127_v55 = vor.u32 %v4824_v51, %v4124_v53  ;;  %1753 = vmatpush.bf16.msra.mxu1 %v4123_v52  ;;  %v4098_v58 = vld [vmem:[#allocation7 + $0x868] sm:$0xf]  ;;  %v899_v51 = vperm.slane %v5513_v30, 3  ;;  %v3898_v52 = vld [vmem:[#allocation7 + $0x320] sm:$0xf] }
  0xea   : > { %v919_v0 = vpop.f32.mrf.mxu2  ;;  %5043 = vpow2.f32 %v3757_v63  ;;  %v4100_v63 = vld [vmem:[#allocation7 + $0x8b4] sm:$0xf0]  ;;  %v4815_v8 = vld [vmem:[#allocation7 + $0x818] sm:$0xf0] }
  0xeb   : > { %v932_v4 = vpop.f32.mrf.mxu3  ;;  %v984_v10 = vpop.f32.mrf.mxu1  ;;  %1799 = vmatpush.bf16.msrb.mxu0 %v3771_v26  ;;  %1779 = vmatpush.bf16.msra.mxu3 %v4127_v55  ;;  %v4103_v2 = vor.u32 %v4818_v60, %v4100_v63  ;;  %v4026_v26 = vld [vmem:[#allocation7 + $0x6a0] sm:$0xf]  ;;  %v4791_v60 = vld [vmem:[#allocation7 + $0x5b8] sm:$0xf0] }
  0xec   : > { %1821 = vmatpush.bf16.msrb.mxu2 %v3871_v62  ;;  %v4099_v62 = vor.u32 %v4821_v59, %v4098_v58  ;;  %v3900_v58 = vld [vmem:[#allocation7 + $0x36c] sm:$0xf0]  ;;  %v3980_v63 = vld [vmem:[#allocation7 + $0x5bc] sm:$0xf0] }
  0xed   : > { %v3978_v59 = vld [vmem:[#allocation7 + $0x570] sm:$0xf] }
  0xee   : > { %1754 = vmatpush.bf16.msra.mxu1 %v4099_v62  ;;  %v3979_v62 = vor.u32 %v4791_v60, %v3978_v59  ;;  %v4745_v59 = vld [vmem:[#allocation7 + $0x108] sm:$0xf0] }
  0xef   : > { %v5042_v11 = vpop.eup %5041  ;;  %1780 = vmatpush.bf16.msra.mxu3 %v4103_v2  ;;  %v3874_v2 = vld [vmem:[#allocation7 + $0x288] sm:$0xf] }
  0xf0   : > { %1822 = vmatpush.bf16.msrb.mxu2 %v3847_v7  ;;  %v1067_v14 = vadd.f32 1.0, %v5042_v11  ;;  %v5044_v16 = vpop.eup %5043  ;;  %v4074_v7 = vld [vmem:[#allocation7 + $0x7d0] sm:$0xf]  ;;  %v4076_v11 = vld [vmem:[#allocation7 + $0x81c] sm:$0xf0] }
  0xf1   : > { %v5517_v17 = vadd.f32 1.0, %v5044_v16  ;;  %v4075_v10 = vor.u32 %v4815_v8, %v4074_v7  ;;  %v4079_v12 = vor.u32 %v4812_v35, %v4076_v11  ;;  %v4809_v16 = vld [vmem:[#allocation7 + $0x780] sm:$0xf0]  ;;  %v4763_v8 = vld [vmem:[#allocation7 + $0x2d0] sm:$0xf0] }
  0xf2   : > { %5045 = vrcp.f32 %v1067_v14  ;;  %vm1073_vm0 = vweird.f32 %v1067_v14  ;;  %v1079_v43 = vand.u32 2147483648, %v1067_v14  ;;  %v1077_v47 = vand.u32 2147483647, %v1067_v14  ;;  %v4760_v35 = vld [vmem:[#allocation7 + $0x28c] sm:$0xf] }
  0xf3   : > { %5047 = vrcp.f32 %v5517_v17  ;;  %vm1093_vm4 = vweird.f32 %v5517_v17  ;;  %v1097_v3 = vand.u32 2147483647, %v5517_v17  ;;  %v1099_v4 = vand.u32 2147483648, %v5517_v17  ;;  %1755 = vmatpush.bf16.msra.mxu1 %v4075_v10  ;;  %1781 = vmatpush.bf16.msra.mxu3 %v4079_v12  ;;  %v3954_v10 = vld [vmem:[#allocation7 + $0x4d8] sm:$0xf] }
  0xf4   : > { %1823 = vmatpush.bf16.msrb.mxu2 %v3823_v15  ;;  %v1080_v54 = vor.u32 1.1754944e-38, %v1079_v43  ;;  %vm1078_vm3 = vcmp.eq.f32.partialorder %v1077_v47, 8.507059e+37  ;;  %v4050_v15 = vld [vmem:[#allocation7 + $0x738] sm:$0xf]  ;;  %v3924_v43 = vld [vmem:[#allocation7 + $0x404] sm:$0xf0] }
  0xf5   : > { %vm1098_vm7 = vcmp.eq.f32.partialorder %v1097_v3, 8.507059e+37  ;;  %v1100_v13 = vor.u32 1.1754944e-38, %v1099_v4  ;;  %v4051_v18 = vor.u32 %v4809_v16, %v4050_v15  ;;  %v4797_v47 = vld [vmem:[#allocation7 + $0x650] sm:$0xf0]  ;;  %v4785_v11 = vld [vmem:[#allocation7 + $0x520] sm:$0xf0] }
  0xf6   : > { %v4003_v49 = vor.u32 %v4797_v47, %v4002_v46  ;;  %v4782_v12 = vld [vmem:[#allocation7 + $0x4dc] sm:$0xf]  ;;  %v3956_v15 = vld [vmem:[#allocation7 + $0x524] sm:$0xf0]  ;;  %v4751_v47 = vld [vmem:[#allocation7 + $0x1a0] sm:$0xf0] }
  0xf7   : > { %1756 = vmatpush.bf16.msra.mxu1 %v4051_v18  ;;  %v4130_v16 = vld [vmem:[#allocation7 + $0x908] sm:$0xf]  ;;  %v3959_v18 = vor.u32 %v4782_v12, %v3956_v15  ;;  %v4801_v12 = vld [vmem:[#allocation7 + $0x6ac] sm:$0xf] }
  0xf8   : > { %1824 = vmatpush.bf16.msrb.mxu2 %v3799_v23  ;;  %v5046_v29 = vpop.eup %5045  ;;  %v4781_v23 = vld [vmem:[#allocation7 + $0x498] sm:$0xf0] }
  0xf9   : > { %v1069_v32 = vmul.f32 %v5046_v29, %v1067_v14  ;;  %v5520_v33 = vpop.eup %5047  ;;  %vm1074_vm1 = vweird.f32 %v5046_v29 }
  0xfa   : > { %v1089_v37 = vmul.f32 %v5520_v33, %v5517_v17  ;;  %vm5525_vm2 = vmor %vm1073_vm0, %vm1074_vm1  ;;  %vm1094_vm5 = vweird.f32 %v5520_v33  ;;  %v4806_v17 = vld [vmem:[#allocation7 + $0x73c] sm:$0xf] }
  0xfb   : > { %v1070_v34 = vsub.f32 1.0, %v1069_v32  ;;  %vm5537_vm6 = vmor %vm1093_vm4, %vm1094_vm5  ;;  %v4055_v21 = vor.u32 %v4806_v17, %v4052_v19  ;;  %v4027_v32 = vor.u32 %v4803_v27, %v4026_v26  ;;  %v4828_v17 = vld [vmem:[#allocation7 + $0x950] sm:$0xf0]  ;;  %v4757_v27 = vld [vmem:[#allocation7 + $0x238] sm:$0xf0] }
  0xfc   : > { %1825 = vmatpush.bf16.msrb.mxu2 %v3775_v31  ;;  %v1090_v44 = vsub.f32 1.0, %v1089_v37  ;;  %v4131_v19 = vor.u32 %v4828_v17, %v4130_v16 }
  0xfd   : > { %v1071_v39 = vmul.f32 %v5046_v29, %v1070_v34  ;;  %1782 = vmatpush.bf16.msra.mxu3 %v4055_v21  ;;  %1757 = vmatpush.bf16.msra.mxu1 %v4027_v32  ;;  %v4132_v21 = vld [vmem:[#allocation7 + $0x954] sm:$0xf0]  ;;  %v4106_v32 = vld [vmem:[#allocation7 + $0x870] sm:$0xf] }
  0xfe   : > { %v1091_v57 = vmul.f32 %v5520_v33, %v1090_v44 }
  0xff   : > { %v1072_v45 = vadd.f32 %v5046_v29, %v1071_v39  ;;  %v3947_v39 = vor.u32 %v4781_v23, %v3946_v20  ;;  %v4825_v20 = vld [vmem:[#allocation7 + $0x90c] sm:$0xf]  ;;  %v3875_v23 = vor.u32 %v4763_v8, %v3874_v2 }
 0x100   : > { %v1092_v6 = vadd.f32 %v5520_v33, %v1091_v57  ;;  %v4766_v57 = vld [vmem:[#allocation7 + $0x324] sm:$0xf]  ;;  %v4135_v26 = vor.u32 %v4825_v20, %v4132_v21  ;;  %v4795_v20 = vld [vmem:[#allocation7 + $0x614] sm:$0xf] }
 0x101   : > { %v1076_v56 = vsel %vm5525_vm2, %v5046_v29, %v1072_v45  ;;  %1758 = vmatpush.bf16.msra.mxu1 %v4003_v49  ;;  %v3903_v7 = vor.u32 %v4766_v57, %v3900_v58  ;;  %v3828_v49 = vld [vmem:[#allocation7 + $0x1a4] sm:$0xf0]  ;;  %v3802_v58 = vld [vmem:[#allocation7 + $0xc0] sm:$0xf] }
 0x102   : > { %v943_v40 = vpop.f32.mrf.mxu2  ;;  %v1081_v0 = vsel %vm1078_vm3, %v1080_v54, %v1076_v56  ;;  %v1096_v14 = vsel %vm5537_vm6, %v5520_v33, %v1092_v6  ;;  %v4028_v33 = vld [vmem:[#allocation7 + $0x6ec] sm:$0xf0]  ;;  %v4769_v56 = vld [vmem:[#allocation7 + $0x368] sm:$0xf0] }
 0x103   : > { %v944_v41 = vadd.f32 %v943_v40, %v897_v36  ;;  %v956_v42 = vpop.f32.mrf.mxu3  ;;  %v1101_v22 = vsel %vm1098_vm7, %v1100_v13, %v1096_v14  ;;  %v3922_v36 = vld [vmem:[#allocation7 + $0x3b8] sm:$0xf]  ;;  %v4031_v37 = vor.u32 %v4800_v28, %v4028_v33  ;;  %v3951_v40 = vor.u32 %v4778_v24, %v3948_v25  ;;  %v3850_v25 = vld [vmem:[#allocation7 + $0x1f0] sm:$0xf]  ;;  %v4754_v28 = vld [vmem:[#allocation7 + $0x1f4] sm:$0xf] }
 0x104   : > { %v3899_v6 = vor.u32 %v4769_v56, %v3898_v52  ;;  %v3955_v14 = vor.u32 %v4785_v11, %v3954_v10  ;;  %v3879_v24 = vor.u32 %v4760_v35, %v3876_v38  ;;  %v4822_v33 = vld [vmem:[#allocation7 + $0x8b8] sm:$0xf0]  ;;  %v4739_v35 = vld [vmem:[#allocation7 + $0x70] sm:$0xf0]  ;;  %v4736_v38 = vld [vmem:[#allocation7 + $0x2c] sm:$0xf] }
 0x105   : > { %v957_v48 = vadd.f32 %v956_v42, %v944_v41  ;;  %v4775_v41 = vld [vmem:[#allocation7 + $0x400] sm:$0xf0]  ;;  %v4772_v42 = vld [vmem:[#allocation7 + $0x3bc] sm:$0xf]  ;;  %1783 = vmatpush.bf16.msra.mxu3 %v4031_v37  ;;  %1759 = vmatpush.bf16.msra.mxu1 %v3979_v62  ;;  %v4107_v37 = vor.u32 %v4822_v33, %v4106_v32  ;;  %v3804_v62 = vld [vmem:[#allocation7 + $0x10c] sm:$0xf0] }
 0x106   : > { %v5544_v31 = vpop.f32.mrf.mxu0  ;;  %v3923_v54 = vor.u32 %v4775_v41, %v3922_v36  ;;  %v3927_v55 = vor.u32 %v4772_v42, %v3924_v43  ;;  %v3826_v43 = vld [vmem:[#allocation7 + $0x158] sm:$0xf]  ;;  %v4813_v52 = vld [vmem:[#allocation7 + $0x7dc] sm:$0xf]  ;;  %v4034_v10 = vld [vmem:[#allocation7 + $0x6a8] sm:$0xf] }
 0x107   : > { %5049 = vtanh.f32 %v957_v48  ;;  %v5546_v44 = vpop.f32.mrf.mxu1  ;;  %v4794_v48 = vld [vmem:[#allocation7 + $0x60c] sm:$0xf]  ;;  %v3827_v56 = vor.u32 %v4751_v47, %v3826_v43  ;;  %v4804_v11 = vld [vmem:[#allocation7 + $0x6f0] sm:$0xf0]  ;;  %v3988_v32 = vld [vmem:[#allocation7 + $0x5c4] sm:$0xf0] }
 0x108   : > { %v4007_v53 = vor.u32 %v4794_v48, %v4004_v50  ;;  %v4748_v48 = vld [vmem:[#allocation7 + $0x15c] sm:$0xf]  ;;  %v4082_v50 = vld [vmem:[#allocation7 + $0x7d8] sm:$0xf] }
 0x109   : > { %1760 = vmatpush.bf16.msra.mxu1 %v3955_v14  ;;  %v3831_v57 = vor.u32 %v4748_v48, %v3828_v49  ;;  %v4036_v14 = vld [vmem:[#allocation7 + $0x6f4] sm:$0xf0] }
 0x10a   : > { %v945_v61 = vpop.f32.mrf.mxu2  ;;  %1784 = vmatpush.bf16.msra.mxu3 %v4007_v53  ;;  %v4039_v17 = vor.u32 %v4801_v12, %v4036_v14  ;;  %v4140_v12 = vld [vmem:[#allocation7 + $0x95c] sm:$0xf0]  ;;  %v4240_v14 = vld [vmem:[#allocation7 + $0x4a4] sm:$0xf0] }
 0x10b   : > { %v958_v1 = vpop.f32.mrf.mxu3  ;;  %v4788_v61 = vld [vmem:[#allocation7 + $0x574] sm:$0xf] }
 0x10c   : > { %v3983_v3 = vor.u32 %v4788_v61, %v3980_v63  ;;  %v4742_v61 = vld [vmem:[#allocation7 + $0xc4] sm:$0xf]  ;;  %v4058_v63 = vld [vmem:[#allocation7 + $0x740] sm:$0xf] }
 0x10d   : > { %v5050_v5 = vpop.eup %5049  ;;  %1805 = vmatpush.bf16.msrb.mxu1 %v4131_v19  ;;  %v4798_v19 = vld [vmem:[#allocation7 + $0x658] sm:$0xf0] }
 0x10e   : > { %v1103_v9 = vmul.f32 %v5050_v5, %v1081_v0  ;;  %v1023_v0 = vpop.f32.mrf.mxu0  ;;  %1785 = vmatpush.bf16.msra.mxu3 %v3983_v3  ;;  %v3803_v3 = vor.u32 %v4745_v59, %v3802_v58 }
 0x10f   : > { %v4810_v0 = vld [vmem:[#allocation7 + $0x788] sm:$0xf0] }
 0x110   : > { %5051 = vtanh.f32 %v1103_v9  ;;  %v1036_v9 = vpop.f32.mrf.mxu1 }
 0x111   : > { %1806 = vmatpush.bf16.msrb.mxu1 %v4107_v37  ;;  %v3780_v9 = vld [vmem:[#allocation7 + $0x74] sm:$0xf0]  ;;  %v3962_v37 = vld [vmem:[#allocation7 + $0x4e0] sm:$0xf] }
 0x112   : > { %1786 = vmatpush.bf16.msra.mxu3 %v3959_v18  ;;  %v3783_v16 = vor.u32 %v4736_v38, %v3780_v9  ;;  %v4010_v18 = vld [vmem:[#allocation7 + $0x610] sm:$0xf]  ;;  %v4238_v38 = vld [vmem:[#allocation7 + $0x458] sm:$0xf]  ;;  %v4853_v9 = vld [vmem:[#allocation7 + $0x4a0] sm:$0xf0] }
 0x113   : > { %v4011_v21 = vor.u32 %v4798_v19, %v4010_v18  ;;  %v4114_v19 = vld [vmem:[#allocation7 + $0x878] sm:$0xf] }
 0x116   : > { %v5052_v29 = vpop.eup %5051  ;;  %1831 = vmatpush.bf16.msrb.mxu3 %v4135_v26  ;;  %v3986_v26 = vld [vmem:[#allocation7 + $0x578] sm:$0xf] }
 0x117   : > { %v1105_v34 = vmul.f32 %v5052_v29, %v1101_v22  ;;  %v3852_v29 = vld [vmem:[#allocation7 + $0x23c] sm:$0xf0] }
 0x118   : > { %v3855_v41 = vor.u32 %v4754_v28, %v3852_v29  ;;  %v4789_v28 = vld [vmem:[#allocation7 + $0x57c] sm:$0xf] }
 0x119   : > { %v5548_v45 = vpack.c.bf16 %v1105_v34, %v1105_v34  ;;  %v4819_v34 = vld [vmem:[#allocation7 + $0x874] sm:$0xf] }
 0x11b   : > { %1748 = vmatmul.bf16.vlgmr.msra.gmra.mxu0 %v5548_v45  ;;  %1774 = vmatmul.bf16.vlgmr.msra.gmra.mxu2 %v5548_v45 }
 0x11c   : > { %1844 = vmatpush.bf16.msra.mxu0 %v3947_v39  ;;  %1870 = vmatpush.bf16.msra.mxu2 %v3951_v40  ;;  %v4108_v39 = vld [vmem:[#allocation7 + $0x8bc] sm:$0xf0]  ;;  %v3851_v40 = vor.u32 %v4757_v27, %v3850_v25  ;;  %v901_v25 = vperm.slane %v5513_v30, 5  ;;  %v4792_v27 = vld [vmem:[#allocation7 + $0x5c0] sm:$0xf0] }
 0x11d   : > { %v4111_v46 = vor.u32 %v4819_v34, %v4108_v39  ;;  %v3987_v29 = vor.u32 %v4792_v27, %v3986_v26  ;;  %v4786_v39 = vld [vmem:[#allocation7 + $0x528] sm:$0xf0]  ;;  %v4820_v27 = vld [vmem:[#allocation7 + $0x87c] sm:$0xf] }
 0x11e   : > { %v3963_v47 = vor.u32 %v4786_v39, %v3962_v37 }
 0x11f   : > { %1832 = vmatpush.bf16.msrb.mxu3 %v4111_v46  ;;  %v3964_v46 = vld [vmem:[#allocation7 + $0x52c] sm:$0xf0] }
 0x120   : > { %1845 = vmatpush.bf16.msra.mxu0 %v3923_v54  ;;  %1871 = vmatpush.bf16.msra.mxu2 %v3927_v55  ;;  %v4084_v54 = vld [vmem:[#allocation7 + $0x824] sm:$0xf0] }
 0x121   : > { %v4087_v60 = vor.u32 %v4813_v52, %v4084_v54 }
 0x122   : > { %v995_v1 = vpop.f32.mrf.mxu2 }
 0x123   : > { %v996_v4 = vadd.f32 %v995_v1, %v899_v51  ;;  %v1008_v5 = vpop.f32.mrf.mxu3  ;;  %v4816_v51 = vld [vmem:[#allocation7 + $0x820] sm:$0xf0]  ;;  %1833 = vmatpush.bf16.msrb.mxu3 %v4087_v60 }
 0x124   : > { %1846 = vmatpush.bf16.msra.mxu0 %v3899_v6  ;;  %1872 = vmatpush.bf16.msra.mxu2 %v3903_v7  ;;  %v4083_v53 = vor.u32 %v4816_v51, %v4082_v50  ;;  %v4807_v1 = vld [vmem:[#allocation7 + $0x744] sm:$0xf]  ;;  %v3778_v6 = vld [vmem:[#allocation7 + $0x28] sm:$0xf]  ;;  %v4059_v7 = vor.u32 %v4810_v0, %v4058_v63 }
 0x125   : > { %v1009_v13 = vadd.f32 %v1008_v5, %v996_v4  ;;  %v4060_v4 = vld [vmem:[#allocation7 + $0x78c] sm:$0xf0]  ;;  %v3807_v5 = vor.u32 %v4742_v61, %v3804_v62  ;;  %v3779_v15 = vor.u32 %v4739_v35, %v3778_v6  ;;  %v4826_v35 = vld [vmem:[#allocation7 + $0x914] sm:$0xf] }
 0x126   : > { %1807 = vmatpush.bf16.msrb.mxu1 %v4083_v53  ;;  %v4063_v8 = vor.u32 %v4807_v1, %v4060_v4 }
 0x127   : > { %v3758_v22 = vmul.f32 -1.442695, %v1009_v13  ;;  %v4035_v13 = vor.u32 %v4804_v11, %v4034_v10  ;;  %v4852_v10 = vld [vmem:[#allocation7 + $0x45c] sm:$0xf] }
 0x128   : > { %1847 = vmatpush.bf16.msra.mxu0 %v3875_v23  ;;  %1873 = vmatpush.bf16.msra.mxu2 %v3879_v24 }
 0x129   : > { %5053 = vpow2.f32 %v3758_v22  ;;  %1834 = vmatpush.bf16.msrb.mxu3 %v4063_v8  ;;  %v4012_v22 = vld [vmem:[#allocation7 + $0x65c] sm:$0xf0]  ;;  %v4829_v8 = vld [vmem:[#allocation7 + $0x958] sm:$0xf0] }
 0x12a   : > { %v997_v36 = vpop.f32.mrf.mxu2  ;;  %1808 = vmatpush.bf16.msrb.mxu1 %v4059_v7  ;;  %v4015_v23 = vor.u32 %v4795_v20, %v4012_v22  ;;  %v4138_v7 = vld [vmem:[#allocation7 + $0x910] sm:$0xf]  ;;  %v4823_v20 = vld [vmem:[#allocation7 + $0x8c0] sm:$0xf0]  ;;  %v4143_v22 = vor.u32 %v4826_v35, %v4140_v12  ;;  %v4020_v12 = vld [vmem:[#allocation7 + $0x664] sm:$0xf0] }
 0x12b   : > { %v1010_v42 = vpop.f32.mrf.mxu3  ;;  %1800 = vmatmul.bf16.vlgmr.msrb.gmra.mxu0 %v5548_v45  ;;  %1826 = vmatmul.bf16.vlgmr.msrb.gmra.mxu2 %v5548_v45  ;;  %v3991_v36 = vor.u32 %v4789_v28, %v3988_v32  ;;  %v4116_v28 = vld [vmem:[#allocation7 + $0x8c4] sm:$0xf0]  ;;  %v4232_v32 = vld [vmem:[#allocation7 + $0x40c] sm:$0xf0]  ;;  %v4115_v37 = vor.u32 %v4823_v20, %v4114_v19 }
 0x12c   : > { %1848 = vmatpush.bf16.msra.mxu0 %v3851_v40  ;;  %1874 = vmatpush.bf16.msra.mxu2 %v3855_v41  ;;  %v4783_v40 = vld [vmem:[#allocation7 + $0x4e4] sm:$0xf]  ;;  %v900_v41 = vperm.slane %v5513_v30, 4  ;;  %v4119_v39 = vor.u32 %v4820_v27, %v4116_v28  ;;  %v4190_v20 = vld [vmem:[#allocation7 + $0xc8] sm:$0xf] }
 0x12d   : > { %1835 = vmatpush.bf16.msrb.mxu3 %v4039_v17  ;;  %v3967_v48 = vor.u32 %v4783_v40, %v3964_v46  ;;  %v4243_v17 = vor.u32 %v4852_v10, %v4240_v14  ;;  %v4222_v40 = vld [vmem:[#allocation7 + $0x328] sm:$0xf]  ;;  %v4092_v46 = vld [vmem:[#allocation7 + $0x82c] sm:$0xf0]  ;;  %v4842_v10 = vld [vmem:[#allocation7 + $0x164] sm:$0xf] }
 0x12e   : > { %1809 = vmatpush.bf16.msrb.mxu1 %v4035_v13  ;;  %v1022_v50 = vadd.f32 %v5544_v31, %v900_v41  ;;  %v4239_v13 = vor.u32 %v4853_v9, %v4238_v38  ;;  %v4849_v41 = vld [vmem:[#allocation7 + $0x370] sm:$0xf0]  ;;  %v4198_v38 = vld [vmem:[#allocation7 + $0x160] sm:$0xf]  ;;  %v4843_v9 = vld [vmem:[#allocation7 + $0x1a8] sm:$0xf0] }
 0x12f   : > { %v5054_v55 = vpop.eup %5053  ;;  %v4200_v14 = vld [vmem:[#allocation7 + $0x1ac] sm:$0xf0]  ;;  %v4192_v27 = vld [vmem:[#allocation7 + $0x114] sm:$0xf0] }
 0x130   : > { %v5555_v2 = vadd.f32 1.0, %v5054_v55  ;;  %1849 = vmatpush.bf16.msra.mxu0 %v3827_v56  ;;  %1875 = vmatpush.bf16.msra.mxu2 %v3831_v57  ;;  %v1035_v54 = vadd.f32 %v5546_v44, %v1022_v50  ;;  %v4811_v50 = vld [vmem:[#allocation7 + $0x790] sm:$0xf0] }
 0x131   : > { %1836 = vmatpush.bf16.msrb.mxu3 %v4015_v23  ;;  %v4230_v23 = vld [vmem:[#allocation7 + $0x3c0] sm:$0xf] }
 0x132   : > { %5055 = vrcp.f32 %v5555_v2  ;;  %1810 = vmatpush.bf16.msrb.mxu1 %v4011_v21  ;;  %vm1115_vm8 = vweird.f32 %v5555_v2  ;;  %v1121_v55 = vand.u32 2147483648, %v5555_v2  ;;  %v1119_v57 = vand.u32 2147483647, %v5555_v2 }
 0x133   : > { %v4139_v21 = vor.u32 %v4829_v8, %v4138_v7  ;;  %v4799_v7 = vld [vmem:[#allocation7 + $0x660] sm:$0xf0] }
 0x134   : > { %1850 = vmatpush.bf16.msra.mxu0 %v3803_v3  ;;  %1876 = vmatpush.bf16.msra.mxu2 %v3807_v5  ;;  %v1122_v59 = vor.u32 1.1754944e-38, %v1121_v55  ;;  %vm1120_vm11 = vcmp.eq.f32.partialorder %v1119_v57, 8.507059e+37  ;;  %v4808_v55 = vld [vmem:[#allocation7 + $0x74c] sm:$0xf] }
 0x135   : > { %1837 = vmatpush.bf16.msrb.mxu3 %v3991_v36  ;;  %v4817_v36 = vld [vmem:[#allocation7 + $0x828] sm:$0xf0] }
 0x136   : > { %1811 = vmatpush.bf16.msrb.mxu1 %v3987_v29 }
 0x138   : > { %1851 = vmatpush.bf16.msra.mxu0 %v3779_v15  ;;  %1877 = vmatpush.bf16.msra.mxu2 %v3783_v16  ;;  %v5056_v24 = vpop.eup %5055 }
 0x139   : > { %v1111_v33 = vmul.f32 %v5056_v24, %v5555_v2  ;;  %1838 = vmatpush.bf16.msrb.mxu3 %v3967_v48  ;;  %vm1116_vm9 = vweird.f32 %v5056_v24  ;;  %v4224_v48 = vld [vmem:[#allocation7 + $0x374] sm:$0xf0] }
 0x13a   : > { %1812 = vmatpush.bf16.msrb.mxu1 %v3963_v47  ;;  %vm1117_vm10 = vmor %vm1115_vm8, %vm1116_vm9  ;;  %v4223_v47 = vor.u32 %v4849_v41, %v4222_v40  ;;  %v4838_v40 = vld [vmem:[#allocation7 + $0x34] sm:$0xf]  ;;  %v3972_v41 = vld [vmem:[#allocation7 + $0x534] sm:$0xf0] }
 0x13b   : > { %1852 = vmatmul.bf16.vlgmr.msra.gmra.mxu0 %v5548_v45  ;;  %1878 = vmatmul.bf16.vlgmr.msra.gmra.mxu2 %v5548_v45  ;;  %v1112_v45 = vsub.f32 1.0, %v1111_v33 }
 0x13c   : > { %2230 = vmatpush.bf16.msrb.mxu0 %v4239_v13  ;;  %2288 = vmatpush.bf16.msrb.mxu2 %v4243_v17  ;;  %v4199_v13 = vor.u32 %v4843_v9, %v4198_v38  ;;  %v4793_v17 = vld [vmem:[#allocation7 + $0x5c8] sm:$0xf0]  ;;  %v4860_v38 = vld [vmem:[#allocation7 + $0x6bc] sm:$0xf]  ;;  %v4272_v9 = vld [vmem:[#allocation7 + $0x704] sm:$0xf0] }
 0x13d   : > { %v1113_v52 = vmul.f32 %v5056_v24, %v1112_v45  ;;  %v4066_v45 = vld [vmem:[#allocation7 + $0x748] sm:$0xf] }
 0x13f   : > { %v1114_v56 = vadd.f32 %v5056_v24, %v1113_v52 }
 0x141   : > { %v1118_v60 = vsel %vm1117_vm10, %v5056_v24, %v1114_v56  ;;  %v4851_v24 = vld [vmem:[#allocation7 + $0x408] sm:$0xf0]  ;;  %v4068_v56 = vld [vmem:[#allocation7 + $0x794] sm:$0xf0] }
 0x142   : > { %v1047_v34 = vpop.f32.mrf.mxu2  ;;  %v1123_v62 = vsel %vm1120_vm11, %v1122_v59, %v1118_v60  ;;  %v4231_v29 = vor.u32 %v4851_v24, %v4230_v23  ;;  %v4042_v59 = vld [vmem:[#allocation7 + $0x6b0] sm:$0xf]  ;;  %v4805_v60 = vld [vmem:[#allocation7 + $0x6f8] sm:$0xf0]  ;;  %v4790_v23 = vld [vmem:[#allocation7 + $0x584] sm:$0xf] }
 0x143   : > { %v1048_v42 = vadd.f32 %v1047_v34, %v901_v25  ;;  %v1060_v43 = vpop.f32.mrf.mxu3  ;;  %v4850_v25 = vld [vmem:[#allocation7 + $0x3c4] sm:$0xf]  ;;  %v4090_v34 = vld [vmem:[#allocation7 + $0x7e0] sm:$0xf]  ;;  %v4043_v8 = vor.u32 %v4805_v60, %v4042_v59  ;;  %v3996_v24 = vld [vmem:[#allocation7 + $0x5cc] sm:$0xf0] }
 0x144   : > { %v4235_v33 = vor.u32 %v4850_v25, %v4232_v32  ;;  %2231 = vmatpush.bf16.msrb.mxu0 %v4231_v29  ;;  %v3970_v29 = vld [vmem:[#allocation7 + $0x4e8] sm:$0xf]  ;;  %v4787_v32 = vld [vmem:[#allocation7 + $0x530] sm:$0xf0] }
 0x145   : > { %v1061_v49 = vadd.f32 %v1060_v43, %v1048_v42  ;;  %v4848_v42 = vld [vmem:[#allocation7 + $0x32c] sm:$0xf]  ;;  %v4814_v43 = vld [vmem:[#allocation7 + $0x7e4] sm:$0xf] }
 0x146   : > { %2289 = vmatpush.bf16.msrb.mxu2 %v4235_v33  ;;  %v4095_v52 = vor.u32 %v4814_v43, %v4092_v46  ;;  %v4784_v33 = vld [vmem:[#allocation7 + $0x4ec] sm:$0xf]  ;;  %v4184_v46 = vld [vmem:[#allocation7 + $0x7c] sm:$0xf0] }
 0x147   : > { %v3759_v51 = vmul.f32 -1.442695, %v1061_v49  ;;  %v4227_v49 = vor.u32 %v4848_v42, %v4224_v48  ;;  %v4302_v42 = vld [vmem:[#allocation7 + $0x918] sm:$0xf]  ;;  %v4868_v48 = vld [vmem:[#allocation7 + $0x91c] sm:$0xf] }
 0x148   : > { %2232 = vmatpush.bf16.msrb.mxu0 %v4223_v47  ;;  %v4869_v47 = vld [vmem:[#allocation7 + $0x960] sm:$0xf0] }
 0x149   : > { %5057 = vpow2.f32 %v3759_v51  ;;  %v4091_v51 = vor.u32 %v4817_v36, %v4090_v34  ;;  %v3999_v36 = vor.u32 %v4790_v23, %v3996_v24  ;;  %v4256_v23 = vld [vmem:[#allocation7 + $0x5d4] sm:$0xf0] }
 0x14a   : > { %v1049_v53 = vpop.f32.mrf.mxu2  ;;  %5059 = vtanh.f32 %v1035_v54  ;;  %v4847_v54 = vld [vmem:[#allocation7 + $0x2d8] sm:$0xf0]  ;;  %2290 = vmatpush.bf16.msrb.mxu2 %v4227_v49  ;;  %v4304_v49 = vld [vmem:[#allocation7 + $0x964] sm:$0xf0] }
 0x14b   : > { %v1062_v30 = vpop.f32.mrf.mxu3  ;;  %v4214_v53 = vld [vmem:[#allocation7 + $0x290] sm:$0xf] }
 0x14c   : > { %v4846_v30 = vld [vmem:[#allocation7 + $0x294] sm:$0xf]  ;;  %v4215_v57 = vor.u32 %v4847_v54, %v4214_v53  ;;  %v4831_v53 = vld [vmem:[%s5481_s16 + $0x4] sm:$0xf0]  ;;  %v4303_v54 = vor.u32 %v4869_v47, %v4302_v42 }
 0x14e   : > { %2233 = vmatpush.bf16.msrb.mxu0 %v4215_v57  ;;  %v4866_v57 = vld [vmem:[#allocation7 + $0x884] sm:$0xf] }
 0x14f   : > { %v5058_v58 = vpop.eup %5057 }
 0x150   : > { %v1129_v31 = vadd.f32 1.0, %v5058_v58  ;;  %v5060_v61 = vpop.eup %5059  ;;  %v4216_v58 = vld [vmem:[#allocation7 + $0x2dc] sm:$0xf0] }
 0x151   : > { %v1145_v63 = vmul.f32 %v5060_v61, %v1123_v62  ;;  %v4067_v61 = vor.u32 %v4811_v50, %v4066_v45  ;;  %v4071_v62 = vor.u32 %v4808_v55, %v4068_v56  ;;  %v4187_v45 = vor.u32 %v4838_v40, %v4184_v46  ;;  %v4150_v50 = vld [vmem:[%s5481_s16] sm:$0xf]  ;;  %v4867_v56 = vld [vmem:[#allocation7 + $0x8c8] sm:$0xf0] }
 0x152   : > { %5061 = vrcp.f32 %v1129_v31  ;;  %v1141_v3 = vand.u32 2147483648, %v1129_v31  ;;  %v1139_v5 = vand.u32 2147483647, %v1129_v31  ;;  %vm1135_vm13 = vweird.f32 %v1129_v31  ;;  %v4294_v55 = vld [vmem:[#allocation7 + $0x880] sm:$0xf] }
 0x153   : > { %5063 = vtanh.f32 %v1145_v63  ;;  %v4845_v63 = vld [vmem:[#allocation7 + $0x240] sm:$0xf0]  ;;  %v4295_v59 = vor.u32 %v4867_v56, %v4294_v55  ;;  %v4166_v40 = vld [vmem:[%s5481_s16 + $0x20] sm:$0xf] }
 0x154   : > { %v1142_v6 = vor.u32 1.1754944e-38, %v1141_v3  ;;  %vm1140_vm15 = vcmp.eq.f32.partialorder %v1139_v5, 8.507059e+37  ;;  %v4044_v3 = vld [vmem:[#allocation7 + $0x6fc] sm:$0xf0]  ;;  %v4208_v5 = vld [vmem:[#allocation7 + $0x244] sm:$0xf0] }
 0x158   : > { %v5062_v44 = vpop.eup %5061 }
 0x159   : > { %v1131_v0 = vmul.f32 %v5062_v44, %v1129_v31  ;;  %vm1136_vm12 = vweird.f32 %v5062_v44  ;;  %v5064_v15 = vpop.eup %5063  ;;  %v4219_v31 = vor.u32 %v4846_v30, %v4216_v58  ;;  %v4307_v30 = vor.u32 %v4868_v48, %v4304_v49  ;;  %v4296_v58 = vld [vmem:[#allocation7 + $0x8cc] sm:$0xf0]  ;;  %v4832_v49 = vld [vmem:[%s5481_s16 + $0x14] sm:$0xf] }
 0x15a   : > { %vm1137_vm14 = vmor %vm1135_vm13, %vm1136_vm12  ;;  %v4299_v60 = vor.u32 %v4866_v57, %v4296_v58  ;;  %v4834_v57 = vld [vmem:[%s5481_s16 + $0x24] sm:$0xf]  ;;  %v4168_v58 = vld [vmem:[%s5481_s16 + $0x28] sm:$0xf0] }
 0x15b   : > { %v1132_v1 = vsub.f32 1.0, %v1131_v0  ;;  %v4844_v0 = vld [vmem:[#allocation7 + $0x1fc] sm:$0xf]  ;;  %2291 = vmatpush.bf16.msrb.mxu2 %v4219_v31  ;;  %v4151_v31 = vor.u32 %v4831_v53, %v4150_v50 }
 0x15d   : > { %v1133_v4 = vmul.f32 %v5062_v44, %v1132_v1  ;;  %v4802_v1 = vld [vmem:[#allocation7 + $0x6b4] sm:$0xf] }
 0x15e   : > { %v4047_v35 = vor.u32 %v4802_v1, %v4044_v3  ;;  %v4278_v3 = vld [vmem:[#allocation7 + $0x750] sm:$0xf] }
 0x15f   : > { %v1134_v2 = vadd.f32 %v5062_v44, %v1133_v4 }
 0x161   : > { %v1138_v11 = vsel %vm1137_vm14, %v5062_v44, %v1134_v2  ;;  %v4206_v44 = vld [vmem:[#allocation7 + $0x1f8] sm:$0xf]  ;;  %v4211_v2 = vor.u32 %v4844_v0, %v4208_v5  ;;  %v4862_v5 = vld [vmem:[#allocation7 + $0x754] sm:$0xf] }
 0x162   : > { %v1143_v16 = vsel %vm1140_vm15, %v1142_v6, %v1138_v11  ;;  %v4207_v4 = vor.u32 %v4845_v63, %v4206_v44  ;;  %v4018_v6 = vld [vmem:[#allocation7 + $0x618] sm:$0xf]  ;;  %v4796_v11 = vld [vmem:[#allocation7 + $0x61c] sm:$0xf]  ;;  %v4864_v44 = vld [vmem:[#allocation7 + $0x7ec] sm:$0xf] }
 0x163   : > { %v1147_v18 = vmul.f32 %v5064_v15, %v1143_v16  ;;  %2292 = vmatpush.bf16.msrb.mxu2 %v4211_v2  ;;  %v4203_v15 = vor.u32 %v4842_v10, %v4200_v14  ;;  %v3994_v16 = vld [vmem:[#allocation7 + $0x580] sm:$0xf]  ;;  %v4023_v19 = vor.u32 %v4796_v11, %v4020_v12  ;;  %v4288_v63 = vld [vmem:[#allocation7 + $0x834] sm:$0xf0]  ;;  %v4158_v10 = vld [vmem:[%s5481_s16 + $0x10] sm:$0xf]  ;;  %v4275_v12 = vor.u32 %v4860_v38, %v4272_v9 }
 0x164   : > { %2234 = vmatpush.bf16.msrb.mxu0 %v4207_v4  ;;  %v3995_v34 = vor.u32 %v4793_v17, %v3994_v16  ;;  %v4291_v1 = vor.u32 %v4864_v44, %v4288_v63  ;;  %v4863_v4 = vld [vmem:[#allocation7 + $0x798] sm:$0xf0]  ;;  %v4280_v2 = vld [vmem:[#allocation7 + $0x79c] sm:$0xf0]  ;;  %v4859_v14 = vld [vmem:[#allocation7 + $0x668] sm:$0xf0] }
 0x165   : > { %v5568_v26 = vpack.c.bf16 %v1147_v18, %v1147_v18  ;;  %v4019_v18 = vor.u32 %v4799_v7, %v4018_v6  ;;  %v4279_v6 = vor.u32 %v4863_v4, %v4278_v3  ;;  %v4283_v7 = vor.u32 %v4862_v5, %v4280_v2  ;;  %v4264_v16 = vld [vmem:[#allocation7 + $0x66c] sm:$0xf0]  ;;  %v4836_v44 = vld [vmem:[%s5481_s16 + $0x34] sm:$0xf]  ;;  %v4176_v63 = vld [vmem:[%s5481_s16 + $0x38] sm:$0xf0] }
 0x166   : > { %v4368_v3 = vld [vmem:[#allocation7 + $0x4ac] sm:$0xf0]  ;;  %v4366_v4 = vld [vmem:[#allocation7 + $0x460] sm:$0xf]  ;;  %v4885_v2 = vld [vmem:[#allocation7 + $0x4a8] sm:$0xf0] }
 0x167   : > { %1761 = vmatmul.bf16.vlgmr.msra.gmra.mxu1 %v5568_v26  ;;  %1787 = vmatmul.bf16.vlgmr.msra.gmra.mxu3 %v5568_v26  ;;  %v4883_v9 = vld [vmem:[#allocation7 + $0x410] sm:$0xf0] }
 0x168   : > { %1857 = vmatpush.bf16.msra.mxu1 %v4139_v21  ;;  %1883 = vmatpush.bf16.msra.mxu3 %v4143_v22  ;;  %v4841_v21 = vld [vmem:[#allocation7 + $0x110] sm:$0xf0]  ;;  %v4840_v22 = vld [vmem:[#allocation7 + $0xcc] sm:$0xf] }
 0x169   : > { %2235 = vmatpush.bf16.msrb.mxu0 %v4199_v13  ;;  %2293 = vmatpush.bf16.msrb.mxu2 %v4203_v15  ;;  %v4191_v25 = vor.u32 %v4841_v21, %v4190_v20  ;;  %v4195_v28 = vor.u32 %v4840_v22, %v4192_v27  ;;  %v4262_v13 = vld [vmem:[#allocation7 + $0x620] sm:$0xf]  ;;  %v4858_v15 = vld [vmem:[#allocation7 + $0x624] sm:$0xf]  ;;  %v4254_v20 = vld [vmem:[#allocation7 + $0x588] sm:$0xf] }
 0x16a   : > { %v4857_v21 = vld [vmem:[#allocation7 + $0x5d0] sm:$0xf0]  ;;  %v4856_v22 = vld [vmem:[#allocation7 + $0x58c] sm:$0xf]  ;;  %v4246_v27 = vld [vmem:[#allocation7 + $0x4f0] sm:$0xf] }
 0x16b   : > { %v4255_v24 = vor.u32 %v4857_v21, %v4254_v20 }
 0x16c   : > { %1858 = vmatpush.bf16.msra.mxu1 %v4115_v37  ;;  %1884 = vmatpush.bf16.msra.mxu3 %v4119_v39  ;;  %v4182_v37 = vld [vmem:[#allocation7 + $0x30] sm:$0xf]  ;;  %v4839_v39 = vld [vmem:[#allocation7 + $0x78] sm:$0xf0] }
 0x16d   : > { %2236 = vmatpush.bf16.msrb.mxu0 %v4191_v25  ;;  %2294 = vmatpush.bf16.msrb.mxu2 %v4195_v28  ;;  %v4183_v43 = vor.u32 %v4839_v39, %v4182_v37  ;;  %v4259_v25 = vor.u32 %v4856_v22, %v4256_v23  ;;  %v4855_v28 = vld [vmem:[#allocation7 + $0x538] sm:$0xf0]  ;;  %v4152_v37 = vld [vmem:[%s5481_s16 + $0x8] sm:$0xf0]  ;;  %v4344_v22 = vld [vmem:[#allocation7 + $0x2e4] sm:$0xf0] }
 0x16e   : > { %v4900_v23 = vld [vmem:[#allocation7 + $0x924] sm:$0xf] }
 0x170   : > { %1859 = vmatpush.bf16.msra.mxu1 %v4091_v51  ;;  %1885 = vmatpush.bf16.msra.mxu3 %v4095_v52  ;;  %v3971_v51 = vor.u32 %v4787_v32, %v3970_v29  ;;  %v3975_v52 = vor.u32 %v4784_v33, %v3972_v41  ;;  %v4854_v29 = vld [vmem:[#allocation7 + $0x4f4] sm:$0xf]  ;;  %v4248_v32 = vld [vmem:[#allocation7 + $0x53c] sm:$0xf0]  ;;  %v4247_v33 = vor.u32 %v4855_v28, %v4246_v27  ;;  %v4835_v41 = vld [vmem:[%s5481_s16 + $0x24] sm:$0xf0] }
 0x171   : > { %2237 = vmatpush.bf16.msrb.mxu0 %v4183_v43  ;;  %2295 = vmatpush.bf16.msrb.mxu2 %v4187_v45  ;;  %v4167_v43 = vor.u32 %v4835_v41, %v4166_v40  ;;  %v4160_v45 = vld [vmem:[%s5481_s16 + $0x18] sm:$0xf0]  ;;  %v4336_v40 = vld [vmem:[#allocation7 + $0x24c] sm:$0xf0] }
 0x172   : > { %v4163_v53 = vor.u32 %v4832_v49, %v4160_v45 }
 0x174   : > { %1860 = vmatpush.bf16.msra.mxu1 %v4067_v61  ;;  %1886 = vmatpush.bf16.msra.mxu3 %v4071_v62  ;;  %v4286_v61 = vld [vmem:[#allocation7 + $0x7e8] sm:$0xf]  ;;  %v4865_v62 = vld [vmem:[#allocation7 + $0x830] sm:$0xf0] }
 0x175   : > { %2238 = vmatmul.bf16.vlgmr.msrb.gmra.mxu0 %v4151_v31  ;;  %2296 = vmatmul.bf16.vlgmr.msrb.gmra.mxu2 %v4151_v31  ;;  %v4287_v0 = vor.u32 %v4865_v62, %v4286_v61 }
 0x177   : > { %1813 = vmatmul.bf16.vlgmr.msrb.gmra.mxu1 %v5568_v26  ;;  %1839 = vmatmul.bf16.vlgmr.msrb.gmra.mxu3 %v5568_v26 }
 0x178   : > { %1861 = vmatpush.bf16.msra.mxu1 %v4043_v8  ;;  %1887 = vmatpush.bf16.msra.mxu3 %v4047_v35  ;;  %v4270_v8 = vld [vmem:[#allocation7 + $0x6b8] sm:$0xf]  ;;  %v4861_v35 = vld [vmem:[#allocation7 + $0x700] sm:$0xf0] }
 0x179   : > { %v4271_v11 = vor.u32 %v4861_v35, %v4270_v8  ;;  %v4360_v8 = vld [vmem:[#allocation7 + $0x414] sm:$0xf0]  ;;  %v4358_v35 = vld [vmem:[#allocation7 + $0x3c8] sm:$0xf] }
 0x17c   : > { %1862 = vmatpush.bf16.msra.mxu1 %v4019_v18  ;;  %1888 = vmatpush.bf16.msra.mxu3 %v4023_v19  ;;  %v4263_v18 = vor.u32 %v4859_v14, %v4262_v13  ;;  %v4267_v19 = vor.u32 %v4858_v15, %v4264_v16  ;;  %v4352_v14 = vld [vmem:[#allocation7 + $0x37c] sm:$0xf0]  ;;  %v5604_v15 = vld [vmem:[#allocation8 + $0x6] sm:$0x3f] }
 0x17d   : > { %v1728_v20 = vperm.slane %v5604_v15, 0 }
 0x180   : > { %1863 = vmatpush.bf16.msra.mxu1 %v3995_v34  ;;  %1889 = vmatpush.bf16.msra.mxu3 %v3999_v36  ;;  %v4251_v34 = vor.u32 %v4854_v29, %v4248_v32  ;;  %v4830_v36 = vld [vmem:[%s5481_s16 + $0x4] sm:$0xf]  ;;  %v4901_v29 = vld [vmem:[#allocation7 + $0x968] sm:$0xf0] }
 0x181   : > { %v4155_v42 = vor.u32 %v4830_v36, %v4152_v37  ;;  %v4876_v36 = vld [vmem:[#allocation7 + $0x204] sm:$0xf] }
 0x184   : > { %1864 = vmatpush.bf16.msra.mxu1 %v3971_v51  ;;  %1890 = vmatpush.bf16.msra.mxu3 %v3975_v52  ;;  %v4174_v51 = vld [vmem:[%s5481_s16 + $0x30] sm:$0xf]  ;;  %v4837_v52 = vld [vmem:[%s5481_s16 + $0x34] sm:$0xf0] }
 0x187   : > { %1865 = vmatmul.bf16.vlgmr.msra.gmra.mxu1 %v5568_v26  ;;  %1891 = vmatmul.bf16.vlgmr.msra.gmra.mxu3 %v5568_v26  ;;  %v4833_v26 = vld [vmem:[%s5481_s16 + $0x14] sm:$0xf0]  ;;  %s3179_s16 = scalar_lea.sflag [#allocation4], %s5476_s28 }
 0x188   : > { %2259 = vmatpush.bf16.msrb.mxu1 %v4303_v54  ;;  %2317 = vmatpush.bf16.msrb.mxu3 %v4307_v30  ;;  %v4159_v17 = vor.u32 %v4833_v26, %v4158_v10  ;;  %v4175_v54 = vor.u32 %v4837_v52, %v4174_v51  ;;  %v4359_v10 = vor.u32 %v4883_v9, %v4358_v35  ;;  %v4350_v26 = vld [vmem:[#allocation7 + $0x330] sm:$0xf]  ;;  %v4899_v51 = vld [vmem:[#allocation7 + $0x8d0] sm:$0xf0]  ;;  %v4408_v35 = vld [vmem:[#allocation7 + $0x7a4] sm:$0xf0] }
 0x18a   : > { %2243 = vmatmul.bf16.gmra.mxu0 %v4159_v17  ;;  %2301 = vmatmul.bf16.gmra.mxu2 %v4159_v17  ;;  %v4342_v17 = vld [vmem:[#allocation7 + $0x298] sm:$0xf] }
 0x18c   : > { %2260 = vmatpush.bf16.msrb.mxu1 %v4295_v59  ;;  %2318 = vmatpush.bf16.msrb.mxu3 %v4299_v60  ;;  %v4171_v59 = vor.u32 %v4834_v57, %v4168_v58  ;;  %v4328_v58 = vld [vmem:[#allocation7 + $0x1b4] sm:$0xf0] }
 0x190   : > { %2261 = vmatpush.bf16.msrb.mxu1 %v4287_v0  ;;  %2319 = vmatpush.bf16.msrb.mxu3 %v4291_v1  ;;  %v4179_v0 = vor.u32 %v4836_v44, %v4176_v63  ;;  %v4884_v1 = vld [vmem:[#allocation7 + $0x464] sm:$0xf]  ;;  %v4414_v63 = vld [vmem:[#allocation7 + $0x7f0] sm:$0xf] }
 0x191   : > { %v4371_v5 = vor.u32 %v4884_v1, %v4368_v3  ;;  %v4318_v3 = vld [vmem:[#allocation7 + $0xd0] sm:$0xf] }
 0x193   : > { %2582 = vmatpush.bf16.msra.mxu2 %v4371_v5  ;;  %v4872_v5 = vld [vmem:[#allocation7 + $0xd4] sm:$0xf] }
 0x194   : > { %2262 = vmatpush.bf16.msrb.mxu1 %v4279_v6  ;;  %2320 = vmatpush.bf16.msrb.mxu3 %v4283_v7  ;;  %v4367_v6 = vor.u32 %v4885_v2, %v4366_v4  ;;  %v4882_v7 = vld [vmem:[#allocation7 + $0x3cc] sm:$0xf]  ;;  %v4873_v4 = vld [vmem:[#allocation7 + $0x118] sm:$0xf0] }
 0x195   : > { %v4363_v38 = vor.u32 %v4882_v7, %v4360_v8  ;;  %v4320_v7 = vld [vmem:[#allocation7 + $0x11c] sm:$0xf0]  ;;  %v4894_v8 = vld [vmem:[#allocation7 + $0x75c] sm:$0xf] }
 0x196   : > { %2556 = vmatpush.bf16.msra.mxu0 %v4367_v6  ;;  %v4319_v6 = vor.u32 %v4873_v4, %v4318_v3  ;;  %v4323_v9 = vor.u32 %v4872_v5, %v4320_v7  ;;  %v4480_v4 = vld [vmem:[#allocation7 + $0x384] sm:$0xf0]  ;;  %v4382_v5 = vld [vmem:[#allocation7 + $0x590] sm:$0xf] }
 0x197   : > { %2583 = vmatpush.bf16.msra.mxu2 %v4363_v38  ;;  %v4406_v38 = vld [vmem:[#allocation7 + $0x758] sm:$0xf] }
 0x198   : > { %2263 = vmatpush.bf16.msrb.mxu1 %v4271_v11  ;;  %2321 = vmatpush.bf16.msrb.mxu3 %v4275_v12  ;;  %v5582_v39 = vpop.f32.mrf.mxu0  ;;  %v4881_v11 = vld [vmem:[#allocation7 + $0x378] sm:$0xf0]  ;;  %v4880_v12 = vld [vmem:[#allocation7 + $0x334] sm:$0xf] }
 0x199   : > { %v4351_v13 = vor.u32 %v4881_v11, %v4350_v26  ;;  %v4355_v16 = vor.u32 %v4880_v12, %v4352_v14  ;;  %v1750_v41 = vadd.f32 %v5582_v39, %v1728_v20  ;;  %v4896_v39 = vld [vmem:[#allocation7 + $0x7f4] sm:$0xf]  ;;  %v4411_v11 = vor.u32 %v4894_v8, %v4408_v35  ;;  %v4895_v12 = vld [vmem:[#allocation7 + $0x7a0] sm:$0xf0]  ;;  %v4310_v14 = vld [vmem:[#allocation7 + $0x38] sm:$0xf] }
 0x19a   : > { %2248 = vmatmul.bf16.gmra.mxu0 %v4167_v43  ;;  %2306 = vmatmul.bf16.gmra.mxu2 %v4167_v43  ;;  %v4424_v43 = vld [vmem:[#allocation7 + $0x8d4] sm:$0xf0]  ;;  %v4494_v20 = vld [vmem:[#allocation7 + $0x468] sm:$0xf]  ;;  %v4889_v35 = vld [vmem:[#allocation7 + $0x5d8] sm:$0xf0] }
 0x19b   : > { %2557 = vmatpush.bf16.msra.mxu0 %v4359_v10  ;;  %2584 = vmatpush.bf16.msra.mxu2 %v4355_v16  ;;  %v1730_v10 = vperm.slane %v5604_v15, 2  ;;  %v4871_v16 = vld [vmem:[#allocation7 + $0x80] sm:$0xf0] }
 0x19c   : > { %2264 = vmatpush.bf16.msrb.mxu1 %v4263_v18  ;;  %2322 = vmatpush.bf16.msrb.mxu3 %v4267_v19  ;;  %v4879_v18 = vld [vmem:[#allocation7 + $0x2e0] sm:$0xf0]  ;;  %v4878_v19 = vld [vmem:[#allocation7 + $0x29c] sm:$0xf] }
 0x19d   : > { %v4343_v21 = vor.u32 %v4879_v18, %v4342_v17  ;;  %v4347_v27 = vor.u32 %v4878_v19, %v4344_v22  ;;  %v4870_v17 = vld [vmem:[#allocation7 + $0x3c] sm:$0xf]  ;;  %v4311_v18 = vor.u32 %v4871_v16, %v4310_v14  ;;  %v4312_v19 = vld [vmem:[#allocation7 + $0x84] sm:$0xf0]  ;;  %v4470_v14 = vld [vmem:[#allocation7 + $0x2a0] sm:$0xf] }
 0x19e   : > { %v5586_v46 = vpop.f32.mrf.mxu2 }
 0x19f   : > { %2558 = vmatpush.bf16.msra.mxu0 %v4351_v13  ;;  %2585 = vmatpush.bf16.msra.mxu2 %v4347_v27  ;;  %v4407_v13 = vor.u32 %v4895_v12, %v4406_v38  ;;  %v4888_v38 = vld [vmem:[#allocation7 + $0x594] sm:$0xf] }
 0x1a0   : > { %2265 = vmatpush.bf16.msrb.mxu1 %v4255_v24  ;;  %2323 = vmatpush.bf16.msrb.mxu3 %v4259_v25  ;;  %v1751_v47 = vpop.f32.mrf.mxu0  ;;  %v4432_v24 = vld [vmem:[#allocation7 + $0x96c] sm:$0xf0]  ;;  %v4430_v25 = vld [vmem:[#allocation7 + $0x920] sm:$0xf] }
 0x1a1   : > { %v4435_v28 = vor.u32 %v4900_v23, %v4432_v24  ;;  %v4431_v32 = vor.u32 %v4901_v29, %v4430_v25  ;;  %v4422_v47 = vld [vmem:[#allocation7 + $0x888] sm:$0xf]  ;;  %v4892_v23 = vld [vmem:[#allocation7 + $0x6c4] sm:$0xf]  ;;  %v4400_v24 = vld [vmem:[#allocation7 + $0x70c] sm:$0xf0]  ;;  %v4315_v25 = vor.u32 %v4870_v17, %v4312_v19 }
 0x1a2   : > { %v4910_v19 = vld [vmem:[#allocation7 + $0x2a4] sm:$0xf] }
 0x1a3   : > { %2559 = vmatpush.bf16.msra.mxu0 %v4343_v21  ;;  %v4917_v21 = vld [vmem:[#allocation7 + $0x4b0] sm:$0xf0]  ;;  %v4905_v17 = vld [vmem:[#allocation7 + $0x120] sm:$0xf0] }
 0x1a4   : > { %2266 = vmatpush.bf16.msrb.mxu1 %v4247_v33  ;;  %2324 = vmatpush.bf16.msrb.mxu3 %v4251_v34  ;;  %v4334_v33 = vld [vmem:[#allocation7 + $0x200] sm:$0xf]  ;;  %v4877_v34 = vld [vmem:[#allocation7 + $0x248] sm:$0xf0]  ;;  %v4495_v27 = vor.u32 %v4917_v21, %v4494_v20  ;;  %v4472_v20 = vld [vmem:[#allocation7 + $0x2ec] sm:$0xf0] }
 0x1a5   : > { %v4335_v37 = vor.u32 %v4877_v34, %v4334_v33  ;;  %v4496_v33 = vld [vmem:[#allocation7 + $0x4b4] sm:$0xf0]  ;;  %v4398_v34 = vld [vmem:[#allocation7 + $0x6c0] sm:$0xf] }
 0x1a6   : > { %v1777_v48 = vpop.f32.mrf.mxu2 }
 0x1a7   : > { %2267 = vmatmul.bf16.vlgmr.msrb.gmra.mxu1 %v4155_v42  ;;  %2325 = vmatmul.bf16.vlgmr.msrb.gmra.mxu3 %v4155_v42  ;;  %v4898_v42 = vld [vmem:[#allocation7 + $0x88c] sm:$0xf]  ;;  %v4339_v48 = vor.u32 %v4876_v36, %v4336_v40  ;;  %v1729_v40 = vperm.slane %v5604_v15, 1 }
 0x1a8   : > { %v5590_v50 = vpop.f32.mrf.mxu0  ;;  %2595 = vmatpush.bf16.msra.mxu3 %v4435_v28  ;;  %2569 = vmatpush.bf16.msra.mxu1 %v4431_v32  ;;  %v4427_v45 = vor.u32 %v4898_v42, %v4424_v43  ;;  %v4916_v28 = vld [vmem:[#allocation7 + $0x46c] sm:$0xf]  ;;  %v4403_v32 = vor.u32 %v4892_v23, %v4400_v24  ;;  %v4486_v42 = vld [vmem:[#allocation7 + $0x3d0] sm:$0xf]  ;;  %v4374_v23 = vld [vmem:[#allocation7 + $0x4f8] sm:$0xf] }
 0x1a9   : > { %2560 = vmatpush.bf16.msra.mxu0 %v4335_v37  ;;  %2586 = vmatpush.bf16.msra.mxu2 %v4339_v48  ;;  %v4499_v36 = vor.u32 %v4916_v28, %v4496_v33  ;;  %v4893_v37 = vld [vmem:[#allocation7 + $0x708] sm:$0xf0]  ;;  %v1802_v43 = vadd.f32 %v5590_v50, %v1730_v10  ;;  %v4915_v48 = vld [vmem:[#allocation7 + $0x418] sm:$0xf0]  ;;  %v1776_v50 = vadd.f32 %v5586_v46, %v1729_v40  ;;  %v4887_v24 = vld [vmem:[#allocation7 + $0x540] sm:$0xf0] }
 0x1aa   : > { %2253 = vmatmul.bf16.gmra.mxu0 %v4175_v54  ;;  %2311 = vmatmul.bf16.gmra.mxu2 %v4175_v54  ;;  %v4326_v54 = vld [vmem:[#allocation7 + $0x168] sm:$0xf]  ;;  %v4932_v40 = vld [vmem:[#allocation7 + $0x92c] sm:$0xf] }
 0x1ab   : > { %v4376_v33 = vld [vmem:[#allocation7 + $0x544] sm:$0xf0] }
 0x1ac   : > { %2596 = vmatpush.bf16.msra.mxu3 %v4427_v45  ;;  %v4488_v45 = vld [vmem:[#allocation7 + $0x41c] sm:$0xf0] }
 0x1ae   : > { %v5594_v30 = vpop.f32.mrf.mxu2 }
 0x1b0   : > { %v1803_v55 = vpop.f32.mrf.mxu0 }
 0x1b1   : > { %v4875_v55 = vld [vmem:[#allocation7 + $0x1b0] sm:$0xf0] }
 0x1b2   : > { %v4327_v57 = vor.u32 %v4875_v55, %v4326_v54  ;;  %v4390_v55 = vld [vmem:[#allocation7 + $0x628] sm:$0xf] }
 0x1b4   : > { %2561 = vmatpush.bf16.msra.mxu0 %v4327_v57 }
 0x1b6   : > { %v1829_v56 = vpop.f32.mrf.mxu2 }
 0x1b7   : > { %2272 = vmatmul.bf16.gmra.mxu1 %v4163_v53  ;;  %2330 = vmatmul.bf16.gmra.mxu3 %v4163_v53  ;;  %v4423_v53 = vor.u32 %v4899_v51, %v4422_v47  ;;  %v4874_v56 = vld [vmem:[#allocation7 + $0x16c] sm:$0xf]  ;;  %v4399_v47 = vor.u32 %v4893_v37, %v4398_v34  ;;  %v1731_v51 = vperm.slane %v5604_v15, 3  ;;  %v4558_v34 = vld [vmem:[#allocation7 + $0x928] sm:$0xf] }
 0x1b8   : > { %v5598_v31 = vpop.f32.mrf.mxu0  ;;  %2562 = vmatpush.bf16.msra.mxu0 %v4319_v6  ;;  %v4933_v37 = vld [vmem:[#allocation7 + $0x970] sm:$0xf0] }
 0x1b9   : > { %2570 = vmatpush.bf16.msra.mxu1 %v4423_v53  ;;  %v4487_v53 = vor.u32 %v4915_v48, %v4486_v42  ;;  %v1828_v46 = vadd.f32 %v5594_v30, %v1731_v51  ;;  %v4908_v51 = vld [vmem:[#allocation7 + $0x20c] sm:$0xf] }
 0x1bc   : > { %2563 = vmatpush.bf16.msra.mxu0 %v4311_v18 }
 0x1be   : > { %v5600_v60 = vpop.f32.mrf.mxu2 }
 0x1c0   : > { %v1855_v61 = vpop.f32.mrf.mxu0  ;;  %2810 = vmatpush.bf16.msrb.mxu0 %v4495_v27 }
 0x1c1   : > { %v4416_v61 = vld [vmem:[#allocation7 + $0x83c] sm:$0xf0] }
 0x1c2   : > { %v4419_v44 = vor.u32 %v4896_v39, %v4416_v61  ;;  %v4890_v39 = vld [vmem:[#allocation7 + $0x62c] sm:$0xf]  ;;  %v4392_v61 = vld [vmem:[#allocation7 + $0x674] sm:$0xf0] }
 0x1c4   : > { %2597 = vmatpush.bf16.msra.mxu3 %v4419_v44  ;;  %2811 = vmatpush.bf16.msrb.mxu0 %v4487_v53  ;;  %v4478_v44 = vld [vmem:[#allocation7 + $0x338] sm:$0xf] }
 0x1c6   : > { %v1881_v62 = vpop.f32.mrf.mxu2 }
 0x1c7   : > { %2277 = vmatmul.bf16.gmra.mxu1 %v4171_v59  ;;  %2335 = vmatmul.bf16.gmra.mxu3 %v4171_v59  ;;  %v4331_v62 = vor.u32 %v4874_v56, %v4328_v58  ;;  %v4891_v56 = vld [vmem:[#allocation7 + $0x670] sm:$0xf0] }
 0x1c8   : > { %2598 = vmatpush.bf16.msra.mxu3 %v4411_v11 }
 0x1c9   : > { %2587 = vmatpush.bf16.msra.mxu2 %v4331_v62  ;;  %v4395_v62 = vor.u32 %v4890_v39, %v4392_v61  ;;  %v4931_v39 = vld [vmem:[#allocation7 + $0x8d8] sm:$0xf0]  ;;  %v4552_v61 = vld [vmem:[#allocation7 + $0x8dc] sm:$0xf0] }
 0x1cc   : > { %2599 = vmatpush.bf16.msra.mxu3 %v4403_v32  ;;  %v4375_v32 = vor.u32 %v4887_v24, %v4374_v23  ;;  %v4534_v23 = vld [vmem:[#allocation7 + $0x760] sm:$0xf]  ;;  %v4927_v24 = vld [vmem:[#allocation7 + $0x7a8] sm:$0xf0] }
 0x1cd   : > { %2588 = vmatpush.bf16.msra.mxu2 %v4323_v9  ;;  %v4384_v9 = vld [vmem:[#allocation7 + $0x5dc] sm:$0xf0] }
 0x1d0   : > { %2600 = vmatpush.bf16.msra.mxu3 %v4395_v62 }
 0x1d1   : > { %2589 = vmatpush.bf16.msra.mxu2 %v4315_v25  ;;  %v4886_v25 = vld [vmem:[#allocation7 + $0x4fc] sm:$0xf] }
 0x1d5   : > { %2868 = vmatpush.bf16.msrb.mxu2 %v4499_v36  ;;  %v4379_v36 = vor.u32 %v4886_v25, %v4376_v33  ;;  %v4926_v25 = vld [vmem:[#allocation7 + $0x764] sm:$0xf]  ;;  %v4535_v33 = vor.u32 %v4927_v24, %v4534_v23 }
 0x1d7   : > { %2282 = vmatmul.bf16.gmra.mxu1 %v4179_v0  ;;  %2340 = vmatmul.bf16.gmra.mxu3 %v4179_v0  ;;  %v4897_v0 = vld [vmem:[#allocation7 + $0x838] sm:$0xf0] }
 0x1d8   : > { %v4415_v1 = vor.u32 %v4897_v0, %v4414_v63  ;;  %v4913_v63 = vld [vmem:[#allocation7 + $0x380] sm:$0xf0]  ;;  %v4912_v0 = vld [vmem:[#allocation7 + $0x33c] sm:$0xf] }
 0x1d9   : > { %v4479_v3 = vor.u32 %v4913_v63, %v4478_v44  ;;  %v4483_v8 = vor.u32 %v4912_v0, %v4480_v4  ;;  %v4454_v63 = vld [vmem:[#allocation7 + $0x170] sm:$0xf]  ;;  %v4907_v0 = vld [vmem:[#allocation7 + $0x1b8] sm:$0xf0] }
 0x1da   : > { %2571 = vmatpush.bf16.msra.mxu1 %v4415_v1 }
 0x1db   : > { %2812 = vmatpush.bf16.msrb.mxu0 %v4479_v3 }
 0x1de   : > { %2572 = vmatpush.bf16.msra.mxu1 %v4407_v13  ;;  %v4387_v13 = vor.u32 %v4888_v38, %v4384_v9  ;;  %v1733_v38 = vperm.slane %v5604_v15, 5 }
 0x1e0   : > { %2601 = vmatpush.bf16.msra.mxu3 %v4387_v13  ;;  %v4928_v13 = vld [vmem:[#allocation7 + $0x7fc] sm:$0xf] }
 0x1e2   : > { %2573 = vmatpush.bf16.msra.mxu1 %v4399_v47  ;;  %v4559_v47 = vor.u32 %v4933_v37, %v4558_v34  ;;  %v4536_v34 = vld [vmem:[#allocation7 + $0x7ac] sm:$0xf0] }
 0x1e4   : > { %v1762_v49 = vpop.f32.mrf.mxu1  ;;  %2602 = vmatpush.bf16.msra.mxu3 %v4379_v36  ;;  %v4438_v36 = vld [vmem:[#allocation7 + $0x40] sm:$0xf] }
 0x1e5   : > { %v1763_v52 = vadd.f32 %v1762_v49, %v1750_v41  ;;  %v4914_v49 = vld [vmem:[#allocation7 + $0x3d4] sm:$0xf] }
 0x1e6   : > { %v4491_v54 = vor.u32 %v4914_v49, %v4488_v45  ;;  %v4462_v49 = vld [vmem:[#allocation7 + $0x208] sm:$0xf]  ;;  %v4909_v45 = vld [vmem:[#allocation7 + $0x250] sm:$0xf0] }
 0x1e7   : > { %v4144_v59 = vmul.f32 -1.442695, %v1763_v52 }
 0x1e8   : > { %2869 = vmatpush.bf16.msrb.mxu2 %v4491_v54 }
 0x1e9   : > { %5065 = vpow2.f32 %v4144_v59  ;;  %v4391_v59 = vor.u32 %v4891_v56, %v4390_v55  ;;  %v4463_v55 = vor.u32 %v4909_v45, %v4462_v49  ;;  %v4464_v56 = vld [vmem:[#allocation7 + $0x254] sm:$0xf0]  ;;  %v4440_v49 = vld [vmem:[#allocation7 + $0x8c] sm:$0xf0]  ;;  %v4526_v45 = vld [vmem:[#allocation7 + $0x6c8] sm:$0xf] }
 0x1ea   : > { %v5608_v2 = vpop.f32.mrf.mxu3 }
 0x1eb   : > { %v1789_v7 = vadd.f32 %v5608_v2, %v1776_v50  ;;  %2574 = vmatpush.bf16.msra.mxu1 %v4391_v59  ;;  %v4911_v2 = vld [vmem:[#allocation7 + $0x2e8] sm:$0xf0]  ;;  %v4467_v59 = vor.u32 %v4908_v51, %v4464_v56  ;;  %v4925_v51 = vld [vmem:[#allocation7 + $0x710] sm:$0xf0] }
 0x1ec   : > { %v1764_v26 = vpop.f32.mrf.mxu1  ;;  %2870 = vmatpush.bf16.msrb.mxu2 %v4483_v8  ;;  %v4471_v30 = vor.u32 %v4911_v2, %v4470_v14  ;;  %v4456_v8 = vld [vmem:[#allocation7 + $0x1bc] sm:$0xf0]  ;;  %v4544_v14 = vld [vmem:[#allocation7 + $0x844] sm:$0xf0] }
 0x1ed   : > { %v4383_v26 = vor.u32 %v4889_v35, %v4382_v5  ;;  %v4906_v5 = vld [vmem:[#allocation7 + $0x174] sm:$0xf]  ;;  %v4547_v2 = vor.u32 %v4928_v13, %v4544_v14  ;;  %v4920_v13 = vld [vmem:[#allocation7 + $0x59c] sm:$0xf] }
 0x1ee   : > { %2813 = vmatpush.bf16.msrb.mxu0 %v4471_v30  ;;  %v4459_v9 = vor.u32 %v4906_v5, %v4456_v8 }
 0x1ef   : > { %v5066_v22 = vpop.eup %5065  ;;  %2575 = vmatpush.bf16.msra.mxu1 %v4383_v26  ;;  %v1732_v26 = vperm.slane %v5604_v15, 4 }
 0x1f0   : > { %v5611_v29 = vadd.f32 1.0, %v5066_v22  ;;  %v4475_v22 = vor.u32 %v4910_v19, %v4472_v20  ;;  %v4448_v19 = vld [vmem:[#allocation7 + $0x124] sm:$0xf0]  ;;  %v1880_v20 = vadd.f32 %v5600_v60, %v1733_v38 }
 0x1f2   : > { %5067 = vrcp.f32 %v5611_v29  ;;  %v1790_v41 = vpop.f32.mrf.mxu3  ;;  %v1909_v57 = vand.u32 2147483647, %v5611_v29  ;;  %v1911_v11 = vand.u32 2147483648, %v5611_v29  ;;  %vm1905_vm2 = vweird.f32 %v5611_v29  ;;  %2871 = vmatpush.bf16.msrb.mxu2 %v4475_v22  ;;  %2814 = vmatpush.bf16.msrb.mxu0 %v4463_v55  ;;  %v5665_v55 = vpop.f32.mrf.mxu0 }
 0x1f3   : > { %v4560_v41 = vld [vmem:[#allocation7 + $0x974] sm:$0xf0]  ;;  %2576 = vmatpush.bf16.msra.mxu1 %v4375_v32 }
 0x1f4   : > { %v1814_v52 = vpop.f32.mrf.mxu1  ;;  %vm5626_vm0 = vcmp.eq.f32.partialorder %v1909_v57, 8.507059e+37  ;;  %v4563_v48 = vor.u32 %v4932_v40, %v4560_v41  ;;  %v1912_v53 = vor.u32 1.1754944e-38, %v1911_v11  ;;  %v4550_v57 = vld [vmem:[#allocation7 + $0x890] sm:$0xf]  ;;  %v4539_v41 = vor.u32 %v4926_v25, %v4536_v34 }
 0x1f5   : > { %v1815_v58 = vadd.f32 %v1814_v52, %v1802_v43  ;;  %v4551_v3 = vor.u32 %v4931_v39, %v4550_v57  ;;  %v4924_v57 = vld [vmem:[#allocation7 + $0x6cc] sm:$0xf]  ;;  %v4527_v39 = vor.u32 %v4925_v51, %v4526_v45  ;;  %v4504_v34 = vld [vmem:[#allocation7 + $0x54c] sm:$0xf0] }
 0x1f6   : > { %2897 = vmatpush.bf16.msrb.mxu3 %v4563_v48  ;;  %2872 = vmatpush.bf16.msrb.mxu2 %v4467_v59 }
 0x1f7   : > { %v4145_v1 = vmul.f32 -1.442695, %v1815_v58  ;;  %2839 = vmatpush.bf16.msrb.mxu1 %v4559_v47 }
 0x1f8   : > { %v5619_v6 = vpop.eup %5067 }
 0x1f9   : > { %v1901_v10 = vmul.f32 %v5619_v6, %v5611_v29  ;;  %5069 = vpow2.f32 %v4145_v1  ;;  %vm1906_vm1 = vweird.f32 %v5619_v6  ;;  %v4930_v29 = vld [vmem:[#allocation7 + $0x894] sm:$0xf] }
 0x1fa   : > { %v1840_v12 = vpop.f32.mrf.mxu3  ;;  %5071 = vtanh.f32 %v1789_v7  ;;  %vm5638_vm3 = vmor %vm1905_vm2, %vm1906_vm1  ;;  %v4555_v4 = vor.u32 %v4930_v29, %v4552_v61  ;;  %v4455_v7 = vor.u32 %v4907_v0, %v4454_v63  ;;  %2873 = vmatpush.bf16.msrb.mxu2 %v4459_v9  ;;  %v4518_v63 = vld [vmem:[#allocation7 + $0x630] sm:$0xf]  ;;  %v4923_v0 = vld [vmem:[#allocation7 + $0x678] sm:$0xf0]  ;;  %v2241_v24 = vpop.f32.mrf.mxu0 }
 0x1fb   : > { %v1902_v16 = vsub.f32 1.0, %v1901_v10  ;;  %v1841_v18 = vadd.f32 %v1840_v12, %v1828_v46  ;;  %v4542_v46 = vld [vmem:[#allocation7 + $0x7f8] sm:$0xf]  ;;  %v4929_v10 = vld [vmem:[#allocation7 + $0x840] sm:$0xf0]  ;;  %2840 = vmatpush.bf16.msrb.mxu1 %v4551_v3 }
 0x1fc   : > { %v1816_v21 = vpop.f32.mrf.mxu1  ;;  %2898 = vmatpush.bf16.msrb.mxu3 %v4555_v4  ;;  %2815 = vmatpush.bf16.msrb.mxu0 %v4455_v7  ;;  %v4543_v12 = vor.u32 %v4929_v10, %v4542_v46  ;;  %v4922_v3 = vld [vmem:[#allocation7 + $0x634] sm:$0xf]  ;;  %v4520_v4 = vld [vmem:[#allocation7 + $0x67c] sm:$0xf0] }
 0x1fd   : > { %v1903_v27 = vmul.f32 %v5619_v6, %v1902_v16  ;;  %v4146_v28 = vmul.f32 -1.442695, %v1841_v18  ;;  %v4446_v16 = vld [vmem:[#allocation7 + $0xd8] sm:$0xf]  ;;  %v4904_v18 = vld [vmem:[#allocation7 + $0xdc] sm:$0xf]  ;;  %v4523_v38 = vor.u32 %v4922_v3, %v4520_v4 }
 0x1fe   : > { %v4447_v21 = vor.u32 %v4905_v17, %v4446_v16  ;;  %v4451_v22 = vor.u32 %v4904_v18, %v4448_v19  ;;  %v4512_v18 = vld [vmem:[#allocation7 + $0x5e4] sm:$0xf0] }
 0x1ff   : > { %v5070_v42 = vpop.eup %5069  ;;  %v1904_v43 = vadd.f32 %v5619_v6, %v1903_v27  ;;  %5073 = vpow2.f32 %v4146_v28  ;;  %v1854_v27 = vadd.f32 %v5598_v31, %v1732_v26  ;;  %2841 = vmatpush.bf16.msrb.mxu1 %v4543_v12  ;;  %v4510_v26 = vld [vmem:[#allocation7 + $0x598] sm:$0xf]  ;;  %v4921_v12 = vld [vmem:[#allocation7 + $0x5e0] sm:$0xf0] }
 0x200   : > { %v5642_v54 = vadd.f32 1.0, %v5070_v42  ;;  %v5072_v50 = vpop.eup %5071  ;;  %2899 = vmatpush.bf16.msrb.mxu3 %v4547_v2  ;;  %2816 = vmatpush.bf16.msrb.mxu0 %v4447_v21  ;;  %v4903_v42 = vld [vmem:[#allocation7 + $0x88] sm:$0xf0]  ;;  %v4511_v21 = vor.u32 %v4921_v12, %v4510_v26 }
 0x201   : > { %v1908_v58 = vsel %vm5638_vm3, %v5619_v6, %v1904_v43  ;;  %2874 = vmatpush.bf16.msrb.mxu2 %v4451_v22  ;;  %v4902_v43 = vld [vmem:[#allocation7 + $0x44] sm:$0xf]  ;;  %v4439_v31 = vor.u32 %v4903_v42, %v4438_v36  ;;  %v4515_v22 = vor.u32 %v4920_v13, %v4512_v18 }
 0x202   : > { %v1913_v62 = vsel %vm5626_vm0, %v1912_v53, %v1908_v58  ;;  %5075 = vrcp.f32 %v5642_v54  ;;  %v1842_v44 = vpop.f32.mrf.mxu3  ;;  %v1929_v32 = vand.u32 2147483647, %v5642_v54  ;;  %v1931_v40 = vand.u32 2147483648, %v5642_v54  ;;  %v4528_v58 = vld [vmem:[#allocation7 + $0x714] sm:$0xf0] }
 0x203   : > { %v1935_v1 = vmul.f32 %v5072_v50, %v1913_v62  ;;  %v4443_v56 = vor.u32 %v4902_v43, %v4440_v49  ;;  %2842 = vmatpush.bf16.msrb.mxu1 %v4535_v33  ;;  %v4531_v29 = vor.u32 %v4924_v57, %v4528_v58  ;;  %vm1925_vm5 = vweird.f32 %v5642_v54  ;;  %v4918_v33 = vld [vmem:[#allocation7 + $0x504] sm:$0xf] }
 0x204   : > { %v1866_v6 = vpop.f32.mrf.mxu1  ;;  %2900 = vmatpush.bf16.msrb.mxu3 %v4539_v41  ;;  %2817 = vmatpush.bf16.msrb.mxu0 %v4439_v31  ;;  %v1932_v44 = vor.u32 1.1754944e-38, %v1931_v40  ;;  %vm1930_vm7 = vcmp.eq.f32.partialorder %v1929_v32, 8.507059e+37 }
 0x205   : > { %v5074_v35 = vpop.eup %5073  ;;  %v1867_v47 = vadd.f32 %v1866_v6, %v1854_v27  ;;  %2875 = vmatpush.bf16.msrb.mxu2 %v4443_v56  ;;  %v4502_v27 = vld [vmem:[#allocation7 + $0x500] sm:$0xf] }
 0x206   : > { %v5652_v11 = vadd.f32 1.0, %v5074_v35  ;;  %v4519_v35 = vor.u32 %v4923_v0, %v4518_v63 }
 0x207   : > { %2843 = vmatpush.bf16.msrb.mxu1 %v4527_v39  ;;  %v2244_v31 = vpop.f32.mrf.mxu0 }
 0x208   : > { %v5654_v30 = vpop.eup %5075  ;;  %5077 = vrcp.f32 %v5652_v11  ;;  %2901 = vmatpush.bf16.msrb.mxu3 %v4531_v29  ;;  %v1953_v6 = vand.u32 2147483648, %v5652_v11  ;;  %v1951_v46 = vand.u32 2147483647, %v5652_v11  ;;  %vm1947_vm9 = vweird.f32 %v5652_v11 }
 0x209   : > { %v1921_v15 = vmul.f32 %v5654_v30, %v5642_v54  ;;  %5079 = vtanh.f32 %v1935_v1  ;;  %vm1926_vm4 = vweird.f32 %v5654_v30 }
 0x20a   : > { %v1892_v28 = vpop.f32.mrf.mxu3  ;;  %vm5672_vm6 = vmor %vm1925_vm5, %vm1926_vm4  ;;  %v1954_v19 = vor.u32 1.1754944e-38, %v1953_v6  ;;  %vm1952_vm11 = vcmp.eq.f32.partialorder %v1951_v46, 8.507059e+37 }
 0x20b   : > { %v1922_v37 = vsub.f32 1.0, %v1921_v15  ;;  %v1893_v60 = vadd.f32 %v1892_v28, %v1880_v20  ;;  %v5687_v15 = vpop.f32.mrf.mxu2  ;;  %2844 = vmatpush.bf16.msrb.mxu1 %v4519_v35  ;;  %v4919_v28 = vld [vmem:[#allocation7 + $0x548] sm:$0xf0] }
 0x20c   : > { %v1868_v48 = vpop.f32.mrf.mxu1  ;;  %2902 = vmatpush.bf16.msrb.mxu3 %v4523_v38  ;;  %v4503_v36 = vor.u32 %v4919_v28, %v4502_v27 }
 0x20d   : > { %v1923_v52 = vmul.f32 %v5654_v30, %v1922_v37  ;;  %v4147_v53 = vmul.f32 -1.442695, %v1893_v60  ;;  %v4507_v37 = vor.u32 %v4918_v33, %v4504_v34  ;;  %v2024_v60 = vld [vmem:[#allocation8 + $0xc] sm:$0x3] }
 0x20e   : > { %v5078_v59 = vpop.eup %5077  ;;  %v5696_v41 = vperm.slane %v2024_v60, 0  ;;  %v5701_v0 = vperm.slane %v2024_v60, 1 }
 0x20f   : > { %v1943_v61 = vmul.f32 %v5078_v59, %v5652_v11  ;;  %5081 = vpow2.f32 %v4147_v53  ;;  %v1924_v50 = vadd.f32 %v5654_v30, %v1923_v52  ;;  %v5080_v5 = vpop.eup %5079  ;;  %vm1948_vm8 = vweird.f32 %v5078_v59  ;;  %2845 = vmatpush.bf16.msrb.mxu1 %v4511_v21  ;;  %v2246_v3 = vpop.f32.mrf.mxu0 }
 0x210   : > { %5083 = vtanh.f32 %v1867_v47  ;;  %vm5683_vm10 = vmor %vm1947_vm9, %vm1948_vm8  ;;  %2903 = vmatpush.bf16.msrb.mxu3 %v4515_v22  ;;  %v2240_v49 = vadd.f32 %v5665_v55, %v5696_v41  ;;  %v2242_v57 = vadd.f32 %v2241_v24, %v5696_v41  ;;  %v2298_v6 = vadd.f32 %v5687_v15, %v5701_v0 }
 0x211   : > { %v1944_v1 = vsub.f32 1.0, %v1943_v61  ;;  %v1928_v54 = vsel %vm5672_vm6, %v5654_v30, %v1924_v50  ;;  %v2245_v38 = vadd.f32 %v2244_v31, %v5696_v41  ;;  %v2247_v13 = vadd.f32 %v2246_v3, %v5696_v41 }
 0x212   : > { %v1894_v7 = vpop.f32.mrf.mxu3  ;;  %v1933_v8 = vsel %vm1930_vm7, %v1932_v44, %v1928_v54 }
 0x213   : > { %v1945_v9 = vmul.f32 %v5078_v59, %v1944_v1  ;;  %v1937_v10 = vmul.f32 %v5080_v5, %v1933_v8  ;;  %2846 = vmatpush.bf16.msrb.mxu1 %v4503_v36  ;;  %v2299_v43 = vpop.f32.mrf.mxu2 }
 0x214   : > { %2904 = vmatpush.bf16.msrb.mxu3 %v4507_v37  ;;  %v2300_v7 = vadd.f32 %v2299_v43, %v5701_v0 }
 0x215   : > { %v5082_v14 = vpop.eup %5081  ;;  %v1946_v2 = vadd.f32 %v5078_v59, %v1945_v9  ;;  %v1980_v16 = vperm.slane %v1937_v10, 0  ;;  %v2394_v17 = vpack.c.bf16 %v1937_v10, %v1937_v10 }
 0x216   : > { %v1961_v20 = vadd.f32 1.0, %v5082_v14  ;;  %v5084_v23 = vpop.eup %5083 }
 0x217   : > { %v1950_v11 = vsel %vm5683_vm10, %v5078_v59, %v1946_v2  ;;  %2564 = vmatmul.bf16.vlgmr.msra.gmra.mxu0 %v2394_v17  ;;  %2590 = vmatmul.bf16.vlgmr.msra.gmra.mxu2 %v2394_v17  ;;  %1982 = vst [vmem:[%s5693_s11] sm:$0xff] %v1980_v16  ;;  %v2249_v26 = vpop.f32.mrf.mxu0 }
 0x218   : > { %v1955_v25 = vsel %vm1952_vm11, %v1954_v19, %v1950_v11  ;;  %5085 = vrcp.f32 %v1961_v20  ;;  %v1973_v45 = vand.u32 2147483648, %v1961_v20  ;;  %v1971_v52 = vand.u32 2147483647, %v1961_v20 }
 0x219   : > { %v1977_v32 = vmul.f32 %v5084_v23, %v1955_v25  ;;  %vm1967_vm13 = vweird.f32 %v1961_v20  ;;  %v2250_v27 = vadd.f32 %v2249_v26, %v5696_v41 }
 0x21a   : > { %v1974_v58 = vor.u32 1.1754944e-38, %v1973_v45  ;;  %vm1972_vm15 = vcmp.eq.f32.partialorder %v1971_v52, 8.507059e+37  ;;  %v4594_v45 = vld [vmem:[#allocation7 + $0x470] sm:$0xf] }
 0x21b   : > { %5087 = vtanh.f32 %v1977_v32  ;;  %v2302_v63 = vpop.f32.mrf.mxu2  ;;  %v4626_v52 = vld [vmem:[#allocation7 + $0x930] sm:$0xf] }
 0x21c   : > { %v2303_v22 = vadd.f32 %v2302_v63, %v5701_v0 }
 0x21e   : > { %v5086_v40 = vpop.eup %5085 }
 0x21f   : > { %v1963_v42 = vmul.f32 %v5086_v40, %v1961_v20  ;;  %vm1968_vm12 = vweird.f32 %v5086_v40  ;;  %v2251_v24 = vpop.f32.mrf.mxu0 }
 0x220   : > { %vm1969_vm14 = vmor %vm1967_vm13, %vm1968_vm12  ;;  %v2252_v34 = vadd.f32 %v2251_v24, %v5696_v41 }
 0x221   : > { %v1964_v47 = vsub.f32 1.0, %v1963_v42  ;;  %v5088_v29 = vpop.eup %5087 }
 0x223   : > { %v1965_v51 = vmul.f32 %v5086_v40, %v1964_v47  ;;  %v2304_v10 = vpop.f32.mrf.mxu2 }
 0x224   : > { %v2268_v48 = vpop.f32.mrf.mxu1  ;;  %v2305_v23 = vadd.f32 %v2304_v10, %v5701_v0 }
 0x225   : > { %v1966_v53 = vadd.f32 %v5086_v40, %v1965_v51  ;;  %v2269_v56 = vadd.f32 %v2268_v48, %v2240_v49  ;;  %v4941_v51 = vld [vmem:[#allocation7 + $0x4b8] sm:$0xf0] }
 0x227   : > { %v1970_v39 = vsel %vm1969_vm14, %v5086_v40, %v1966_v53  ;;  %v2346_v55 = vmax.f32 %v2269_v56, 0.0  ;;  %v2254_v43 = vpop.f32.mrf.mxu0  ;;  %v4595_v56 = vor.u32 %v4941_v51, %v4594_v45  ;;  %v4606_v45 = vld [vmem:[#allocation7 + $0x638] sm:$0xf]  ;;  %v4944_v51 = vld [vmem:[#allocation7 + $0x680] sm:$0xf0] }
 0x228   : > { %v1975_v61 = vsel %vm1972_vm15, %v1974_v58, %v1970_v39 }
 0x229   : > { %v1979_v62 = vmul.f32 %v5088_v29, %v1975_v61  ;;  %3104 = vmatpush.bf16.msra.mxu0 %v4595_v56 }
 0x22a   : > { %v2326_v59 = vpop.f32.mrf.mxu3 }
 0x22b   : > { %v1981_v1 = vperm.slane %v1979_v62, 0  ;;  %v2395_v54 = vpack.c.bf16 %v1979_v62, %v1979_v62  ;;  %v2327_v9 = vadd.f32 %v2326_v59, %v2298_v6  ;;  %v2307_v21 = vpop.f32.mrf.mxu2 }
 0x22c   : > { %v2270_v50 = vpop.f32.mrf.mxu1  ;;  %v2308_v58 = vadd.f32 %v2307_v21, %v5701_v0  ;;  %v4586_v21 = vld [vmem:[#allocation7 + $0x340] sm:$0xf] }
 0x22d   : > { %v2271_v44 = vadd.f32 %v2270_v50, %v2242_v57  ;;  %2577 = vmatmul.bf16.vlgmr.msra.gmra.mxu1 %v2395_v54  ;;  %2603 = vmatmul.bf16.vlgmr.msra.gmra.mxu3 %v2395_v54  ;;  %1983 = vst [vmem:[%s5693_s11 + $0x8] sm:$0xff] %v1981_v1  ;;  %v2347_v14 = vmax.f32 %v2327_v9, 0.0  ;;  %v4949_v57 = vld [vmem:[#allocation7 + $0x978] sm:$0xf0]  ;;  %v2255_v50 = vadd.f32 %v2254_v43, %v5696_v41 }
 0x22e   : > { %v4627_v29 = vor.u32 %v4949_v57, %v4626_v52  ;;  %v4607_v52 = vor.u32 %v4944_v51, %v4606_v45  ;;  %v4570_v57 = vld [vmem:[#allocation7 + $0xe0] sm:$0xf] }
 0x22f   : > { %v2348_v4 = vmax.f32 %v2271_v44, 0.0  ;;  %v2256_v63 = vpop.f32.mrf.mxu0 }
 0x230   : > { %3133 = vmatpush.bf16.msra.mxu1 %v4627_v29  ;;  %v2257_v54 = vadd.f32 %v2256_v63, %v5696_v41  ;;  %v4602_v29 = vld [vmem:[#allocation7 + $0x5a0] sm:$0xf] }
 0x231   : > { %v2640_v5 = vpack.c.bf16 %v2348_v4, %v2346_v55 }
 0x232   : > { %v2328_v8 = vpop.f32.mrf.mxu3 }
 0x233   : > { %2818 = vmatmul.bf16.vlgmr.msrb.gmra.mxu0 %v2640_v5  ;;  %2876 = vmatmul.bf16.vlgmr.msrb.gmra.mxu2 %v2640_v5  ;;  %v2329_v46 = vadd.f32 %v2328_v8, %v2300_v7  ;;  %v2309_v40 = vpop.f32.mrf.mxu2 }
 0x234   : > { %v2273_v35 = vpop.f32.mrf.mxu1  ;;  %v2310_v59 = vadd.f32 %v2309_v40, %v5701_v0  ;;  %v4610_v40 = vld [vmem:[#allocation7 + $0x6d0] sm:$0xf] }
 0x235   : > { %v2274_v12 = vadd.f32 %v2273_v35, %v2245_v38  ;;  %v2349_v2 = vmax.f32 %v2329_v46, 0.0 }
 0x237   : > { %v2350_v18 = vmax.f32 %v2274_v12, 0.0  ;;  %v2641_v19 = vpack.c.bf16 %v2349_v2, %v2347_v14 }
 0x23a   : > { %v2331_v16 = vpop.f32.mrf.mxu3 }
 0x23b   : > { %v2332_v28 = vadd.f32 %v2331_v16, %v2303_v22  ;;  %v2312_v62 = vpop.f32.mrf.mxu2  ;;  %v4618_v22 = vld [vmem:[#allocation7 + $0x800] sm:$0xf] }
 0x23c   : > { %v2275_v17 = vpop.f32.mrf.mxu1  ;;  %v2313_v10 = vadd.f32 %v2312_v62, %v5701_v0  ;;  %v4566_v62 = vld [vmem:[#allocation7 + $0x48] sm:$0xf] }
 0x23d   : > { %v2276_v30 = vadd.f32 %v2275_v17, %v2247_v13  ;;  %2847 = vmatmul.bf16.vlgmr.msrb.gmra.mxu1 %v2641_v19  ;;  %2905 = vmatmul.bf16.vlgmr.msrb.gmra.mxu3 %v2641_v19  ;;  %v2351_v36 = vmax.f32 %v2332_v28, 0.0  ;;  %v4590_v17 = vld [vmem:[#allocation7 + $0x3d8] sm:$0xf]  ;;  %v4614_v28 = vld [vmem:[#allocation7 + $0x768] sm:$0xf] }
 0x23f   : > { %v2352_v20 = vmax.f32 %v2276_v30, 0.0  ;;  %v4622_v30 = vld [vmem:[#allocation7 + $0x898] sm:$0xf] }
 0x241   : > { %v2642_v15 = vpack.c.bf16 %v2352_v20, %v2350_v18  ;;  %v4940_v18 = vld [vmem:[#allocation7 + $0x420] sm:$0xf0] }
 0x242   : > { %v2333_v11 = vpop.f32.mrf.mxu3  ;;  %v4591_v19 = vor.u32 %v4940_v18, %v4590_v17  ;;  %v4948_v20 = vld [vmem:[#allocation7 + $0x8e0] sm:$0xf0] }
 0x243   : > { %2823 = vmatmul.bf16.gmra.mxu0 %v2642_v15  ;;  %2881 = vmatmul.bf16.gmra.mxu2 %v2642_v15  ;;  %v2334_v32 = vadd.f32 %v2333_v11, %v2305_v23  ;;  %v2314_v9 = vpop.f32.mrf.mxu2  ;;  %v4623_v15 = vor.u32 %v4948_v20, %v4622_v30  ;;  %v4947_v11 = vld [vmem:[#allocation7 + $0x848] sm:$0xf0] }
 0x244   : > { %v2278_v25 = vpop.f32.mrf.mxu1  ;;  %v2315_v26 = vadd.f32 %v2314_v9, %v5701_v0  ;;  %3105 = vmatpush.bf16.msra.mxu0 %v4591_v19  ;;  %v4939_v0 = vld [vmem:[#allocation7 + $0x388] sm:$0xf0]  ;;  %v4619_v24 = vor.u32 %v4947_v11, %v4618_v22 }
 0x245   : > { %v2279_v33 = vadd.f32 %v2278_v25, %v2250_v27  ;;  %v2353_v37 = vmax.f32 %v2334_v32, 0.0  ;;  %3134 = vmatpush.bf16.msra.mxu1 %v4623_v15  ;;  %v4587_v23 = vor.u32 %v4939_v0, %v4586_v21  ;;  %v4582_v25 = vld [vmem:[#allocation7 + $0x2a8] sm:$0xf]  ;;  %v4938_v27 = vld [vmem:[#allocation7 + $0x2f0] sm:$0xf0] }
 0x246   : > { %v4583_v32 = vor.u32 %v4938_v27, %v4582_v25 }
 0x247   : > { %v2354_v47 = vmax.f32 %v2279_v33, 0.0  ;;  %v2643_v31 = vpack.c.bf16 %v2353_v37, %v2351_v36  ;;  %v4946_v33 = vld [vmem:[#allocation7 + $0x7b0] sm:$0xf0]  ;;  %v4578_v36 = vld [vmem:[#allocation7 + $0x210] sm:$0xf] }
 0x248   : > { %3106 = vmatpush.bf16.msra.mxu0 %v4587_v23  ;;  %v4937_v37 = vld [vmem:[#allocation7 + $0x258] sm:$0xf0] }
 0x249   : > { %3135 = vmatpush.bf16.msra.mxu1 %v4619_v24 }
 0x24a   : > { %v2336_v60 = vpop.f32.mrf.mxu3 }
 0x24b   : > { %v2337_v55 = vadd.f32 %v2336_v60, %v2308_v58  ;;  %v4579_v60 = vor.u32 %v4937_v37, %v4578_v36  ;;  %v4935_v58 = vld [vmem:[#allocation7 + $0x128] sm:$0xf0] }
 0x24c   : > { %v2280_v42 = vpop.f32.mrf.mxu1  ;;  %3107 = vmatpush.bf16.msra.mxu0 %v4583_v32 }
 0x24d   : > { %v2281_v48 = vadd.f32 %v2280_v42, %v2252_v34  ;;  %2852 = vmatmul.bf16.gmra.mxu1 %v2643_v31  ;;  %2910 = vmatmul.bf16.gmra.mxu3 %v2643_v31  ;;  %v2355_v3 = vmax.f32 %v2337_v55, 0.0  ;;  %v4615_v34 = vor.u32 %v4946_v33, %v4614_v28  ;;  %v4945_v42 = vld [vmem:[#allocation7 + $0x718] sm:$0xf0]  ;;  %v4936_v31 = vld [vmem:[#allocation7 + $0x1c0] sm:$0xf0] }
 0x24e   : > { %v4934_v55 = vld [vmem:[#allocation7 + $0x90] sm:$0xf0] }
 0x24f   : > { %v2356_v49 = vmax.f32 %v2281_v48, 0.0  ;;  %3136 = vmatpush.bf16.msra.mxu1 %v4615_v34  ;;  %v4574_v48 = vld [vmem:[#allocation7 + $0x178] sm:$0xf] }
 0x250   : > { %3108 = vmatpush.bf16.msra.mxu0 %v4579_v60 }
 0x251   : > { %v2644_v53 = vpack.c.bf16 %v2356_v49, %v2354_v47  ;;  %v4611_v47 = vor.u32 %v4945_v42, %v4610_v40  ;;  %v4575_v49 = vor.u32 %v4936_v31, %v4574_v48 }
 0x252   : > { %v2338_v39 = vpop.f32.mrf.mxu3 }
 0x253   : > { %2828 = vmatmul.bf16.gmra.mxu0 %v2644_v53  ;;  %2886 = vmatmul.bf16.gmra.mxu2 %v2644_v53  ;;  %v2339_v44 = vadd.f32 %v2338_v39, %v2310_v59  ;;  %v4571_v59 = vor.u32 %v4935_v58, %v4570_v57 }
 0x254   : > { %v2283_v61 = vpop.f32.mrf.mxu1  ;;  %3137 = vmatpush.bf16.msra.mxu1 %v4611_v47  ;;  %3109 = vmatpush.bf16.msra.mxu0 %v4575_v49 }
 0x255   : > { %v2284_v1 = vadd.f32 %v2283_v61, %v2255_v50  ;;  %v2357_v4 = vmax.f32 %v2339_v44, 0.0  ;;  %v4943_v61 = vld [vmem:[#allocation7 + $0x5e8] sm:$0xf0]  ;;  %v4567_v44 = vor.u32 %v4934_v55, %v4566_v62 }
 0x256   : > { %v4603_v50 = vor.u32 %v4943_v61, %v4602_v29 }
 0x257   : > { %v2358_v7 = vmax.f32 %v2284_v1, 0.0  ;;  %v2645_v35 = vpack.c.bf16 %v2357_v4, %v2355_v3  ;;  %v4598_v1 = vld [vmem:[#allocation7 + $0x508] sm:$0xf] }
 0x258   : > { %3138 = vmatpush.bf16.msra.mxu1 %v4607_v52  ;;  %3110 = vmatpush.bf16.msra.mxu0 %v4571_v59 }
 0x25a   : > { %v2341_v5 = vpop.f32.mrf.mxu3 }
 0x25b   : > { %v2342_v41 = vadd.f32 %v2341_v5, %v2313_v10 }
 0x25c   : > { %v2285_v6 = vpop.f32.mrf.mxu1  ;;  %3139 = vmatpush.bf16.msra.mxu1 %v4603_v50  ;;  %3111 = vmatpush.bf16.msra.mxu0 %v4567_v44 }
 0x25d   : > { %v2286_v8 = vadd.f32 %v2285_v6, %v2257_v54  ;;  %2857 = vmatmul.bf16.gmra.mxu1 %v2645_v35  ;;  %2915 = vmatmul.bf16.gmra.mxu3 %v2645_v35  ;;  %v2359_v14 = vmax.f32 %v2342_v41, 0.0  ;;  %v4942_v54 = vld [vmem:[#allocation7 + $0x550] sm:$0xf0] }
 0x25e   : > { %v4599_v4 = vor.u32 %v4942_v54, %v4598_v1 }
 0x25f   : > { %v2360_v38 = vmax.f32 %v2286_v8, 0.0 }
 0x260   : > { %3140 = vmatpush.bf16.msra.mxu1 %v4599_v4 }
 0x261   : > { %v2646_v46 = vpack.c.bf16 %v2360_v38, %v2358_v7 }
 0x262   : > { %v2343_v12 = vpop.f32.mrf.mxu3 }
 0x263   : > { %2833 = vmatmul.bf16.gmra.mxu0 %v2646_v46  ;;  %2891 = vmatmul.bf16.gmra.mxu2 %v2646_v46  ;;  %v2344_v13 = vadd.f32 %v2343_v12, %v2315_v26  ;;  %v2926_v12 = vld [vmem:[#allocation8 + $0xe] sm:$0x3] }
 0x264   : > { %v5729_v22 = vperm.slane %v2926_v12, 1 }
 0x265   : > { %v2361_v2 = vmax.f32 %v2344_v13, 0.0 }
 0x267   : > { %v2647_v16 = vpack.c.bf16 %v2361_v2, %v2359_v14 }
 0x26d   : > { %2862 = vmatmul.bf16.gmra.mxu1 %v2647_v16  ;;  %2920 = vmatmul.bf16.gmra.mxu3 %v2647_v16  ;;  %v5724_v16 = vperm.slane %v2926_v12, 0 }
 0x294   : > { %v2565_v43 = vpop.f32.mrf.mxu0 }
 0x29a   : > { %v2591_v53 = vpop.f32.mrf.mxu2 }
 0x29c   : > { %v2567_v56 = vpop.f32.mrf.mxu0 }
 0x2a2   : > { %v2593_v39 = vpop.f32.mrf.mxu2 }
 0x2aa   : > { %v2578_v63 = vpop.f32.mrf.mxu1 }
 0x2ab   : > { %v2579_v8 = vadd.f32 %v2578_v63, %v2565_v43 }
 0x2ad   : > { %v5719_v9 = vperm.slane %v2579_v8, 0 }
 0x2b0   : > { %v2819_v3 = vpop.f32.mrf.mxu0  ;;  %v2604_v5 = vpop.f32.mrf.mxu3 }
 0x2b1   : > { %v2605_v10 = vadd.f32 %v2604_v5, %v2591_v53  ;;  %v2820_v41 = vadd.f32 %v2819_v3, %v5719_v9 }
 0x2b2   : > { %v2580_v6 = vpop.f32.mrf.mxu1 }
 0x2b3   : > { %v5722_v14 = vperm.slane %v2605_v10, 0 }
 0x2b6   : > { %v2877_v7 = vpop.f32.mrf.mxu2 }
 0x2b7   : > { %v2878_v19 = vadd.f32 %v2877_v7, %v5722_v14 }
 0x2b8   : > { %v2821_v35 = vpop.f32.mrf.mxu0  ;;  %v2606_v38 = vpop.f32.mrf.mxu3 }
 0x2b9   : > { %v2822_v18 = vadd.f32 %v2821_v35, %v5719_v9 }
 0x2ba   : > { %v2848_v46 = vpop.f32.mrf.mxu1 }
 0x2bb   : > { %v2849_v2 = vadd.f32 %v2848_v46, %v2820_v41 }
 0x2bd   : > { %v2932_v20 = vadd.f32 %v5724_v16, %v2849_v2 }
 0x2be   : > { %v2879_v26 = vpop.f32.mrf.mxu2 }
 0x2bf   : > { %v2948_v24 = vmax.f32 %v2932_v20, 0.0  ;;  %v2880_v25 = vadd.f32 %v2879_v26, %v5722_v14 }
 0x2c0   : > { %v2824_v13 = vpop.f32.mrf.mxu0  ;;  %v2906_v17 = vpop.f32.mrf.mxu3 }
 0x2c1   : > { %v2907_v0 = vadd.f32 %v2906_v17, %v2878_v19  ;;  %v2825_v40 = vadd.f32 %v2824_v13, %v5719_v9 }
 0x2c2   : > { %v2850_v30 = vpop.f32.mrf.mxu1 }
 0x2c3   : > { %v2851_v15 = vadd.f32 %v2850_v30, %v2822_v18  ;;  %v2933_v32 = vadd.f32 %v5729_v22, %v2907_v0 }
 0x2c5   : > { %v2934_v23 = vadd.f32 %v5724_v16, %v2851_v15  ;;  %v2949_v42 = vmax.f32 %v2933_v32, 0.0 }
 0x2c6   : > { %v2882_v21 = vpop.f32.mrf.mxu2 }
 0x2c7   : > { %v2950_v27 = vmax.f32 %v2934_v23, 0.0  ;;  %v2883_v52 = vadd.f32 %v2882_v21, %v5722_v14 }
 0x2c8   : > { %v2826_v11 = vpop.f32.mrf.mxu0  ;;  %v2908_v28 = vpop.f32.mrf.mxu3 }
 0x2c9   : > { %v2996_v33 = vpack.c.bf16 %v2950_v27, %v2948_v24  ;;  %v2909_v34 = vadd.f32 %v2908_v28, %v2880_v25  ;;  %v2827_v45 = vadd.f32 %v2826_v11, %v5719_v9 }
 0x2ca   : > { %v2853_v36 = vpop.f32.mrf.mxu1 }
 0x2cb   : > { %v2935_v37 = vadd.f32 %v5729_v22, %v2909_v34  ;;  %3112 = vmatmul.bf16.vlgmr.msra.gmra.mxu0 %v2996_v33  ;;  %v2854_v48 = vadd.f32 %v2853_v36, %v2825_v40 }
 0x2cd   : > { %v2951_v43 = vmax.f32 %v2935_v37, 0.0  ;;  %v2936_v53 = vadd.f32 %v5724_v16, %v2854_v48 }
 0x2ce   : > { %v2884_v60 = vpop.f32.mrf.mxu2 }
 0x2cf   : > { %v2997_v47 = vpack.c.bf16 %v2951_v43, %v2949_v42  ;;  %v2952_v39 = vmax.f32 %v2936_v53, 0.0  ;;  %v2885_v29 = vadd.f32 %v2884_v60, %v5722_v14 }
 0x2d0   : > { %v2829_v31 = vpop.f32.mrf.mxu0  ;;  %v2911_v49 = vpop.f32.mrf.mxu3 }
 0x2d1   : > { %3141 = vmatmul.bf16.vlgmr.msra.gmra.mxu1 %v2997_v47  ;;  %v2912_v57 = vadd.f32 %v2911_v49, %v2883_v52  ;;  %v2830_v3 = vadd.f32 %v2829_v31, %v5719_v9 }
 0x2d2   : > { %v2855_v51 = vpop.f32.mrf.mxu1 }
 0x2d3   : > { %v2856_v56 = vadd.f32 %v2855_v51, %v2827_v45  ;;  %v2937_v62 = vadd.f32 %v5729_v22, %v2912_v57 }
 0x2d5   : > { %v2938_v58 = vadd.f32 %v5724_v16, %v2856_v56  ;;  %v2953_v4 = vmax.f32 %v2937_v62, 0.0 }
 0x2d6   : > { %v2887_v59 = vpop.f32.mrf.mxu2 }
 0x2d7   : > { %v2954_v61 = vmax.f32 %v2938_v58, 0.0  ;;  %v2888_v10 = vadd.f32 %v2887_v59, %v5722_v14 }
 0x2d8   : > { %v2913_v50 = vpop.f32.mrf.mxu3  ;;  %v2831_v63 = vpop.f32.mrf.mxu0 }
 0x2d9   : > { %v2914_v55 = vadd.f32 %v2913_v50, %v2885_v29  ;;  %v2998_v44 = vpack.c.bf16 %v2954_v61, %v2952_v39  ;;  %v2832_v38 = vadd.f32 %v2831_v63, %v5719_v9 }
 0x2da   : > { %v2858_v1 = vpop.f32.mrf.mxu1 }
 0x2db   : > { %v2939_v54 = vadd.f32 %v5729_v22, %v2914_v55  ;;  %3117 = vmatmul.bf16.gmra.mxu0 %v2998_v44  ;;  %v2859_v6 = vadd.f32 %v2858_v1, %v2830_v3 }
 0x2dd   : > { %v2955_v5 = vmax.f32 %v2939_v54, 0.0  ;;  %v2940_v26 = vadd.f32 %v5724_v16, %v2859_v6 }
 0x2de   : > { %v2889_v8 = vpop.f32.mrf.mxu2 }
 0x2df   : > { %v2999_v7 = vpack.c.bf16 %v2955_v5, %v2953_v4  ;;  %v2956_v17 = vmax.f32 %v2940_v26, 0.0  ;;  %v2890_v18 = vadd.f32 %v2889_v8, %v5722_v14 }
 0x2e0   : > { %v2916_v35 = vpop.f32.mrf.mxu3  ;;  %v2834_v41 = vpop.f32.mrf.mxu0 }
 0x2e1   : > { %3146 = vmatmul.bf16.gmra.mxu1 %v2999_v7  ;;  %v2917_v13 = vadd.f32 %v2916_v35, %v2888_v10  ;;  %v2835_v24 = vadd.f32 %v2834_v41, %v5719_v9 }
 0x2e2   : > { %v2860_v46 = vpop.f32.mrf.mxu1 }
 0x2e3   : > { %v2861_v12 = vadd.f32 %v2860_v46, %v2832_v38  ;;  %v2941_v20 = vadd.f32 %v5729_v22, %v2917_v13 }
 0x2e5   : > { %v2942_v2 = vadd.f32 %v5724_v16, %v2861_v12  ;;  %v2957_v25 = vmax.f32 %v2941_v20, 0.0 }
 0x2e6   : > { %v2892_v0 = vpop.f32.mrf.mxu2 }
 0x2e7   : > { %v2958_v30 = vmax.f32 %v2942_v2, 0.0  ;;  %v2893_v60 = vadd.f32 %v2892_v0, %v5722_v14 }
 0x2e8   : > { %v2918_v19 = vpop.f32.mrf.mxu3  ;;  %v2836_v28 = vpop.f32.mrf.mxu0 }
 0x2e9   : > { %v2919_v15 = vadd.f32 %v2918_v19, %v2890_v18  ;;  %v3000_v21 = vpack.c.bf16 %v2958_v30, %v2956_v17  ;;  %v2837_v36 = vadd.f32 %v2836_v28, %v5719_v9 }
 0x2ea   : > { %v2863_v23 = vpop.f32.mrf.mxu1 }
 0x2eb   : > { %v2943_v11 = vadd.f32 %v5729_v22, %v2919_v15  ;;  %3122 = vmatmul.bf16.gmra.mxu0 %v3000_v21  ;;  %v2864_v32 = vadd.f32 %v2863_v23, %v2835_v24 }
 0x2ed   : > { %v2959_v27 = vmax.f32 %v2943_v11, 0.0  ;;  %v2944_v40 = vadd.f32 %v5724_v16, %v2864_v32 }
 0x2ee   : > { %v2894_v43 = vpop.f32.mrf.mxu2 }
 0x2ef   : > { %v3001_v33 = vpack.c.bf16 %v2959_v27, %v2957_v25  ;;  %v2960_v31 = vmax.f32 %v2944_v40, 0.0  ;;  %v2895_v49 = vadd.f32 %v2894_v43, %v5722_v14 }
 0x2f0   : > { %v2921_v34 = vpop.f32.mrf.mxu3 }
 0x2f1   : > { %3151 = vmatmul.bf16.gmra.mxu1 %v3001_v33  ;;  %v2922_v47 = vadd.f32 %v2921_v34, %v2893_v60 }
 0x2f2   : > { %v2865_v37 = vpop.f32.mrf.mxu1 }
 0x2f3   : > { %v2866_v42 = vadd.f32 %v2865_v37, %v2837_v36  ;;  %v2945_v9 = vadd.f32 %v5729_v22, %v2922_v47 }
 0x2f5   : > { %v2946_v48 = vadd.f32 %v5724_v16, %v2866_v42  ;;  %v2961_v57 = vmax.f32 %v2945_v9, 0.0 }
 0x2f7   : > { %v2962_v45 = vmax.f32 %v2946_v48, 0.0 }
 0x2f8   : > { %v2923_v51 = vpop.f32.mrf.mxu3 }
 0x2f9   : > { %v2924_v52 = vadd.f32 %v2923_v51, %v2895_v49  ;;  %v3002_v53 = vpack.c.bf16 %v2962_v45, %v2960_v31 }
 0x2fb   : > { %v2947_v56 = vadd.f32 %v5729_v22, %v2924_v52  ;;  %3127 = vmatmul.bf16.gmra.mxu0 %v3002_v53 }
 0x2fd   : > { %v2963_v58 = vmax.f32 %v2947_v56, 0.0 }
 0x2ff   : > { %v3003_v59 = vpack.c.bf16 %v2963_v58, %v2961_v57 }
 0x301   : > { %3156 = vmatmul.bf16.gmra.mxu1 %v3003_v59 }
 0x302   : > { %5236 = shalt.err (!%p5233_p10)
}
 0x303   : > { %4966 = dma.vmem_to_hbm [thread:$0]  (%p5442_p5), %s3198_s15, 256, %s3200_s23, %s3179_s16   ;;  %v5040_v16 = vld [vmem:[#allocation8 + $0x10] ss:$0 sm:$0xff] }
 0x304   : > { %s5845_s11 = sshll.u32 %s5476_s28, 6  ;;  %s4951_s30 = sshll.u32 %s5381_s22, 6 }
 0x305   : > { %s5777_s12 = scalar_lea.vmem [#allocation11], %s5845_s11  ;;  %s3210_s14 = scalar_lea.hbm %s5825_s5, %s4951_s30 }
 0x306   : > { %s3211_s15 = sshll.u32 %s5777_s12, 4  ;;  %s3213_s23 = sshll.u32 %s3210_s14, 4  ;;  %s3212_s15 = int_to_ptr.vmem [resolvable:$true] %s3211_s15  ;;  %s3214_s23 = int_to_ptr.hbm [resolvable:$true] %s3213_s23 }
 0x307   : > { %s3184_s16 = scalar_lea.sflag [#allocation12], %s5476_s28  ;;  %s5251_s24 = sshra.s32 %s3214_s23, 4  ;;  %s5252_s24 = int_to_ptr.hbm [resolvable:$true] %s5251_s24 }
 0x308   : > { %s5253_s22 = scalar_lea.hbm %s5252_s24, 64  ;;  %s5257_s26 = scalar_lea.hbm %s5825_s5, 256 }
 0x309   : > { %p5254_p11 = scmp.ne.s32.totalorder %s5252_s24, %s5253_s22  ;;  %p5258_p0 = scmp.lt.s32.totalorder %s5252_s24, %s5825_s5 }
 0x30a   : > { %p5259_p3 = scmp.lt.s32.totalorder %s5257_s26, %s5253_s22 }
 0x30b   : > { %p5255_p12 = pnand %p5254_p11, %p5442_p5 }
 0x30c   : > { %p5260_p1 = por %p5259_p3, %p5258_p0 }
 0x30d   : > { %p5256_p13 = pneg %p5255_p12 }
 0x30f   : > { %p5261_p4 = pnand %p5260_p1, %p5256_p13 }
 0x348   : > { %v3113_v14 = vpop.f32.mrf.mxu0 }
 0x349   : > { %v3114_v22 = vadd.f32 %v5040_v16, %v3113_v14 }
 0x34e   : > { %v3142_v39 = vpop.f32.mrf.mxu1 }
 0x34f   : > { %v3143_v29 = vadd.f32 %v3142_v39, %v3114_v22 }
 0x350   : > { %v3115_v61 = vpop.f32.mrf.mxu0 }
 0x351   : > { %v3162_v50 = vmax.f32 %v3143_v29, 0.0  ;;  %v3116_v62 = vadd.f32 %v5040_v16, %v3115_v61 }
 0x353   : > { %3170 = vst [vmem:[%s5777_s12] sm:$0xff] %v3162_v50 }
 0x356   : > { %v3144_v55 = vpop.f32.mrf.mxu1 }
 0x357   : > { %v3145_v44 = vadd.f32 %v3144_v55, %v3116_v62 }
 0x358   : > { %v3118_v63 = vpop.f32.mrf.mxu0 }
 0x359   : > { %v3163_v1 = vmax.f32 %v3145_v44, 0.0  ;;  %v3119_v54 = vadd.f32 %v5040_v16, %v3118_v63 }
 0x35b   : > { %3171 = vst [vmem:[%s5777_s12 + $0x8] sm:$0xff] %v3163_v1 }
 0x35e   : > { %v3147_v3 = vpop.f32.mrf.mxu1 }
 0x35f   : > { %v3148_v4 = vadd.f32 %v3147_v3, %v3119_v54 }
 0x360   : > { %v3120_v5 = vpop.f32.mrf.mxu0 }
 0x361   : > { %v3164_v6 = vmax.f32 %v3148_v4, 0.0  ;;  %v3121_v7 = vadd.f32 %v5040_v16, %v3120_v5 }
 0x363   : > { %3172 = vst [vmem:[%s5777_s12 + $0x10] sm:$0xff] %v3164_v6 }
 0x366   : > { %v3149_v8 = vpop.f32.mrf.mxu1 }
 0x367   : > { %v3150_v35 = vadd.f32 %v3149_v8, %v3121_v7 }
 0x368   : > { %v3123_v38 = vpop.f32.mrf.mxu0 }
 0x369   : > { %v3165_v46 = vmax.f32 %v3150_v35, 0.0  ;;  %v3124_v10 = vadd.f32 %v5040_v16, %v3123_v38 }
 0x36b   : > { %3173 = vst [vmem:[%s5777_s12 + $0x18] sm:$0xff] %v3165_v46 }
 0x36e   : > { %v3152_v26 = vpop.f32.mrf.mxu1 }
 0x36f   : > { %v3153_v12 = vadd.f32 %v3152_v26, %v3124_v10 }
 0x370   : > { %v3125_v41 = vpop.f32.mrf.mxu0 }
 0x371   : > { %v3166_v13 = vmax.f32 %v3153_v12, 0.0  ;;  %v3126_v2 = vadd.f32 %v5040_v16, %v3125_v41 }
 0x373   : > { %3174 = vst [vmem:[%s5777_s12 + $0x20] sm:$0xff] %v3166_v13 }
 0x376   : > { %v3154_v17 = vpop.f32.mrf.mxu1 }
 0x377   : > { %v3155_v18 = vadd.f32 %v3154_v17, %v3126_v2 }
 0x378   : > { %v3128_v30 = vpop.f32.mrf.mxu0 }
 0x379   : > { %v3167_v19 = vmax.f32 %v3155_v18, 0.0  ;;  %v3129_v20 = vadd.f32 %v5040_v16, %v3128_v30 }
 0x37b   : > { %3175 = vst [vmem:[%s5777_s12 + $0x28] sm:$0xff] %v3167_v19 }
 0x37e   : > { %v3157_v15 = vpop.f32.mrf.mxu1 }
 0x37f   : > { %v3158_v21 = vadd.f32 %v3157_v15, %v3129_v20 }
 0x380   : > { %v3130_v23 = vpop.f32.mrf.mxu0 }
 0x381   : > { %v3168_v0 = vmax.f32 %v3158_v21, 0.0  ;;  %v3131_v11 = vadd.f32 %v5040_v16, %v3130_v23 }
 0x383   : > { %3176 = vst [vmem:[%s5777_s12 + $0x30] sm:$0xff] %v3168_v0 }
 0x386   : > { %v3159_v24 = vpop.f32.mrf.mxu1 }
 0x387   : > { %v3160_v25 = vadd.f32 %v3159_v24, %v3131_v11 }
 0x389   : > { %v3169_v27 = vmax.f32 %v3160_v25, 0.0 }
 0x38b   : > { %3177 = vst [vmem:[%s5777_s12 + $0x38] sm:$0xff] %v3169_v27 }
 0x38c   : > { %5264 = shalt.err (!%p5261_p4)
}
 0x38d   : > { %s5328_s28 = smov 128   ;;  %s5329_s11 = smov 8  }
 0x38e   : > { %4967 = dma.vmem_to_hbm [thread:$0]  (%p5442_p5), %s3212_s15, 1024, %s3214_s23, %s3184_s16, %s5328_s28, %s5328_s28, %s5329_s11  }
 0x38f PF: > { %p4998_p8 = scmp.ge.s32.totalorder %s5319_s21, 2  ;;  %s3228_s12 = sand.u32 1, %s5307_s18  }
 0x390   : > { %s3229_s30 = scalar_lea.sflag [#allocation4], %s3228_s12 }
 0x391   : > { %p4985_p7 = pnand %p4998_p8, %p5395_p6 }
 0x393   : > { %p4986_p2 = pneg %p4985_p7 }
 0x395   : > { %5298 = dma.done.wait (%p4986_p2), %s3229_s30, 256  }
 0x396   : > { %5300 = vsyncadd (%p4986_p2), %s3229_s30, 4294967040  ;;  %s3239_s13 = scalar_lea.sflag [#allocation12], %s3228_s12 }
 0x397   : > { %5302 = dma.done.wait (%p4986_p2), %s3239_s13, 1024  }
 0x398   : > { %5304 = vsyncadd (%p4986_p2), %s3239_s13, 4294966272  ;;  %p24_p5 = scmp.ge.s32.totalorder %s5426_s27, 6   ;;  %s5846_s18 = smov %s5311_s19 }
 0x399   : > { %s5847_s19 = smov %s5315_s20  ;;  %s5848_s20 = smov %s5438_s6 }
 0x39a   : > { %s5849_s21 = smov %s5426_s27  ;;  %26 = sbr.rel (!%p24_p5) target bundleno = 9 (0x9), region = 112 }
 0x39f   :  { %3245 = vsyncpa [#allocation3], 1 }
 0x3a0   :  { %3247 = vsyncpa [#allocation3 + $0x1], 1 }
 0x3a1   :  { %3248 = vsyncpa [#allocation6], 1 }
 0x3a2   :  { %3250 = vsyncpa [#allocation6 + $0x1], 1 }
 0x3a3   :  { %3251 = vsyncpa [#allocation9], 1 }
 0x3a4   :  { %3252 = vsyncpa [#allocation4], 1 }
 0x3a5   :  { %3254 = vsyncpa [#allocation4 + $0x1], 1 }
 0x3a6   :  { %3255 = vsyncpa [#allocation12], 1 }
 0x3a7   :  { %3257 = vsyncpa [#allocation12 + $0x1], 1 }

</bundles_post_ra>
